<compile_context>
chip_gen: v7x
topology: tpu7x:2x2x1
jax: 0.10.0
libtpu: 0.0.40
codegen_flags: <defaults>
</compile_context>

<pallas_src>
import functools

import jax
import jax.numpy as jnp
from jax.experimental import pallas as pl
from jax.experimental.pallas import tpu as pltpu

LATENT_DIM = 32
# Logical (PyTorch) dims and lane-padded dims used by the kernel.
DIMS = (LATENT_DIM, 128, 128, 512, 512, 1000, 28 * 28)
PADDED_DIMS = (128, 128, 128, 512, 512, 1024, 896)   # latent->128, 1000->1024, 784->896
OUT_DIM = 28 * 28           # 784
OUT_PAD = PADDED_DIMS[-1]   # 896
LATENT_PAD = PADDED_DIMS[0]  # 128
N_LAYERS = len(DIMS) - 1


def _cdiv(a, b):
    return -(-a // b)


def _round_up(n, m):
    return _cdiv(n, m) * m


def decoder_kernel(x_ref,
                   w1, b1, w2, b2, w3, b3, w4, b4, w5, b5, w6, b6,
                   o_ref):
    """One batch tile through the whole 6-layer Linear+ReLU stack.

    Weights are bf16 and VMEM-resident across grid steps (constant index_map).
    Activations are carried between layers in bf16 (cast once per layer after
    the ReLU); MXU accumulation is f32; the final store is f32.
    """
    h = x_ref[...].astype(jnp.bfloat16)
    layers = ((w1, b1), (w2, b2), (w3, b3), (w4, b4), (w5, b5), (w6, b6))
    for li, (w_r, b_r) in enumerate(layers):
        y = jnp.dot(h, w_r[...], preferred_element_type=jnp.float32) + b_r[...]
        y = jnp.maximum(y, 0.0)
        h = y if li == N_LAYERS - 1 else y.astype(jnp.bfloat16)
    o_ref[...] = h.astype(o_ref.dtype)


def init_params(key, dims=DIMS):
    """PyTorch-style Linear init: U(-1/sqrt(fan_in), 1/sqrt(fan_in)).

    Weights stored transposed relative to PyTorch: (in, out), so y = x @ W + b.
    """
    params = []
    for i in range(len(dims) - 1):
        fan_in, fan_out = dims[i], dims[i + 1]
        key, kw, kb = jax.random.split(key, 3)
        bound = 1.0 / jnp.sqrt(jnp.float32(fan_in))
        w = jax.random.uniform(kw, (fan_in, fan_out), jnp.float32, -bound, bound)
        b = jax.random.uniform(kb, (1, fan_out), jnp.float32, -bound, bound)
        params.append((w, b))
    return params


def pad_params_for_kernel(params):
    """Zero-pad to lane-aligned PADDED_DIMS and cast weights to bf16.

    Padding is exact: padded input rows multiply zero-padded input columns,
    and padded output columns have zero weight & bias, so their post-ReLU
    activation is 0, which multiplies zero-padded rows of the next weight.
    Padded output lanes of the last layer are sliced off in the wrapper.
    """
    padded = []
    for li, (w, b) in enumerate(params):
        p_in, p_out = PADDED_DIMS[li], PADDED_DIMS[li + 1]
        d_in, d_out = w.shape
        w_p = jnp.zeros((p_in, p_out), jnp.float32).at[:d_in, :d_out].set(w)
        b_p = jnp.zeros((1, p_out), jnp.float32).at[:, :d_out].set(b)
        padded.append((w_p.astype(jnp.bfloat16), b_p))
    return padded


def _choose_tiling(batch, max_tile):
    """Pick (rows_per_step, n_steps).

    * tiles are a multiple of 16 rows (bf16 packs two rows per sublane);
    * >=2 grid steps whenever the batch is splittable, so ("parallel",) can
      shard across both TensorCores on v7x;
    * n_steps is chosen first and the tile derived from it, so batch padding
      is at most one 16-row group per step (never a full tile).
    """
    b16 = _round_up(max(batch, 1), 16)
    if b16 <= 32:                      # tiny batch: one step
        return b16, 1
    n_steps = max(2, _cdiv(b16, max_tile))
    tb = _round_up(_cdiv(b16, n_steps), 16)
    n_steps = _cdiv(b16, tb)
    return tb, n_steps


def _vmem_limit_bytes(tb, padded_flat_params):
    """Actual-usage VMEM budget (weights double-buffered conservatively)."""
    w_bytes = sum(int(p.size) * p.dtype.itemsize for p in padded_flat_params)
    io_bytes = 2 * tb * (LATENT_PAD + OUT_PAD) * 4        # double-buffered act tiles
    live_bytes = tb * max(PADDED_DIMS) * (4 + 2)          # f32 acc + bf16 act, widest layer
    return int(1.5 * (2 * w_bytes + io_bytes + live_bytes)) + (8 << 20)


@functools.partial(jax.jit, static_argnames=("max_tile",))
def decoder_forward(x, padded_flat_params, *, max_tile=512):
    """x: (B, LATENT_DIM) f32 -> (B, 1, 28, 28) f32 (NCHW)."""
    batch = x.shape[0]
    tb, n_steps = _choose_tiling(batch, max_tile)
    b_pad = tb * n_steps
    x_p = jnp.pad(x.astype(jnp.float32),
                  ((0, b_pad - batch), (0, LATENT_PAD - LATENT_DIM)))

    # Activation tile walks the batch; weights/biases use a constant block
    # index so they are fetched once and stay resident in VMEM.
    in_specs = [pl.BlockSpec((tb, LATENT_PAD), lambda i: (i, 0))]
    for li in range(N_LAYERS):
        w = padded_flat_params[2 * li]
        b = padded_flat_params[2 * li + 1]
        in_specs.append(pl.BlockSpec(w.shape, lambda i: (0, 0)))
        in_specs.append(pl.BlockSpec(b.shape, lambda i: (0, 0)))

    flops = 2 * b_pad * sum(PADDED_DIMS[i] * PADDED_DIMS[i + 1]
                            for i in range(N_LAYERS))
    bytes_accessed = (sum(int(p.size) * p.dtype.itemsize for p in padded_flat_params)
                      + b_pad * (LATENT_PAD + OUT_PAD) * 4)

    out = pl.pallas_call(
        decoder_kernel,
        out_shape=jax.ShapeDtypeStruct((b_pad, OUT_PAD), jnp.float32),
        grid=(n_steps,),
        in_specs=in_specs,
        out_specs=pl.BlockSpec((tb, OUT_PAD), lambda i: (i, 0)),
        compiler_params=pltpu.CompilerParams(
            dimension_semantics=("parallel",),            # megacore on v7x
            vmem_limit_bytes=_vmem_limit_bytes(tb, padded_flat_params),
        ),
        cost_estimate=pl.CostEstimate(
            flops=flops, transcendentals=0, bytes_accessed=bytes_accessed),
    )(x_p, *padded_flat_params)

    return out[:batch, :OUT_DIM].reshape(-1, 1, 28, 28)


def decoder_reference(x, params):
    """Pure-JAX reference with the same numerics (bf16 matmul inputs, f32 acc)."""
    h = x.astype(jnp.float32)
    for w, b in params:
        y = jnp.dot(h.astype(jnp.bfloat16), w.astype(jnp.bfloat16),
                    preferred_element_type=jnp.float32) + b
        h = jnp.maximum(y, 0.0)
    return h.reshape(-1, 1, 28, 28)


if __name__ == "__main__":
    key = jax.random.PRNGKey(0)
    key, kx = jax.random.split(key)

    params = init_params(key)
    padded_flat = tuple(t for wb in pad_params_for_kernel(params) for t in wb)

    # Multi-step path: batch=72 -> 48-row tiles x 2 grid steps (both TCs busy
    # on v7x; batch padding is 24 rows, not a full tile).
    batch = 72
    x = jax.random.normal(kx, (batch, LATENT_DIM), jnp.float32)

    y = jax.block_until_ready(decoder_forward(x, padded_flat))
    assert y.shape == (batch, 1, 28, 28), y.shape
    assert y.dtype == jnp.float32, y.dtype

    y_ref = decoder_reference(x, params)
    assert jnp.allclose(y, y_ref, atol=5e-3, rtol=5e-3), "mismatch vs JAX reference"

    # Single-step / tiny-batch path (tile rounded up to 16 rows).
    x_small = x[:8]
    y_small = jax.block_until_ready(decoder_forward(x_small, padded_flat))
    assert y_small.shape == (8, 1, 28, 28)
    assert jnp.allclose(y_small, y_ref[:8], atol=5e-3, rtol=5e-3)

    print("KERNEL_OK")
</pallas_src>

<mosaic_0001>
module attributes {stable_mosaic.version = 11 : i64} {
  func.func @decoder_kernel(%arg0: i32, %arg1: memref<48x128xf32, #tpu.memory_space<vmem>>, %arg2: memref<128x128xbf16, #tpu.memory_space<vmem>>, %arg3: memref<1x128xf32, #tpu.memory_space<vmem>>, %arg4: memref<128x128xbf16, #tpu.memory_space<vmem>>, %arg5: memref<1x128xf32, #tpu.memory_space<vmem>>, %arg6: memref<128x512xbf16, #tpu.memory_space<vmem>>, %arg7: memref<1x512xf32, #tpu.memory_space<vmem>>, %arg8: memref<512x512xbf16, #tpu.memory_space<vmem>>, %arg9: memref<1x512xf32, #tpu.memory_space<vmem>>, %arg10: memref<512x1024xbf16, #tpu.memory_space<vmem>>, %arg11: memref<1x1024xf32, #tpu.memory_space<vmem>>, %arg12: memref<1024x896xbf16, #tpu.memory_space<vmem>>, %arg13: memref<1x896xf32, #tpu.memory_space<vmem>>, %arg14: memref<48x896xf32, #tpu.memory_space<vmem>>) attributes {dimension_semantics = [#tpu.dimension_semantics<parallel>], iteration_bounds = array<i64: 2>, scalar_prefetch = 0 : i64, scratch_operands = 0 : i64, tpu.core_type = #tpu.core_type<tc>, window_params = [{transform_indices = @transform_0, window_bounds = array<i64: 48, 128>}, {pipeline_mode = #tpu.pipeline_mode<synchronous>, transform_indices = @transform_1, window_bounds = array<i64: 128, 128>}, {pipeline_mode = #tpu.pipeline_mode<synchronous>, transform_indices = @transform_2, window_bounds = array<i64: 1, 128>}, {pipeline_mode = #tpu.pipeline_mode<synchronous>, transform_indices = @transform_3, window_bounds = array<i64: 128, 128>}, {pipeline_mode = #tpu.pipeline_mode<synchronous>, transform_indices = @transform_4, window_bounds = array<i64: 1, 128>}, {pipeline_mode = #tpu.pipeline_mode<synchronous>, transform_indices = @transform_5, window_bounds = array<i64: 128, 512>}, {pipeline_mode = #tpu.pipeline_mode<synchronous>, transform_indices = @transform_6, window_bounds = array<i64: 1, 512>}, {pipeline_mode = #tpu.pipeline_mode<synchronous>, transform_indices = @transform_7, window_bounds = array<i64: 512, 512>}, {pipeline_mode = #tpu.pipeline_mode<synchronous>, transform_indices = @transform_8, window_bounds = array<i64: 1, 512>}, {pipeline_mode = #tpu.pipeline_mode<synchronous>, transform_indices = @transform_9, window_bounds = array<i64: 512, 1024>}, {pipeline_mode = #tpu.pipeline_mode<synchronous>, transform_indices = @transform_10, window_bounds = array<i64: 1, 1024>}, {pipeline_mode = #tpu.pipeline_mode<synchronous>, transform_indices = @transform_11, window_bounds = array<i64: 1024, 896>}, {pipeline_mode = #tpu.pipeline_mode<synchronous>, transform_indices = @transform_12, window_bounds = array<i64: 1, 896>}, {transform_indices = @transform_13, window_bounds = array<i64: 48, 896>}]} {
    %c0 = arith.constant 0 : index
    %c0_0 = arith.constant 0 : index
    %0 = vector.load %arg1[%c0, %c0_0] : memref<48x128xf32, #tpu.memory_space<vmem>>, vector<48x128xf32>
    %1 = arith.truncf %0 : vector<48x128xf32> to vector<48x128xbf16>
    %c0_1 = arith.constant 0 : index
    %c0_2 = arith.constant 0 : index
    %2 = vector.load %arg2[%c0_1, %c0_2] : memref<128x128xbf16, #tpu.memory_space<vmem>>, vector<128x128xbf16>
    %cst = arith.constant dense<0.000000e+00> : vector<48x128xf32>
    %3 = tpu.matmul %1, %2, %cst {dimension_numbers = #tpu.dot_dimension_numbers<[1], [0], [0], [1], [0, 0, 1, 1], [], []>} : vector<48x128xbf16>, vector<128x128xbf16>, vector<48x128xf32> -> vector<48x128xf32>
    %c0_3 = arith.constant 0 : index
    %c0_4 = arith.constant 0 : index
    %4 = vector.load %arg3[%c0_3, %c0_4] : memref<1x128xf32, #tpu.memory_space<vmem>>, vector<1x128xf32>
    %5 = vector.broadcast %4 : vector<1x128xf32> to vector<48x128xf32>
    %6 = arith.addf %3, %5 : vector<48x128xf32>
    %cst_5 = arith.constant 0.000000e+00 : f32
    %7 = vector.broadcast %cst_5 : f32 to vector<48x128xf32>
    %8 = arith.maximumf %6, %7 : vector<48x128xf32>
    %9 = arith.truncf %8 : vector<48x128xf32> to vector<48x128xbf16>
    %c0_6 = arith.constant 0 : index
    %c0_7 = arith.constant 0 : index
    %10 = vector.load %arg4[%c0_6, %c0_7] : memref<128x128xbf16, #tpu.memory_space<vmem>>, vector<128x128xbf16>
    %cst_8 = arith.constant dense<0.000000e+00> : vector<48x128xf32>
    %11 = tpu.matmul %9, %10, %cst_8 {dimension_numbers = #tpu.dot_dimension_numbers<[1], [0], [0], [1], [0, 0, 1, 1], [], []>} : vector<48x128xbf16>, vector<128x128xbf16>, vector<48x128xf32> -> vector<48x128xf32>
    %c0_9 = arith.constant 0 : index
    %c0_10 = arith.constant 0 : index
    %12 = vector.load %arg5[%c0_9, %c0_10] : memref<1x128xf32, #tpu.memory_space<vmem>>, vector<1x128xf32>
    %13 = vector.broadcast %12 : vector<1x128xf32> to vector<48x128xf32>
    %14 = arith.addf %11, %13 : vector<48x128xf32>
    %cst_11 = arith.constant 0.000000e+00 : f32
    %15 = vector.broadcast %cst_11 : f32 to vector<48x128xf32>
    %16 = arith.maximumf %14, %15 : vector<48x128xf32>
    %17 = arith.truncf %16 : vector<48x128xf32> to vector<48x128xbf16>
    %c0_12 = arith.constant 0 : index
    %c0_13 = arith.constant 0 : index
    %18 = vector.load %arg6[%c0_12, %c0_13] : memref<128x512xbf16, #tpu.memory_space<vmem>>, vector<128x512xbf16>
    %cst_14 = arith.constant dense<0.000000e+00> : vector<48x512xf32>
    %19 = tpu.matmul %17, %18, %cst_14 {dimension_numbers = #tpu.dot_dimension_numbers<[1], [0], [0], [1], [0, 0, 1, 1], [], []>} : vector<48x128xbf16>, vector<128x512xbf16>, vector<48x512xf32> -> vector<48x512xf32>
    %c0_15 = arith.constant 0 : index
    %c0_16 = arith.constant 0 : index
    %20 = vector.load %arg7[%c0_15, %c0_16] : memref<1x512xf32, #tpu.memory_space<vmem>>, vector<1x512xf32>
    %21 = vector.broadcast %20 : vector<1x512xf32> to vector<48x512xf32>
    %22 = arith.addf %19, %21 : vector<48x512xf32>
    %cst_17 = arith.constant 0.000000e+00 : f32
    %23 = vector.broadcast %cst_17 : f32 to vector<48x512xf32>
    %24 = arith.maximumf %22, %23 : vector<48x512xf32>
    %25 = arith.truncf %24 : vector<48x512xf32> to vector<48x512xbf16>
    %c0_18 = arith.constant 0 : index
    %c0_19 = arith.constant 0 : index
    %26 = vector.load %arg8[%c0_18, %c0_19] : memref<512x512xbf16, #tpu.memory_space<vmem>>, vector<512x512xbf16>
    %cst_20 = arith.constant dense<0.000000e+00> : vector<48x512xf32>
    %27 = tpu.matmul %25, %26, %cst_20 {dimension_numbers = #tpu.dot_dimension_numbers<[1], [0], [0], [1], [0, 0, 1, 1], [], []>} : vector<48x512xbf16>, vector<512x512xbf16>, vector<48x512xf32> -> vector<48x512xf32>
    %c0_21 = arith.constant 0 : index
    %c0_22 = arith.constant 0 : index
    %28 = vector.load %arg9[%c0_21, %c0_22] : memref<1x512xf32, #tpu.memory_space<vmem>>, vector<1x512xf32>
    %29 = vector.broadcast %28 : vector<1x512xf32> to vector<48x512xf32>
    %30 = arith.addf %27, %29 : vector<48x512xf32>
    %cst_23 = arith.constant 0.000000e+00 : f32
    %31 = vector.broadcast %cst_23 : f32 to vector<48x512xf32>
    %32 = arith.maximumf %30, %31 : vector<48x512xf32>
    %33 = arith.truncf %32 : vector<48x512xf32> to vector<48x512xbf16>
    %c0_24 = arith.constant 0 : index
    %c0_25 = arith.constant 0 : index
    %34 = vector.load %arg10[%c0_24, %c0_25] : memref<512x1024xbf16, #tpu.memory_space<vmem>>, vector<512x1024xbf16>
    %cst_26 = arith.constant dense<0.000000e+00> : vector<48x1024xf32>
    %35 = tpu.matmul %33, %34, %cst_26 {dimension_numbers = #tpu.dot_dimension_numbers<[1], [0], [0], [1], [0, 0, 1, 1], [], []>} : vector<48x512xbf16>, vector<512x1024xbf16>, vector<48x1024xf32> -> vector<48x1024xf32>
    %c0_27 = arith.constant 0 : index
    %c0_28 = arith.constant 0 : index
    %36 = vector.load %arg11[%c0_27, %c0_28] : memref<1x1024xf32, #tpu.memory_space<vmem>>, vector<1x1024xf32>
    %37 = vector.broadcast %36 : vector<1x1024xf32> to vector<48x1024xf32>
    %38 = arith.addf %35, %37 : vector<48x1024xf32>
    %cst_29 = arith.constant 0.000000e+00 : f32
    %39 = vector.broadcast %cst_29 : f32 to vector<48x1024xf32>
    %40 = arith.maximumf %38, %39 : vector<48x1024xf32>
    %41 = arith.truncf %40 : vector<48x1024xf32> to vector<48x1024xbf16>
    %c0_30 = arith.constant 0 : index
    %c0_31 = arith.constant 0 : index
    %42 = vector.load %arg12[%c0_30, %c0_31] : memref<1024x896xbf16, #tpu.memory_space<vmem>>, vector<1024x896xbf16>
    %cst_32 = arith.constant dense<0.000000e+00> : vector<48x896xf32>
    %43 = tpu.matmul %41, %42, %cst_32 {dimension_numbers = #tpu.dot_dimension_numbers<[1], [0], [0], [1], [0, 0, 1, 1], [], []>} : vector<48x1024xbf16>, vector<1024x896xbf16>, vector<48x896xf32> -> vector<48x896xf32>
    %c0_33 = arith.constant 0 : index
    %c0_34 = arith.constant 0 : index
    %44 = vector.load %arg13[%c0_33, %c0_34] : memref<1x896xf32, #tpu.memory_space<vmem>>, vector<1x896xf32>
    %45 = vector.broadcast %44 : vector<1x896xf32> to vector<48x896xf32>
    %46 = arith.addf %43, %45 : vector<48x896xf32>
    %cst_35 = arith.constant 0.000000e+00 : f32
    %47 = vector.broadcast %cst_35 : f32 to vector<48x896xf32>
    %48 = arith.maximumf %46, %47 : vector<48x896xf32>
    %c0_36 = arith.constant 0 : index
    %c0_37 = arith.constant 0 : index
    %49 = vector.load %arg14[%c0_36, %c0_37] : memref<48x896xf32, #tpu.memory_space<vmem>>, vector<48x896xf32>
    tpu.vector_store %arg14[%c0_36, %c0_37], %48 {strides = array<i32>} : memref<48x896xf32, #tpu.memory_space<vmem>>, vector<48x896xf32>,
    return
  }
  func.func @transform_0(%arg0: i32) -> (i32, i32) {
    %c0_i32 = arith.constant 0 : i32
    %c0_i32_0 = arith.constant 0 : i32
    return %arg0, %c0_i32 : i32, i32
  }
  func.func @transform_1(%arg0: i32) -> (i32, i32) {
    %c0_i32 = arith.constant 0 : i32
    %c0_i32_0 = arith.constant 0 : i32
    %c0_i32_1 = arith.constant 0 : i32
    return %c0_i32, %c0_i32_0 : i32, i32
  }
  func.func @transform_2(%arg0: i32) -> (i32, i32) {
    %c0_i32 = arith.constant 0 : i32
    %c0_i32_0 = arith.constant 0 : i32
    %c0_i32_1 = arith.constant 0 : i32
    return %c0_i32, %c0_i32_0 : i32, i32
  }
  func.func @transform_3(%arg0: i32) -> (i32, i32) {
    %c0_i32 = arith.constant 0 : i32
    %c0_i32_0 = arith.constant 0 : i32
    %c0_i32_1 = arith.constant 0 : i32
    return %c0_i32, %c0_i32_0 : i32, i32
  }
  func.func @transform_4(%arg0: i32) -> (i32, i32) {
    %c0_i32 = arith.constant 0 : i32
    %c0_i32_0 = arith.constant 0 : i32
    %c0_i32_1 = arith.constant 0 : i32
    return %c0_i32, %c0_i32_0 : i32, i32
  }
  func.func @transform_5(%arg0: i32) -> (i32, i32) {
    %c0_i32 = arith.constant 0 : i32
    %c0_i32_0 = arith.constant 0 : i32
    %c0_i32_1 = arith.constant 0 : i32
    return %c0_i32, %c0_i32_0 : i32, i32
  }
  func.func @transform_6(%arg0: i32) -> (i32, i32) {
    %c0_i32 = arith.constant 0 : i32
    %c0_i32_0 = arith.constant 0 : i32
    %c0_i32_1 = arith.constant 0 : i32
    return %c0_i32, %c0_i32_0 : i32, i32
  }
  func.func @transform_7(%arg0: i32) -> (i32, i32) {
    %c0_i32 = arith.constant 0 : i32
    %c0_i32_0 = arith.constant 0 : i32
    %c0_i32_1 = arith.constant 0 : i32
    return %c0_i32, %c0_i32_0 : i32, i32
  }
  func.func @transform_8(%arg0: i32) -> (i32, i32) {
    %c0_i32 = arith.constant 0 : i32
    %c0_i32_0 = arith.constant 0 : i32
    %c0_i32_1 = arith.constant 0 : i32
    return %c0_i32, %c0_i32_0 : i32, i32
  }
  func.func @transform_9(%arg0: i32) -> (i32, i32) {
    %c0_i32 = arith.constant 0 : i32
    %c0_i32_0 = arith.constant 0 : i32
    %c0_i32_1 = arith.constant 0 : i32
    return %c0_i32, %c0_i32_0 : i32, i32
  }
  func.func @transform_10(%arg0: i32) -> (i32, i32) {
    %c0_i32 = arith.constant 0 : i32
    %c0_i32_0 = arith.constant 0 : i32
    %c0_i32_1 = arith.constant 0 : i32
    return %c0_i32, %c0_i32_0 : i32, i32
  }
  func.func @transform_11(%arg0: i32) -> (i32, i32) {
    %c0_i32 = arith.constant 0 : i32
    %c0_i32_0 = arith.constant 0 : i32
    %c0_i32_1 = arith.constant 0 : i32
    return %c0_i32, %c0_i32_0 : i32, i32
  }
  func.func @transform_12(%arg0: i32) -> (i32, i32) {
    %c0_i32 = arith.constant 0 : i32
    %c0_i32_0 = arith.constant 0 : i32
    %c0_i32_1 = arith.constant 0 : i32
    return %c0_i32, %c0_i32_0 : i32, i32
  }
  func.func @transform_13(%arg0: i32) -> (i32, i32) {
    %c0_i32 = arith.constant 0 : i32
    %c0_i32_0 = arith.constant 0 : i32
    return %arg0, %c0_i32 : i32, i32
  }
}

</mosaic_0001>

<bundles_post_ra>
// kernel: decoder_forward.1
= control target key start
LH: loop header
LB: loop body
LE: loop exit
PB: predicated region body
PF: predicated region fallthrough
CT: control target
= control target key end

     0   :  { %s12463_s0 = inlined_call_operand.vmem [shape: f32[96,128], index: 0, kind: input, shape index: {}]   ;;  %s12464_s1 = inlined_call_operand.hbm [shape: bf16[128,128], index: 1, kind: input, shape index: {}]   ;;  %s12465_s2 = inlined_call_operand.hbm [shape: f32[1,128], index: 2, kind: input, shape index: {}]   ;;  %s12466_s3 = inlined_call_operand.hbm [shape: bf16[128,128], index: 3, kind: input, shape index: {}]   ;;  %s12467_s4 = inlined_call_operand.hbm [shape: f32[1,128], index: 4, kind: input, shape index: {}]   ;;  %s12468_s5 = inlined_call_operand.hbm [shape: bf16[128,512], index: 5, kind: input, shape index: {}]   ;;  %s12469_s6 = inlined_call_operand.hbm [shape: f32[1,512], index: 6, kind: input, shape index: {}]   ;;  %s12470_s7 = inlined_call_operand.hbm [shape: bf16[512,512], index: 7, kind: input, shape index: {}]   ;;  %s12471_s8 = inlined_call_operand.hbm [shape: f32[1,512], index: 8, kind: input, shape index: {}]   ;;  %s12472_s9 = inlined_call_operand.hbm [shape: bf16[512,1024], index: 9, kind: input, shape index: {}]   ;;  %s12473_s10 = inlined_call_operand.hbm [shape: f32[1,1024], index: 10, kind: input, shape index: {}]   ;;  %s12474_s11 = inlined_call_operand.hbm [shape: bf16[1024,896], index: 11, kind: input, shape index: {}]   ;;  %s12475_s12 = inlined_call_operand.hbm [shape: f32[1,896], index: 12, kind: input, shape index: {}]   ;;  %s12476_s13 = inlined_call_operand.vmem [shape: f32[96,896], index: 13, kind: output, shape index: {}]  }
   0x1   :  { %12481 = sst [smem:[#allocation28_spill]] %s12465_s2 }
   0x2   :  { %12482 = sst [smem:[#allocation29_spill]] %s12467_s4 }
   0x3   :  { %12483 = sst [smem:[#allocation30_spill]] %s12469_s6 }
   0x4   :  { %12484 = sst [smem:[#allocation31_spill]] %s12476_s13 }
   0x5   :  { %18 = vsyncpa [#allocation3], 0 }
   0x6   :  { %19 = vsyncpa [#allocation5], 0 }
   0x7   :  { %20 = vsyncpa [#allocation8], 0 }
   0x8   :  { %21 = vsyncpa [#allocation11], 0 }
   0x9   :  { %22 = vsyncpa [#allocation14], 0 }
   0xa   :  { %23 = vsyncpa [#allocation17], 0 }
   0xb   :  { %24 = vsyncpa [#allocation20], 0  ;;  %s11516_s25 = smov 0  }
   0xc LB: > { %s11423_s26 = smov [#allocation4]   ;;  %s12477_s28 = sadd.s32 4294967295, %s11421_s25   ;;  %s11421_s25 = sphi %s11516_s25, %s30_s25  }
   0xd   : > { %s365_s27 = sshll.u32 %s11423_s26, 4  ;;  %p8599_p0 = scmp.ge.s32.totalorder %s11421_s25, 1  ;;  %s11530_s27 = int_to_ptr.vmem [resolvable:$true] %s365_s27 }
   0xe   : > { %p339_p1 = scmp.lt.s32.totalorder %s11421_s25, 3  ;;  %p11526_p2 = scmp.eq.s32.totalorder %s12477_s28, 0 }
   0xf   : > { %s11424_s14 = smov [#allocation7]   ;;  %s11425_s16 = smov [#allocation10]  }
  0x10   : > { %s12485_s29 = scalar_select %p11526_p2, 1, 0 }
  0x11   : > { %p11532_p3 = pnand %p8599_p0, %p339_p1  ;;  %s389_s15 = sshll.u32 %s11424_s14, 4  ;;  %s11538_s15 = int_to_ptr.vmem [resolvable:$true] %s389_s15 }
  0x12   : > { %s413_s17 = sshll.u32 %s11425_s16, 4  ;;  %s11426_s19 = smov [#allocation13]   ;;  %s11546_s17 = int_to_ptr.vmem [resolvable:$true] %s413_s17 }
  0x13   : > { %s12486_s30 = scalar_select %p11532_p3, 1, 0 }
  0x14   : > { %p10063_p4 = pneg %p11532_p3  ;;  %s437_s20 = sshll.u32 %s11426_s19, 4  ;;  %s11548_s20 = int_to_ptr.vmem [resolvable:$true] %s437_s20 }
  0x15   : > { %s12488_s2 = sld [smem:[#allocation28_spill]] }
  0x16   : > { %p11542_p5 = pnand %p11526_p2, %p10063_p4 }
  0x18   : > { %p11558_p7 = pneg %p11542_p5 }
  0x1b   : > { %s11051_s23 = scalar_lea.hbm %s12488_s2, 16 }
  0x1c   : > { %p11052_p6 = scmp.ne.s32.totalorder %s12488_s2, %s11051_s23  ;;  %p11058_p10 = scmp.lt.u32.totalorder %s11051_s23, %s12488_s2 }
  0x1e   : > { %p11054_p8 = pnand %p11558_p7, %p11052_p6 }
  0x20   : > { %p11055_p9 = pneg %p11054_p8 }
  0x22   : > { %p11060_p11 = pnand %p11058_p10, %p11055_p9 }
  0x24   : > { %11063 = shalt.err (!%p11060_p11)
}
  0x25   : > { %s11064_s21 = scalar_lea.vmem %s11530_s27, 16  ;;  %s11071_s22 = scalar_lea.vmem %s11530_s27, 32 }
  0x26   : > { %p11065_p12 = scmp.ne.s32.totalorder %s11530_s27, %s11064_s21  ;;  %p11072_p1 = scmp.lt.s32.totalorder %s11530_s27, %s11530_s27 }
  0x27   : > { %p11073_p4 = scmp.lt.s32.totalorder %s11071_s22, %s11064_s21 }
  0x28   : > { %p11067_p13 = pnand %p11065_p12, %p11558_p7 }
  0x29   : > { %p11074_p6 = por %p11073_p4, %p11072_p1 }
  0x2a   : > { %p11068_p0 = pneg %p11067_p13 }
  0x2c   : > { %p11075_p8 = pnand %p11074_p6, %p11068_p0 }
  0x2e   : > { %11078 = shalt.err (!%p11075_p8)
}
  0x2f   : > { %10069 = dma.hbm_to_vmem [thread:$0]  (!%p11542_p5), %s12488_s2, 16, %s11530_s27, [#allocation5]  }
  0x30   : > { %s12490_s4 = sld [smem:[#allocation29_spill]] }
  0x36   : > { %s11079_s19 = scalar_lea.hbm %s12490_s4, 16 }
  0x37   : > { %p11080_p9 = scmp.ne.s32.totalorder %s12490_s4, %s11079_s19  ;;  %p11086_p12 = scmp.lt.u32.totalorder %s11079_s19, %s12490_s4 }
  0x39   : > { %p11082_p10 = pnand %p11080_p9, %p11558_p7 }
  0x3b   : > { %p11083_p11 = pneg %p11082_p10 }
  0x3d   : > { %p11088_p13 = pnand %p11086_p12, %p11083_p11 }
  0x3f   : > { %11091 = shalt.err (!%p11088_p13)
}
  0x40   : > { %s11092_s27 = scalar_lea.vmem %s11538_s15, 16  ;;  %s11099_s13 = scalar_lea.vmem %s11538_s15, 32 }
  0x41   : > { %p11093_p0 = scmp.ne.s32.totalorder %s11538_s15, %s11092_s27  ;;  %p11100_p6 = scmp.lt.s32.totalorder %s11538_s15, %s11538_s15 }
  0x42   : > { %p11101_p8 = scmp.lt.s32.totalorder %s11099_s13, %s11092_s27 }
  0x43   : > { %p11095_p1 = pnand %p11093_p0, %p11558_p7 }
  0x44   : > { %p11102_p9 = por %p11101_p8, %p11100_p6 }
  0x45   : > { %p11096_p4 = pneg %p11095_p1 }
  0x47   : > { %p11103_p10 = pnand %p11102_p9, %p11096_p4 }
  0x49   : > { %11106 = shalt.err (!%p11103_p10)
}
  0x4a   : > { %10075 = dma.hbm_to_vmem [thread:$0]  (!%p11542_p5), %s12490_s4, 16, %s11538_s15, [#allocation8]  }
  0x4b   : > { %s12491_s6 = sld [smem:[#allocation30_spill]] }
  0x51   : > { %s11107_s16 = scalar_lea.hbm %s12491_s6, 64 }
  0x52   : > { %p11108_p11 = scmp.ne.s32.totalorder %s12491_s6, %s11107_s16  ;;  %p11114_p0 = scmp.lt.u32.totalorder %s11107_s16, %s12491_s6 }
  0x54   : > { %p11110_p12 = pnand %p11108_p11, %p11558_p7 }
  0x56   : > { %p11111_p13 = pneg %p11110_p12 }
  0x58   : > { %p11116_p1 = pnand %p11114_p0, %p11111_p13 }
  0x5a   : > { %11119 = shalt.err (!%p11116_p1)
}
  0x5b   : > { %s11120_s15 = scalar_lea.vmem %s11546_s17, 64  ;;  %p11128_p9 = scmp.lt.s32.totalorder %s11546_s17, %s11546_s17 }
  0x5c   : > { %p11121_p4 = scmp.ne.s32.totalorder %s11546_s17, %s11120_s15  ;;  %p11129_p10 = scmp.lt.s32.totalorder %s11120_s15, %s11120_s15 }
  0x5e   : > { %p11123_p6 = pnand %p11121_p4, %p11558_p7  ;;  %p11130_p11 = por %p11129_p10, %p11128_p9 }
  0x60   : > { %p11124_p8 = pneg %p11123_p6 }
  0x62   : > { %p11131_p12 = pnand %p11130_p11, %p11124_p8 }
  0x64   : > { %11134 = shalt.err (!%p11131_p12)
}
  0x65   : > { %10081 = dma.hbm_to_vmem [thread:$0]  (!%p11542_p5), %s12491_s6, 64, %s11546_s17, [#allocation11]  }
  0x66   : > { %s11135_s26 = scalar_lea.hbm %s12471_s8, 64 }
  0x67   : > { %p11136_p13 = scmp.ne.s32.totalorder %s12471_s8, %s11135_s26  ;;  %p11142_p4 = scmp.lt.u32.totalorder %s11135_s26, %s12471_s8 }
  0x69   : > { %p11138_p0 = pnand %p11136_p13, %p11558_p7 }
  0x6b   : > { %p11139_p1 = pneg %p11138_p0 }
  0x6d   : > { %p11144_p6 = pnand %p11142_p4, %p11139_p1 }
  0x6f   : > { %11147 = shalt.err (!%p11144_p6)
}
  0x70   : > { %s11148_s17 = scalar_lea.vmem %s11548_s20, 64  ;;  %p11156_p11 = scmp.lt.s32.totalorder %s11548_s20, %s11548_s20 }
  0x71   : > { %p11149_p8 = scmp.ne.s32.totalorder %s11548_s20, %s11148_s17  ;;  %p11157_p12 = scmp.lt.s32.totalorder %s11148_s17, %s11148_s17 }
  0x73   : > { %p11151_p9 = pnand %p11149_p8, %p11558_p7  ;;  %p11158_p13 = por %p11157_p12, %p11156_p11 }
  0x75   : > { %p11152_p10 = pneg %p11151_p9 }
  0x77   : > { %p11159_p0 = pnand %p11158_p13, %p11152_p10 }
  0x79   : > { %11162 = shalt.err (!%p11159_p0)
}
  0x7a   : > { %10087 = dma.hbm_to_vmem [thread:$0]  (!%p11542_p5), %s12471_s8, 64, %s11548_s20, [#allocation14]  }
  0x7b   : > { %s11427_s13 = smov [#allocation16]   ;;  %s11428_s23 = smov [#allocation2]  }
  0x7c   : > { %s461_s28 = sshll.u32 %s11427_s13, 4  ;;  %s351_s24 = sshll.u32 %s11428_s23, 4  ;;  %s462_s28 = int_to_ptr.vmem [resolvable:$true] %s461_s28  ;;  %s352_s24 = int_to_ptr.vmem [resolvable:$true] %s351_s24 }
  0x7d   : > { %s11163_s19 = scalar_lea.hbm %s12473_s10, 128 }
  0x7e   : > { %p11164_p1 = scmp.ne.s32.totalorder %s12473_s10, %s11163_s19  ;;  %p11170_p8 = scmp.lt.u32.totalorder %s11163_s19, %s12473_s10 }
  0x80   : > { %p11166_p4 = pnand %p11164_p1, %p11558_p7 }
  0x82   : > { %p11167_p6 = pneg %p11166_p4 }
  0x84   : > { %p11172_p9 = pnand %p11170_p8, %p11167_p6 }
  0x86   : > { %11175 = shalt.err (!%p11172_p9)
}
  0x87   : > { %s11176_s20 = scalar_lea.vmem %s462_s28, 128  ;;  %p11184_p13 = scmp.lt.s32.totalorder %s462_s28, %s462_s28 }
  0x88   : > { %p11177_p10 = scmp.ne.s32.totalorder %s462_s28, %s11176_s20  ;;  %p11185_p0 = scmp.lt.s32.totalorder %s11176_s20, %s11176_s20 }
  0x8a   : > { %p11179_p11 = pnand %p11177_p10, %p11558_p7  ;;  %p11186_p2 = por %p11185_p0, %p11184_p13 }
  0x8c   : > { %p11180_p12 = pneg %p11179_p11 }
  0x8e   : > { %p11187_p3 = pnand %p11186_p2, %p11180_p12 }
  0x90   : > { %11190 = shalt.err (!%p11187_p3)
}
  0x91   : > { %10093 = dma.hbm_to_vmem [thread:$0]  (!%p11542_p5), %s12473_s10, 128, %s462_s28, [#allocation17]  }
  0x92   : > { %s11191_s16 = scalar_lea.hbm %s12464_s1, 1024 }
  0x93   : > { %p11192_p1 = scmp.ne.s32.totalorder %s12464_s1, %s11191_s16  ;;  %p11198_p3 = scmp.lt.u32.totalorder %s11191_s16, %s12464_s1 }
  0x95   : > { %p11194_p4 = pnand %p11192_p1, %p11558_p7 }
  0x97   : > { %p11195_p2 = pneg %p11194_p4 }
  0x99   : > { %p11200_p6 = pnand %p11198_p3, %p11195_p2 }
  0x9b   : > { %11203 = shalt.err (!%p11200_p6)
}
  0x9c   : > { %s11204_s27 = scalar_lea.vmem %s352_s24, 1024  ;;  %p11212_p11 = scmp.lt.s32.totalorder %s352_s24, %s352_s24 }
  0x9d   : > { %p11205_p8 = scmp.ne.s32.totalorder %s352_s24, %s11204_s27  ;;  %p11213_p12 = scmp.lt.s32.totalorder %s11204_s27, %s11204_s27 }
  0x9f   : > { %p11207_p9 = pnand %p11205_p8, %p11558_p7  ;;  %p11214_p13 = por %p11213_p12, %p11212_p11 }
  0xa1   : > { %p11208_p10 = pneg %p11207_p9 }
  0xa3   : > { %p11215_p0 = pnand %p11214_p13, %p11208_p10 }
  0xa5   : > { %11218 = shalt.err (!%p11215_p0)
}
  0xa6   : > { %s11429_s28 = smov 64   ;;  %s11430_s20 = smov 4  }
  0xa7   : > { %10066 = dma.hbm_to_vmem [thread:$0]  (!%p11542_p5), %s12464_s1, 1024, %s352_s24, [#allocation3], %s11429_s28, %s11429_s28, %s11430_s20  }
  0xa8   : > { %s11431_s23 = smov [#allocation6]   ;;  %s11432_s16 = smov [#allocation9]  }
  0xa9   : > { %s375_s26 = sshll.u32 %s11431_s23, 4  ;;  %s399_s19 = sshll.u32 %s11432_s16, 4  ;;  %s376_s26 = int_to_ptr.vmem [resolvable:$true] %s375_s26  ;;  %s400_s19 = int_to_ptr.vmem [resolvable:$true] %s399_s19 }
  0xaa   : > { %s11219_s17 = scalar_lea.hbm %s12466_s3, 1024 }
  0xab   : > { %p11220_p1 = scmp.ne.s32.totalorder %s12466_s3, %s11219_s17  ;;  %p11226_p3 = scmp.lt.u32.totalorder %s11219_s17, %s12466_s3 }
  0xad   : > { %p11222_p4 = pnand %p11220_p1, %p11558_p7 }
  0xaf   : > { %p11223_p2 = pneg %p11222_p4 }
  0xb1   : > { %p11228_p6 = pnand %p11226_p3, %p11223_p2 }
  0xb3   : > { %11231 = shalt.err (!%p11228_p6)
}
  0xb4   : > { %s11232_s24 = scalar_lea.vmem %s376_s26, 1024  ;;  %p11240_p11 = scmp.lt.s32.totalorder %s376_s26, %s376_s26 }
  0xb5   : > { %p11233_p8 = scmp.ne.s32.totalorder %s376_s26, %s11232_s24  ;;  %p11241_p12 = scmp.lt.s32.totalorder %s11232_s24, %s11232_s24 }
  0xb7   : > { %p11235_p9 = pnand %p11233_p8, %p11558_p7  ;;  %p11242_p13 = por %p11241_p12, %p11240_p11 }
  0xb9   : > { %p11236_p10 = pneg %p11235_p9 }
  0xbb   : > { %p11243_p0 = pnand %p11242_p13, %p11236_p10 }
  0xbd   : > { %11246 = shalt.err (!%p11243_p0)
}
  0xbe   : > { %10072 = dma.hbm_to_vmem [thread:$0]  (!%p11542_p5), %s12466_s3, 1024, %s376_s26, [#allocation5], %s11429_s28, %s11429_s28, %s11430_s20  }
  0xbf   : > { %s11247_s13 = scalar_lea.hbm %s12468_s5, 4096 }
  0xc0   : > { %p11248_p1 = scmp.ne.s32.totalorder %s12468_s5, %s11247_s13  ;;  %p11254_p3 = scmp.lt.u32.totalorder %s11247_s13, %s12468_s5 }
  0xc2   : > { %p11250_p4 = pnand %p11248_p1, %p11558_p7 }
  0xc4   : > { %p11251_p2 = pneg %p11250_p4 }
  0xc6   : > { %p11256_p6 = pnand %p11254_p3, %p11251_p2 }
  0xc8   : > { %11259 = shalt.err (!%p11256_p6)
}
  0xc9   : > { %s11260_s17 = scalar_lea.vmem %s400_s19, 4096  ;;  %p11268_p11 = scmp.lt.s32.totalorder %s400_s19, %s400_s19 }
  0xca   : > { %p11261_p8 = scmp.ne.s32.totalorder %s400_s19, %s11260_s17  ;;  %p11269_p12 = scmp.lt.s32.totalorder %s11260_s17, %s11260_s17 }
  0xcc   : > { %p11263_p9 = pnand %p11261_p8, %p11558_p7  ;;  %p11270_p13 = por %p11269_p12, %p11268_p11 }
  0xce   : > { %p11264_p10 = pneg %p11263_p9 }
  0xd0   : > { %p11271_p0 = pnand %p11270_p13, %p11264_p10 }
  0xd2   : > { %11274 = shalt.err (!%p11271_p0)
}
  0xd3   : > { %s11433_s28 = smov 256   ;;  %s11434_s20 = smov 16  }
  0xd4   : > { %10078 = dma.hbm_to_vmem [thread:$0]  (!%p11542_p5), %s12468_s5, 4096, %s400_s19, [#allocation8], %s11433_s28, %s11433_s28, %s11434_s20  }
  0xd5   : > { %s11435_s24 = smov [#allocation12]   ;;  %s11436_s15 = smov [#allocation15]  }
  0xd6   : > { %s423_s2 = sshll.u32 %s11435_s24, 4  ;;  %s447_s4 = sshll.u32 %s11436_s15, 4  ;;  %s424_s2 = int_to_ptr.vmem [resolvable:$true] %s423_s2  ;;  %s448_s4 = int_to_ptr.vmem [resolvable:$true] %s447_s4 }
  0xd7   : > { %s11275_s23 = scalar_lea.hbm %s12470_s7, 16384 }
  0xd8   : > { %p11276_p1 = scmp.ne.s32.totalorder %s12470_s7, %s11275_s23  ;;  %p11282_p3 = scmp.lt.u32.totalorder %s11275_s23, %s12470_s7 }
  0xda   : > { %p11278_p4 = pnand %p11276_p1, %p11558_p7 }
  0xdc   : > { %p11279_p2 = pneg %p11278_p4 }
  0xde   : > { %p11284_p6 = pnand %p11282_p3, %p11279_p2 }
  0xe0   : > { %11287 = shalt.err (!%p11284_p6)
}
  0xe1   : > { %s11288_s19 = scalar_lea.vmem %s424_s2, 16384  ;;  %p11296_p11 = scmp.lt.s32.totalorder %s424_s2, %s424_s2 }
  0xe2   : > { %p11289_p8 = scmp.ne.s32.totalorder %s424_s2, %s11288_s19  ;;  %p11297_p12 = scmp.lt.s32.totalorder %s11288_s19, %s11288_s19 }
  0xe4   : > { %p11291_p9 = pnand %p11289_p8, %p11558_p7  ;;  %p11298_p13 = por %p11297_p12, %p11296_p11 }
  0xe6   : > { %p11292_p10 = pneg %p11291_p9 }
  0xe8   : > { %p11299_p0 = pnand %p11298_p13, %p11292_p10 }
  0xea   : > { %11302 = shalt.err (!%p11299_p0)
}
  0xeb   : > { %10084 = dma.hbm_to_vmem [thread:$0]  (!%p11542_p5), %s12470_s7, 16384, %s424_s2, [#allocation11], %s11433_s28, %s11433_s28, %s11434_s20  }
  0xec   : > { %s11303_s6 = scalar_lea.hbm %s12472_s9, 32768 }
  0xed   : > { %p11304_p1 = scmp.ne.s32.totalorder %s12472_s9, %s11303_s6  ;;  %p11310_p3 = scmp.lt.u32.totalorder %s11303_s6, %s12472_s9 }
  0xef   : > { %p11306_p4 = pnand %p11304_p1, %p11558_p7 }
  0xf1   : > { %p11307_p2 = pneg %p11306_p4 }
  0xf3   : > { %p11312_p6 = pnand %p11310_p3, %p11307_p2 }
  0xf5   : > { %11315 = shalt.err (!%p11312_p6)
}
  0xf6   : > { %s11316_s22 = scalar_lea.vmem %s448_s4, 32768  ;;  %p11324_p11 = scmp.lt.s32.totalorder %s448_s4, %s448_s4 }
  0xf7   : > { %p11317_p8 = scmp.ne.s32.totalorder %s448_s4, %s11316_s22  ;;  %p11325_p12 = scmp.lt.s32.totalorder %s11316_s22, %s11316_s22 }
  0xf9   : > { %p11319_p9 = pnand %p11317_p8, %p11558_p7  ;;  %p11326_p13 = por %p11325_p12, %p11324_p11 }
  0xfb   : > { %p11320_p10 = pneg %p11319_p9 }
  0xfd   : > { %p11327_p0 = pnand %p11326_p13, %p11320_p10 }
  0xff   : > { %11330 = shalt.err (!%p11327_p0)
}
 0x100   : > { %s11437_s28 = smov 512   ;;  %s11438_s20 = smov 32  }
 0x101   : > { %10090 = dma.hbm_to_vmem [thread:$0]  (!%p11542_p5), %s12472_s9, 32768, %s448_s4, [#allocation14], %s11437_s28, %s11437_s28, %s11438_s20  }
 0x102   : > { %s11439_s19 = smov [#allocation18]   ;;  %s11331_s15 = scalar_lea.hbm %s12474_s11, 57344 }
 0x103   : > { %s471_s26 = sshll.u32 %s11439_s19, 4  ;;  %p11332_p1 = scmp.ne.s32.totalorder %s12474_s11, %s11331_s15  ;;  %s472_s26 = int_to_ptr.vmem [resolvable:$true] %s471_s26 }
 0x104   : > { %p11338_p3 = scmp.lt.u32.totalorder %s11331_s15, %s12474_s11 }
 0x105   : > { %p11334_p4 = pnand %p11332_p1, %p11558_p7 }
 0x107   : > { %p11335_p2 = pneg %p11334_p4 }
 0x109   : > { %p11340_p6 = pnand %p11338_p3, %p11335_p2 }
 0x10b   : > { %11343 = shalt.err (!%p11340_p6)
}
 0x10c   : > { %s11344_s4 = scalar_lea.vmem %s472_s26, 57344  ;;  %p11352_p11 = scmp.lt.s32.totalorder %s472_s26, %s472_s26 }
 0x10d   : > { %p11345_p8 = scmp.ne.s32.totalorder %s472_s26, %s11344_s4  ;;  %p11353_p12 = scmp.lt.s32.totalorder %s11344_s4, %s11344_s4 }
 0x10f   : > { %p11347_p9 = pnand %p11345_p8, %p11558_p7  ;;  %p11354_p13 = por %p11353_p12, %p11352_p11 }
 0x111   : > { %p11348_p10 = pneg %p11347_p9 }
 0x113   : > { %p11355_p0 = pnand %p11354_p13, %p11348_p10 }
 0x115   : > { %11358 = shalt.err (!%p11355_p0)
}
 0x116   : > { %s11440_s21 = smov 448   ;;  %s11441_s22 = smov 28  }
 0x117   : > { %10096 = dma.hbm_to_vmem [thread:$0]  (!%p11542_p5), %s12474_s11, 57344, %s472_s26, [#allocation17], %s11440_s21, %s11440_s21, %s11441_s22  }
 0x118   : > { %s11442_s2 = smov [#allocation19]   ;;  %s11359_s24 = scalar_lea.hbm %s12475_s12, 112 }
 0x119   : > { %s485_s17 = sshll.u32 %s11442_s2, 4  ;;  %p11360_p1 = scmp.ne.s32.totalorder %s12475_s12, %s11359_s24  ;;  %s486_s17 = int_to_ptr.vmem [resolvable:$true] %s485_s17 }
 0x11a   : > { %p11366_p3 = scmp.lt.u32.totalorder %s11359_s24, %s12475_s12 }
 0x11b   : > { %p11362_p4 = pnand %p11360_p1, %p11558_p7 }
 0x11d   : > { %p11363_p2 = pneg %p11362_p4 }
 0x11f   : > { %p11368_p6 = pnand %p11366_p3, %p11363_p2 }
 0x121   : > { %11371 = shalt.err (!%p11368_p6)
}
 0x122   : > { %s11372_s26 = scalar_lea.vmem %s486_s17, 112  ;;  %s11379_s16 = scalar_lea.vmem %s486_s17, 128 }
 0x123   : > { %p11373_p8 = scmp.ne.s32.totalorder %s486_s17, %s11372_s26  ;;  %p11380_p11 = scmp.lt.s32.totalorder %s486_s17, %s486_s17 }
 0x124   : > { %p11381_p12 = scmp.lt.s32.totalorder %s11379_s16, %s11372_s26 }
 0x125   : > { %p11375_p9 = pnand %p11373_p8, %p11558_p7 }
 0x126   : > { %p11382_p13 = por %p11381_p12, %p11380_p11 }
 0x127   : > { %p11376_p10 = pneg %p11375_p9 }
 0x129   : > { %p11383_p0 = pnand %p11382_p13, %p11376_p10 }
 0x12b   : > { %11386 = shalt.err (!%p11383_p0)
}
 0x12c   : > { %10099 = dma.hbm_to_vmem [thread:$0]  (!%p11542_p5), %s12475_s12, 112, %s486_s17, [#allocation20]  }
 0x12d   : > { %p12492_p1 = scmp.ne.s32.totalorder %s12486_s30, 0 }
 0x12e   : > { %p12493_p4 = scmp.ne.s32.totalorder (!%p12492_p1), %s12485_s29, 0 }
 0x12f   : > { %507 = sbr.rel (%p12492_p1) target bundleno = 2278 (0x8e6), region = 72 }
 0x136   : > { %11392 = dma.done.wait (%p12493_p4), [#allocation3], 1024  }
 0x137   : > { %11394 = vsyncadd (%p12493_p4), [#allocation3], 4294966272 }
 0x138   : > { %11396 = dma.done.wait (%p12493_p4), [#allocation5], 1040  }
 0x139   : > { %11398 = vsyncadd (%p12493_p4), [#allocation5], 4294966256 }
 0x13a   : > { %11400 = dma.done.wait (%p12493_p4), [#allocation8], 4112  }
 0x13b   : > { %11402 = vsyncadd (%p12493_p4), [#allocation8], 4294963184 }
 0x13c   : > { %11404 = dma.done.wait (%p12493_p4), [#allocation11], 16448  }
 0x13d   : > { %11406 = vsyncadd (%p12493_p4), [#allocation11], 4294950848 }
 0x13e   : > { %11408 = dma.done.wait (%p12493_p4), [#allocation14], 32832  }
 0x13f   : > { %11410 = vsyncadd (%p12493_p4), [#allocation14], 4294934464 }
 0x140   : > { %11412 = dma.done.wait (%p12493_p4), [#allocation17], 57472  }
 0x141   : > { %11414 = vsyncadd (%p12493_p4), [#allocation17], 4294909824 }
 0x142   : > { %11416 = dma.done.wait (%p12493_p4), [#allocation20], 112  }
 0x143   : > { %11418 = vsyncadd (%p12493_p4), [#allocation20], 4294967184  ;;  %v11443_v0 = vmov 0.0   ;;  %vm11444_vm0 = vmmov 0   ;;  %v10155_v1 = vld [vmem:[#allocation2] sm:$0xff]   ;;  %v10156_v2 = vld [vmem:[#allocation2 + $0x8] sm:$0xff]  }
 0x144   : > { %9670 = vmatprep.subr.bf16.mxu0 %v11443_v0  ;;  %9686 = vmatprep.mubr.msk.bf16.mxu0 %vm11444_vm0, %v11443_v0  ;;  %v10157_v3 = vld [vmem:[#allocation2 + $0x10] sm:$0xff]   ;;  %s12494_s29 = sadd.s32 4294967295, %s11421_s25   ;;  %v10158_v4 = vld [vmem:[#allocation2 + $0x18] sm:$0xff]   ;;  %v10163_v5 = vld [vmem:[#allocation6] sm:$0xff]   ;;  %s12495_s19 = sld [smem:[#allocation31_spill]] }
 0x145   : > { %9698 = vmatprep.subr.bf16.mxu1 %v11443_v0  ;;  %9714 = vmatprep.mubr.msk.bf16.mxu1 %vm11444_vm0, %v11443_v0  ;;  %s596_s30 = smul.u32 6, %s12494_s29  ;;  %v10164_v6 = vld [vmem:[#allocation6 + $0x8] sm:$0xff]   ;;  %v10159_v7 = vld [vmem:[#allocation2 + $0x20] sm:$0xff]   ;;  %v10165_v9 = vld [vmem:[#allocation6 + $0x10] sm:$0xff]  }
 0x146   : > { %9671 = vmatpush3.bf16.msra.mxu0 %v10155_v1  ;;  %9699 = vmatpush3.bf16.msra.mxu1 %v10163_v5  ;;  %v10160_v8 = vld [vmem:[#allocation2 + $0x28] sm:$0xff]   ;;  %v10166_v10 = vld [vmem:[#allocation6 + $0x18] sm:$0xff]   ;;  %v10161_v11 = vld [vmem:[#allocation2 + $0x30] sm:$0xff]  }
 0x147   : > { %9672 = vmatprep.subr.bf16.mxu0 %v11443_v0  ;;  %p597_p5 = scmp.lt.s32.totalorder %s596_s30, 11  ;;  %9700 = vmatprep.subr.bf16.mxu1 %v11443_v0  ;;  %v10167_v12 = vld [vmem:[#allocation6 + $0x20] sm:$0xff]   ;;  %v10162_v13 = vld [vmem:[#allocation2 + $0x38] sm:$0xff]   ;;  %v10168_v16 = vld [vmem:[#allocation6 + $0x28] sm:$0xff]  }
 0x148   : > { %v10169_v24 = vld [vmem:[#allocation6 + $0x30] sm:$0xff]   ;;  %v10170_v25 = vld [vmem:[#allocation6 + $0x38] sm:$0xff]  }
 0x149   : > { %s12497_s30 = smov (!%p597_p5, %s596_s30), 11  ;;  %v10171_v26 = vld [vmem:[#allocation9] ss:$16 sps:$4 sm:$0xff]   ;;  %v10173_v27 = vld [vmem:[#allocation9 + $0x4] ss:$16 sps:$4 sm:$0xff]  }
 0x14a   : > { %9673 = vmatpush3.bf16.msra.mxu0 %v10156_v2  ;;  %9701 = vmatpush3.bf16.msra.mxu1 %v10164_v6  ;;  %s8626_s18 = sshll.u32 %s12497_s30, 3  ;;  %v10176_v28 = vld [vmem:[#allocation9 + $0xc] ss:$16 sps:$4 sm:$0xff]   ;;  %v10179_v29 = vld [vmem:[#allocation9 + $0x24] ss:$16 sps:$4 sm:$0xff]   ;;  %s10014_s20 = smul.u32 56, %s12497_s30 }
 0x14b   : > { %9674 = vmatprep.subr.bf16.mxu0 %v11443_v0  ;;  %9702 = vmatprep.subr.bf16.mxu1 %v11443_v0  ;;  %s600_s28 = scalar_lea.vmem %s12463_s0, %s8626_s18  ;;  %v10177_v30 = vld [vmem:[#allocation9 + $0x20] ss:$16 sps:$4 sm:$0xff]   ;;  %v10185_v31 = vld [vmem:[#allocation9 + $0x44] ss:$16 sps:$4 sm:$0xff]   ;;  %v8628_v39 = vld [vmem:[#allocation4] ss:$0 sm:$0xff] }
 0x14c   : > { %v610_v14 = vld [vmem:[%s600_s28] sm:$0xff]  ;;  %v611_v15 = vld [vmem:[%s600_s28 + $0x8] sm:$0xff]  ;;  %v612_v18 = vld [vmem:[%s600_s28 + $0x10] sm:$0xff]  ;;  %s12379_s27 = scalar_lea.vmem %s12495_s19, %s10014_s20 }
 0x14d   : > { %v616_v17 = vpack.c.bf16 %v611_v15, %v610_v14  ;;  %v613_v19 = vld [vmem:[%s600_s28 + $0x18] sm:$0xff]  ;;  %v614_v21 = vld [vmem:[%s600_s28 + $0x20] sm:$0xff]  ;;  %v615_v22 = vld [vmem:[%s600_s28 + $0x28] sm:$0xff] }
 0x14e   : > { %9675 = vmatpush3.bf16.msra.mxu0 %v10157_v3  ;;  %9703 = vmatpush3.bf16.msra.mxu1 %v10165_v9  ;;  %v617_v20 = vpack.c.bf16 %v613_v19, %v612_v18  ;;  %v618_v23 = vpack.c.bf16 %v615_v22, %v614_v21  ;;  %v10183_v32 = vld [vmem:[#allocation9 + $0x40] ss:$16 sps:$4 sm:$0xff]   ;;  %v10191_v33 = vld [vmem:[#allocation9 + $0x64] ss:$16 sps:$4 sm:$0xff]   ;;  %v10174_v48 = vld [vmem:[#allocation9 + $0x8] ss:$16 sps:$4 sm:$0xff]  }
 0x14f   : > { %9676 = vmatprep.subr.bf16.mxu0 %v11443_v0  ;;  %9704 = vmatprep.subr.bf16.mxu1 %v11443_v0  ;;  %v10189_v34 = vld [vmem:[#allocation9 + $0x60] ss:$16 sps:$4 sm:$0xff]   ;;  %v10197_v35 = vld [vmem:[#allocation9 + $0x84] ss:$16 sps:$4 sm:$0xff]   ;;  %v10182_v50 = vld [vmem:[#allocation9 + $0x2c] ss:$16 sps:$4 sm:$0xff]  }
 0x150   : > { %v10195_v36 = vld [vmem:[#allocation9 + $0x80] ss:$16 sps:$4 sm:$0xff]   ;;  %v10203_v37 = vld [vmem:[#allocation9 + $0xa4] ss:$16 sps:$4 sm:$0xff]   ;;  %v10180_v55 = vld [vmem:[#allocation9 + $0x28] ss:$16 sps:$4 sm:$0xff]  }
 0x151   : > { %v10201_v38 = vld [vmem:[#allocation9 + $0xa0] ss:$16 sps:$4 sm:$0xff]   ;;  %v10188_v59 = vld [vmem:[#allocation9 + $0x4c] ss:$16 sps:$4 sm:$0xff]   ;;  %v10186_v61 = vld [vmem:[#allocation9 + $0x48] ss:$16 sps:$4 sm:$0xff]  }
 0x152   : > { %9677 = vmatpush3.bf16.msra.mxu0 %v10158_v4  ;;  %9705 = vmatpush3.bf16.msra.mxu1 %v10166_v10  ;;  %v10194_v63 = vld [vmem:[#allocation9 + $0x6c] ss:$16 sps:$4 sm:$0xff]   ;;  %v10192_v5 = vld [vmem:[#allocation9 + $0x68] ss:$16 sps:$4 sm:$0xff]   ;;  %v10209_v15 = vld [vmem:[#allocation9 + $0xc4] ss:$16 sps:$4 sm:$0xff]  }
 0x153   : > { %9678 = vmatprep.subr.bf16.mxu0 %v11443_v0  ;;  %9706 = vmatprep.subr.bf16.mxu1 %v11443_v0  ;;  %v10200_v9 = vld [vmem:[#allocation9 + $0x8c] ss:$16 sps:$4 sm:$0xff]   ;;  %v10204_v14 = vld [vmem:[#allocation9 + $0xa8] ss:$16 sps:$4 sm:$0xff]   ;;  %v10215_v18 = vld [vmem:[#allocation9 + $0xe4] ss:$16 sps:$4 sm:$0xff]  }
 0x154   : > { %v10218_v19 = vld [vmem:[#allocation9 + $0xec] ss:$16 sps:$4 sm:$0xff]   ;;  %v10216_v21 = vld [vmem:[#allocation9 + $0xe8] ss:$16 sps:$4 sm:$0xff]   ;;  %v11445_v22 = vmov 0  }
 0x156   : > { %9679 = vmatpush3.bf16.msra.mxu0 %v10159_v7  ;;  %9707 = vmatpush3.bf16.msra.mxu1 %v10167_v12 }
 0x157   : > { %9680 = vmatprep.subr.bf16.mxu0 %v11443_v0  ;;  %9708 = vmatprep.subr.bf16.mxu1 %v11443_v0 }
 0x15a   : > { %9681 = vmatpush3.bf16.msra.mxu0 %v10160_v8  ;;  %9709 = vmatpush3.bf16.msra.mxu1 %v10168_v16  ;;  %v10207_v16 = vld [vmem:[#allocation9 + $0xc0] ss:$16 sps:$4 sm:$0xff]  }
 0x15b   : > { %9682 = vmatprep.subr.bf16.mxu0 %v11443_v0  ;;  %9710 = vmatprep.subr.bf16.mxu1 %v11443_v0 }
 0x15e   : > { %9683 = vmatpush3.bf16.msra.mxu0 %v10161_v11  ;;  %9711 = vmatpush3.bf16.msra.mxu1 %v10169_v24  ;;  %v10198_v11 = vld [vmem:[#allocation9 + $0x88] ss:$16 sps:$4 sm:$0xff]  }
 0x15f   : > { %9684 = vmatprep.subr.bf16.mxu0 %v11443_v0  ;;  %9712 = vmatprep.subr.bf16.mxu1 %v11443_v0  ;;  %v10224_v24 = vld [vmem:[#allocation12 + $0x204] ss:$16 sps:$4 sm:$0xff]  }
 0x162   : > { %9685 = vmatpush3.bf16.msra.mxu0 %v10162_v13  ;;  %9713 = vmatpush3.bf16.msra.mxu1 %v10170_v25  ;;  %v10206_v13 = vld [vmem:[#allocation9 + $0xac] ss:$16 sps:$4 sm:$0xff]  }
 0x163   : > { %1107 = vmatprep.subr.bf16.mxu0 %v10173_v27  ;;  %1170 = vmatprep.subr.bf16.mxu1 %v10176_v28  ;;  %v8637_v25 = vld [vmem:[#allocation7] ss:$0 sm:$0xff] }
 0x165   : > { %9687 = vmatmul.mubr.bf16.vlgmr.msra.gmra.mrb[0].mxu0 %v616_v17  ;;  %v10210_v17 = vld [vmem:[#allocation9 + $0xc8] ss:$16 sps:$4 sm:$0xff]  }
 0x166   : > { %9690 = vmatprep.mubr.msk.bf16.mxu0 %vm11444_vm0, %v11443_v0  ;;  %1108 = vmatpush1.bf16.msra.mxu0 %v10171_v26 }
 0x167   : > { %1109 = vmatprep.subr.bf16.mxu0 %v10179_v29 }
 0x16a   : > { %1110 = vmatpush1.bf16.msra.mxu0 %v10177_v30 }
 0x16b   : > { %1111 = vmatprep.subr.bf16.mxu0 %v10185_v31 }
 0x16d   : > { %9691 = vmatmul.mubr.bf16.gmra.mrb[4].mxu0 %v617_v20  ;;  %v10213_v20 = vld [vmem:[#allocation9 + $0xe0] ss:$16 sps:$4 sm:$0xff]  }
 0x16e   : > { %9694 = vmatprep.mubr.msk.bf16.mxu0 %vm11444_vm0, %v11443_v0  ;;  %1112 = vmatpush1.bf16.msra.mxu0 %v10183_v32 }
 0x16f   : > { %1113 = vmatprep.subr.bf16.mxu0 %v10191_v33 }
 0x172   : > { %1114 = vmatpush1.bf16.msra.mxu0 %v10189_v34 }
 0x173   : > { %1115 = vmatprep.subr.bf16.mxu0 %v10197_v35  ;;  %v10219_v35 = vld [vmem:[#allocation12] ss:$16 sps:$4 sm:$0xff]  }
 0x175   : > { %9695 = vmatmul.mubr.bf16.gmra.mrb[8].mxu0 %v618_v23  ;;  %v10221_v23 = vld [vmem:[#allocation12 + $0x4] ss:$16 sps:$4 sm:$0xff]  }
 0x176   : > { %1116 = vmatpush1.bf16.msra.mxu0 %v10195_v36  ;;  %1139 = vmatprep.mubr.bf16.mxu0 %v11445_v22  ;;  %v10222_v36 = vld [vmem:[#allocation12 + $0x200] ss:$16 sps:$4 sm:$0xff]  }
 0x177   : > { %1117 = vmatprep.subr.bf16.mxu0 %v10203_v37 }
 0x17a   : > { %1118 = vmatpush1.bf16.msra.mxu0 %v10201_v38  ;;  %v10227_v38 = vld [vmem:[#allocation12 + $0x24] ss:$16 sps:$4 sm:$0xff]  }
 0x17b   : > { %1119 = vmatprep.subr.bf16.mxu0 %v10209_v15  ;;  %v10258_v15 = vld [vmem:[#allocation12 + $0x2c0] ss:$16 sps:$4 sm:$0xff]  }
 0x17e   : > { %1120 = vmatpush1.bf16.msra.mxu0 %v10207_v16  ;;  %v10266_v16 = vld [vmem:[#allocation12 + $0x2e4] ss:$16 sps:$4 sm:$0xff]  }
 0x17f   : > { %1121 = vmatprep.subr.bf16.mxu0 %v10215_v18  ;;  %v10264_v18 = vld [vmem:[#allocation12 + $0x2e0] ss:$16 sps:$4 sm:$0xff]  }
 0x182   : > { %1122 = vmatpush1.bf16.msra.mxu0 %v10213_v20  ;;  %v10272_v20 = vld [vmem:[#allocation12 + $0x304] ss:$16 sps:$4 sm:$0xff]  }
 0x183   : > { %2122 = vmatprep.subr.bf16.mxu0 %v10224_v24  ;;  %v10278_v24 = vld [vmem:[#allocation12 + $0x324] ss:$16 sps:$4 sm:$0xff]  }
 0x238   : > { %v724_v40 = vpop.f32.mrb[0].mxu0 }
 0x239   : > { %v725_v41 = vadd.f32 %v8628_v39, %v724_v40  ;;  %v9688_v42 = vpop.f32.mrb[1].mxu0 }
 0x23a   : > { %v727_v43 = vpop.f32.mrb[2].mxu0 }
 0x23b   : > { %v728_v44 = vadd.f32 %v8628_v39, %v727_v43  ;;  %v9689_v45 = vpop.f32.mrb[3].mxu0  ;;  %v747_v46 = vmax.f32 %v725_v41, 0.0 }
 0x23d   : > { %v748_v47 = vmax.f32 %v728_v44, 0.0 }
 0x23f   : > { %v753_v49 = vpack.c.bf16 %v748_v47, %v747_v46  ;;  %v10225_v46 = vld [vmem:[#allocation12 + $0x20] ss:$16 sps:$4 sm:$0xff]  }
 0x240   : > { %v732_v51 = vpop.f32.mrb[4].mxu0  ;;  %v10228_v47 = vld [vmem:[#allocation12 + $0x220] ss:$16 sps:$4 sm:$0xff]  }
 0x241   : > { %v733_v52 = vadd.f32 %v8628_v39, %v732_v51  ;;  %v9692_v53 = vpop.f32.mrb[5].mxu0  ;;  %9715 = vmatmul.mubr.bf16.vlgmr.msra.gmra.mrb[0].mxu1 %v753_v49  ;;  %v10236_v49 = vld [vmem:[#allocation12 + $0x244] ss:$16 sps:$4 sm:$0xff]  }
 0x242   : > { %v735_v54 = vpop.f32.mrb[6].mxu0  ;;  %9718 = vmatprep.mubr.msk.bf16.mxu1 %vm11444_vm0, %v11443_v0  ;;  %1171 = vmatpush1.bf16.msra.mxu1 %v10174_v48  ;;  %v10233_v48 = vld [vmem:[#allocation12 + $0x44] ss:$16 sps:$4 sm:$0xff]   ;;  %v10234_v53 = vld [vmem:[#allocation12 + $0x240] ss:$16 sps:$4 sm:$0xff]  }
 0x243   : > { %v749_v56 = vmax.f32 %v733_v52, 0.0  ;;  %v736_v57 = vadd.f32 %v8628_v39, %v735_v54  ;;  %v9693_v58 = vpop.f32.mrb[7].mxu0  ;;  %1172 = vmatprep.subr.bf16.mxu1 %v10182_v50  ;;  %v10231_v52 = vld [vmem:[#allocation12 + $0x40] ss:$16 sps:$4 sm:$0xff]  }
 0x245   : > { %v750_v60 = vmax.f32 %v736_v57, 0.0 }
 0x246   : > { %1173 = vmatpush1.bf16.msra.mxu1 %v10180_v55  ;;  %v10239_v55 = vld [vmem:[#allocation12 + $0x64] ss:$16 sps:$4 sm:$0xff]  }
 0x247   : > { %v754_v62 = vpack.c.bf16 %v750_v60, %v749_v56  ;;  %1174 = vmatprep.subr.bf16.mxu1 %v10188_v59  ;;  %v10242_v56 = vld [vmem:[#allocation12 + $0x264] ss:$16 sps:$4 sm:$0xff]  }
 0x248   : > { %v740_v1 = vpop.f32.mrb[8].mxu0 }
 0x249   : > { %v741_v2 = vadd.f32 %v8628_v39, %v740_v1  ;;  %v9696_v3 = vpop.f32.mrb[9].mxu0  ;;  %9719 = vmatmul.mubr.bf16.gmra.mrb[4].mxu1 %v754_v62  ;;  %v10240_v1 = vld [vmem:[#allocation12 + $0x260] ss:$16 sps:$4 sm:$0xff]  }
 0x24a   : > { %v743_v4 = vpop.f32.mrb[10].mxu0  ;;  %9722 = vmatprep.mubr.msk.bf16.mxu1 %vm11444_vm0, %v11443_v0  ;;  %1175 = vmatpush1.bf16.msra.mxu1 %v10186_v61  ;;  %v10212_v0 = vld [vmem:[#allocation9 + $0xcc] ss:$16 sps:$4 sm:$0xff]   ;;  %v10248_v3 = vld [vmem:[#allocation12 + $0x284] ss:$16 sps:$4 sm:$0xff]  }
 0x24b   : > { %v751_v6 = vmax.f32 %v741_v2, 0.0  ;;  %v744_v7 = vadd.f32 %v8628_v39, %v743_v4  ;;  %v9697_v8 = vpop.f32.mrb[11].mxu0  ;;  %1176 = vmatprep.subr.bf16.mxu1 %v10194_v63  ;;  %v10230_v39 = vld [vmem:[#allocation12 + $0x224] ss:$16 sps:$4 sm:$0xff]   ;;  %v10237_v63 = vld [vmem:[#allocation12 + $0x60] ss:$16 sps:$4 sm:$0xff]  }
 0x24c   : > { %v10245_v2 = vld [vmem:[#allocation12 + $0x84] ss:$16 sps:$4 sm:$0xff]  }
 0x24d   : > { %v752_v10 = vmax.f32 %v744_v7, 0.0  ;;  %v10246_v7 = vld [vmem:[#allocation12 + $0x280] ss:$16 sps:$4 sm:$0xff]   ;;  %v10251_v8 = vld [vmem:[#allocation12 + $0xa4] ss:$16 sps:$4 sm:$0xff]  }
 0x24e   : > { %1177 = vmatpush1.bf16.msra.mxu1 %v10192_v5 }
 0x24f   : > { %v755_v12 = vpack.c.bf16 %v752_v10, %v751_v6  ;;  %1178 = vmatprep.subr.bf16.mxu1 %v10200_v9  ;;  %v10243_v6 = vld [vmem:[#allocation12 + $0x80] ss:$16 sps:$4 sm:$0xff]   ;;  %v10254_v9 = vld [vmem:[#allocation12 + $0x2a4] ss:$16 sps:$4 sm:$0xff]  }
 0x250   : > { %v10249_v10 = vld [vmem:[#allocation12 + $0xa0] ss:$16 sps:$4 sm:$0xff]  }
 0x251   : > { %9723 = vmatmul.mubr.bf16.gmra.mrb[8].mxu1 %v755_v12  ;;  %v10257_v12 = vld [vmem:[#allocation12 + $0xc4] ss:$16 sps:$4 sm:$0xff]  }
 0x252   : > { %1179 = vmatpush1.bf16.msra.mxu1 %v10198_v11  ;;  %1202 = vmatprep.mubr.bf16.mxu1 %v11445_v22  ;;  %v10252_v11 = vld [vmem:[#allocation12 + $0x2a0] ss:$16 sps:$4 sm:$0xff]  }
 0x253   : > { %1180 = vmatprep.subr.bf16.mxu1 %v10206_v13  ;;  %v10260_v13 = vld [vmem:[#allocation12 + $0x2c4] ss:$16 sps:$4 sm:$0xff]  }
 0x256   : > { %1181 = vmatpush1.bf16.msra.mxu1 %v10204_v14  ;;  %v10255_v14 = vld [vmem:[#allocation12 + $0xc0] ss:$16 sps:$4 sm:$0xff]  }
 0x257   : > { %1182 = vmatprep.subr.bf16.mxu1 %v10212_v0  ;;  %v10263_v0 = vld [vmem:[#allocation12 + $0xe4] ss:$16 sps:$4 sm:$0xff]  }
 0x25a   : > { %1183 = vmatpush1.bf16.msra.mxu1 %v10210_v17  ;;  %v10261_v17 = vld [vmem:[#allocation12 + $0xe0] ss:$16 sps:$4 sm:$0xff]  }
 0x25b   : > { %1184 = vmatprep.subr.bf16.mxu1 %v10218_v19  ;;  %v10269_v19 = vld [vmem:[#allocation12 + $0x104] ss:$16 sps:$4 sm:$0xff]  }
 0x25e   : > { %1185 = vmatpush1.bf16.msra.mxu1 %v10216_v21  ;;  %v10267_v21 = vld [vmem:[#allocation12 + $0x100] ss:$16 sps:$4 sm:$0xff]  }
 0x25f   : > { %2059 = vmatprep.subr.bf16.mxu1 %v10221_v23  ;;  %v10275_v23 = vld [vmem:[#allocation12 + $0x124] ss:$16 sps:$4 sm:$0xff]  }
 0x314   : > { %v861_v26 = vpop.f32.mrb[0].mxu1 }
 0x315   : > { %v862_v27 = vadd.f32 %v8637_v25, %v861_v26  ;;  %v9716_v28 = vpop.f32.mrb[1].mxu1  ;;  %v10276_v26 = vld [vmem:[#allocation12 + $0x320] ss:$16 sps:$4 sm:$0xff]  }
 0x316   : > { %v864_v29 = vpop.f32.mrb[2].mxu1  ;;  %v10284_v28 = vld [vmem:[#allocation12 + $0x344] ss:$16 sps:$4 sm:$0xff]  }
 0x317   : > { %v865_v30 = vadd.f32 %v8637_v25, %v864_v29  ;;  %v9717_v31 = vpop.f32.mrb[3].mxu1  ;;  %v884_v32 = vmax.f32 %v862_v27, 0.0  ;;  %v10281_v27 = vld [vmem:[#allocation12 + $0x144] ss:$16 sps:$4 sm:$0xff]   ;;  %v10279_v29 = vld [vmem:[#allocation12 + $0x140] ss:$16 sps:$4 sm:$0xff]  }
 0x318   : > { %v10287_v31 = vld [vmem:[#allocation12 + $0x164] ss:$16 sps:$4 sm:$0xff]  }
 0x319   : > { %v885_v33 = vmax.f32 %v865_v30, 0.0  ;;  %v10282_v30 = vld [vmem:[#allocation12 + $0x340] ss:$16 sps:$4 sm:$0xff]  }
 0x31b   : > { %v890_v34 = vpack.c.bf16 %v885_v33, %v884_v32  ;;  %v10290_v32 = vld [vmem:[#allocation12 + $0x364] ss:$16 sps:$4 sm:$0xff]   ;;  %v10285_v33 = vld [vmem:[#allocation12 + $0x160] ss:$16 sps:$4 sm:$0xff]  }
 0x31c   : > { %v869_v37 = vpop.f32.mrb[4].mxu1 }
 0x31d   : > { %v870_v40 = vadd.f32 %v8637_v25, %v869_v37  ;;  %v9720_v41 = vpop.f32.mrb[5].mxu1  ;;  %1140 = vmatmul.mubr.bf16.vlgmr.msra.gmra.mrb[12].mxu0 %v890_v34  ;;  %1203 = vmatmul.mubr.bf16.vlgmr.msra.gmra.mrb[12].mxu1 %v890_v34  ;;  %v10288_v34 = vld [vmem:[#allocation12 + $0x360] ss:$16 sps:$4 sm:$0xff]  }
 0x31e   : > { %v872_v42 = vpop.f32.mrb[6].mxu1  ;;  %1149 = vmatprep.mubr.bf16.mxu0 %v11445_v22  ;;  %1212 = vmatprep.mubr.bf16.mxu1 %v11445_v22  ;;  %v10291_v37 = vld [vmem:[#allocation12 + $0x180] ss:$16 sps:$4 sm:$0xff]  }
 0x31f   : > { %v886_v43 = vmax.f32 %v870_v40, 0.0  ;;  %v873_v44 = vadd.f32 %v8637_v25, %v872_v42  ;;  %v9721_v45 = vpop.f32.mrb[7].mxu1  ;;  %2060 = vmatpush1.bf16.msra.mxu1 %v10219_v35  ;;  %2123 = vmatpush1.bf16.msra.mxu0 %v10222_v36  ;;  %v10293_v35 = vld [vmem:[#allocation12 + $0x184] ss:$16 sps:$4 sm:$0xff]   ;;  %v10297_v41 = vld [vmem:[#allocation12 + $0x1a0] ss:$16 sps:$4 sm:$0xff]  }
 0x320   : > { %2061 = vmatprep.subr.bf16.mxu1 %v10227_v38  ;;  %2124 = vmatprep.subr.bf16.mxu0 %v10230_v39  ;;  %v10296_v36 = vld [vmem:[#allocation12 + $0x384] ss:$16 sps:$4 sm:$0xff]   ;;  %v10294_v38 = vld [vmem:[#allocation12 + $0x380] ss:$16 sps:$4 sm:$0xff]  }
 0x321   : > { %v887_v50 = vmax.f32 %v873_v44, 0.0  ;;  %v10299_v39 = vld [vmem:[#allocation12 + $0x1a4] ss:$16 sps:$4 sm:$0xff]   ;;  %v10300_v42 = vld [vmem:[#allocation12 + $0x3a0] ss:$16 sps:$4 sm:$0xff]  }
 0x322   : > { %v10302_v40 = vld [vmem:[#allocation12 + $0x3a4] ss:$16 sps:$4 sm:$0xff]   ;;  %v10303_v44 = vld [vmem:[#allocation12 + $0x1c0] ss:$16 sps:$4 sm:$0xff]  }
 0x323   : > { %v891_v51 = vpack.c.bf16 %v887_v50, %v886_v43  ;;  %2062 = vmatpush1.bf16.msra.mxu1 %v10225_v46  ;;  %2125 = vmatpush1.bf16.msra.mxu0 %v10228_v47  ;;  %v10305_v43 = vld [vmem:[#allocation12 + $0x1c4] ss:$16 sps:$4 sm:$0xff]   ;;  %v10306_v46 = vld [vmem:[#allocation12 + $0x3c0] ss:$16 sps:$4 sm:$0xff]  }
 0x324   : > { %v877_v54 = vpop.f32.mrb[8].mxu1  ;;  %2063 = vmatprep.subr.bf16.mxu1 %v10233_v48  ;;  %2126 = vmatprep.subr.bf16.mxu0 %v10236_v49  ;;  %v10308_v45 = vld [vmem:[#allocation12 + $0x3c4] ss:$16 sps:$4 sm:$0xff]   ;;  %v10309_v48 = vld [vmem:[#allocation12 + $0x1e0] ss:$16 sps:$4 sm:$0xff]  }
 0x325   : > { %v878_v57 = vadd.f32 %v8637_v25, %v877_v54  ;;  %v9724_v58 = vpop.f32.mrb[9].mxu1  ;;  %1150 = vmatmul.mubr.bf16.gmra.mrb[16].mxu0 %v891_v51  ;;  %1213 = vmatmul.mubr.bf16.gmra.mrb[16].mxu1 %v891_v51  ;;  %v10311_v47 = vld [vmem:[#allocation12 + $0x1e4] ss:$16 sps:$4 sm:$0xff]   ;;  %v10312_v50 = vld [vmem:[#allocation12 + $0x3e0] ss:$16 sps:$4 sm:$0xff]  }
 0x326   : > { %v880_v59 = vpop.f32.mrb[10].mxu1  ;;  %1159 = vmatprep.mubr.bf16.mxu0 %v11445_v22  ;;  %1222 = vmatprep.mubr.bf16.mxu1 %v11445_v22  ;;  %v10270_v22 = vld [vmem:[#allocation12 + $0x300] ss:$16 sps:$4 sm:$0xff]   ;;  %v10314_v49 = vld [vmem:[#allocation12 + $0x3e4] ss:$16 sps:$4 sm:$0xff]  }
 0x327   : > { %v888_v60 = vmax.f32 %v878_v57, 0.0  ;;  %v881_v61 = vadd.f32 %v8637_v25, %v880_v59  ;;  %v9725_v62 = vpop.f32.mrb[11].mxu1  ;;  %2064 = vmatpush1.bf16.msra.mxu1 %v10231_v52  ;;  %2127 = vmatpush1.bf16.msra.mxu0 %v10234_v53  ;;  %v10273_v25 = vld [vmem:[#allocation12 + $0x120] ss:$16 sps:$4 sm:$0xff]   ;;  %v10317_v51 = vld [vmem:[#allocation12 + $0xc] ss:$16 sps:$4 sm:$0xff]   ;;  %v927_v52 = vlaneseq }
 0x328   : > { %2065 = vmatprep.subr.bf16.mxu1 %v10239_v55  ;;  %2128 = vmatprep.subr.bf16.mxu0 %v10242_v56  ;;  %v925_v56 = vld [vmem:[#allocation10] sm:$0xf] }
 0x329   : > { %v889_v4 = vmax.f32 %v881_v61, 0.0  ;;  %v11860_v53 = vshrl.u32 %v927_v52, 7 }
 0x32b   : > { %v892_v5 = vpack.c.bf16 %v889_v4, %v888_v60  ;;  %2066 = vmatpush1.bf16.msra.mxu1 %v10237_v63  ;;  %2129 = vmatpush1.bf16.msra.mxu0 %v10240_v1  ;;  %v11863_v54 = vsub.s32 0, %v11860_v53  ;;  %v11866_v55 = vsub.s32 2, %v11860_v53  ;;  %v11869_v57 = vsub.s32 1, %v11860_v53 }
 0x32c   : > { %2067 = vmatprep.subr.bf16.mxu1 %v10245_v2  ;;  %2130 = vmatprep.subr.bf16.mxu0 %v10248_v3  ;;  %v11872_v58 = vsub.s32 3, %v11860_v53 }
 0x32d   : > { %1160 = vmatmul.mubr.bf16.gmra.mrb[20].mxu0 %v892_v5  ;;  %1223 = vmatmul.mubr.bf16.gmra.mrb[20].mxu1 %v892_v5  ;;  %v11875_v59 = vrot.slane %v925_v56, %v11863_v54  ;;  %v11878_v60 = vrot.slane %v925_v56, %v11866_v55  ;;  %v11881_v61 = vrot.slane %v925_v56, %v11869_v57 }
 0x32e   : > { %v11884_v62 = vrot.slane %v925_v56, %v11872_v58 }
 0x32f   : > { %2068 = vmatpush1.bf16.msra.mxu1 %v10243_v6  ;;  %2131 = vmatpush1.bf16.msra.mxu0 %v10246_v7 }
 0x330   : > { %2069 = vmatprep.subr.bf16.mxu1 %v10251_v8  ;;  %2132 = vmatprep.subr.bf16.mxu0 %v10254_v9 }
 0x333   : > { %2070 = vmatpush1.bf16.msra.mxu1 %v10249_v10  ;;  %2133 = vmatpush1.bf16.msra.mxu0 %v10252_v11 }
 0x334   : > { %2071 = vmatprep.subr.bf16.mxu1 %v10257_v12  ;;  %2134 = vmatprep.subr.bf16.mxu0 %v10260_v13 }
 0x337   : > { %2072 = vmatpush1.bf16.msra.mxu1 %v10255_v14  ;;  %2135 = vmatpush1.bf16.msra.mxu0 %v10258_v15 }
 0x338   : > { %2073 = vmatprep.subr.bf16.mxu1 %v10263_v0  ;;  %2136 = vmatprep.subr.bf16.mxu0 %v10266_v16 }
 0x33b   : > { %2074 = vmatpush1.bf16.msra.mxu1 %v10261_v17  ;;  %2137 = vmatpush1.bf16.msra.mxu0 %v10264_v18 }
 0x33c   : > { %2075 = vmatprep.subr.bf16.mxu1 %v10269_v19  ;;  %2138 = vmatprep.subr.bf16.mxu0 %v10272_v20 }
 0x33f   : > { %2076 = vmatpush1.bf16.msra.mxu1 %v10267_v21  ;;  %2139 = vmatpush1.bf16.msra.mxu0 %v10270_v22 }
 0x340   : > { %2077 = vmatprep.subr.bf16.mxu1 %v10275_v23  ;;  %2140 = vmatprep.subr.bf16.mxu0 %v10278_v24 }
 0x343   : > { %2078 = vmatpush1.bf16.msra.mxu1 %v10273_v25  ;;  %2141 = vmatpush1.bf16.msra.mxu0 %v10276_v26 }
 0x344   : > { %2079 = vmatprep.subr.bf16.mxu1 %v10281_v27  ;;  %2142 = vmatprep.subr.bf16.mxu0 %v10284_v28  ;;  %v10315_v28 = vld [vmem:[#allocation12 + $0x8] ss:$16 sps:$4 sm:$0xff]  }
 0x347   : > { %2080 = vmatpush1.bf16.msra.mxu1 %v10279_v29  ;;  %2143 = vmatpush1.bf16.msra.mxu0 %v10282_v30 }
 0x348   : > { %2081 = vmatprep.subr.bf16.mxu1 %v10287_v31  ;;  %2144 = vmatprep.subr.bf16.mxu0 %v10290_v32  ;;  %v10320_v32 = vld [vmem:[#allocation12 + $0x2c] ss:$16 sps:$4 sm:$0xff]  }
 0x34b   : > { %2082 = vmatpush1.bf16.msra.mxu1 %v10285_v33  ;;  %2145 = vmatpush1.bf16.msra.mxu0 %v10288_v34 }
 0x34c   : > { %2083 = vmatprep.subr.bf16.mxu1 %v10293_v35  ;;  %2146 = vmatprep.subr.bf16.mxu0 %v10296_v36 }
 0x34f   : > { %2084 = vmatpush1.bf16.msra.mxu1 %v10291_v37  ;;  %2147 = vmatpush1.bf16.msra.mxu0 %v10294_v38 }
 0x350   : > { %2085 = vmatprep.subr.bf16.mxu1 %v10299_v39  ;;  %2148 = vmatprep.subr.bf16.mxu0 %v10302_v40 }
 0x353   : > { %2086 = vmatpush1.bf16.msra.mxu1 %v10297_v41  ;;  %2149 = vmatpush1.bf16.msra.mxu0 %v10300_v42 }
 0x354   : > { %2087 = vmatprep.subr.bf16.mxu1 %v10305_v43  ;;  %2150 = vmatprep.subr.bf16.mxu0 %v10308_v45 }
 0x357   : > { %2088 = vmatpush1.bf16.msra.mxu1 %v10303_v44  ;;  %2151 = vmatpush1.bf16.msra.mxu0 %v10306_v46 }
 0x358   : > { %2089 = vmatprep.subr.bf16.mxu1 %v10311_v47  ;;  %2152 = vmatprep.subr.bf16.mxu0 %v10314_v49  ;;  %v10318_v47 = vld [vmem:[#allocation12 + $0x28] ss:$16 sps:$4 sm:$0xff]  }
 0x35b   : > { %2090 = vmatpush1.bf16.msra.mxu1 %v10309_v48  ;;  %2153 = vmatpush1.bf16.msra.mxu0 %v10312_v50 }
 0x35c   : > { %2185 = vmatprep.subr.bf16.mxu1 %v10317_v51  ;;  %v10323_v51 = vld [vmem:[#allocation12 + $0x4c] ss:$16 sps:$4 sm:$0xff]  }
 0x3f0   : > { %v1141_v63 = vpop.f32.mrb[12].mxu0  ;;  %v1204_v1 = vpop.f32.mrb[12].mxu1 }
 0x3f1   : > { %v1142_v2 = vadd.f32 %v1141_v63, %v11875_v59  ;;  %v1205_v3 = vadd.f32 %v1204_v1, %v11878_v60  ;;  %v1143_v4 = vpop.f32.mrb[13].mxu0  ;;  %v1206_v5 = vpop.f32.mrb[13].mxu1 }
 0x3f2   : > { %v1144_v6 = vadd.f32 %v1143_v4, %v11881_v61  ;;  %v1207_v7 = vadd.f32 %v1206_v5, %v11884_v62  ;;  %v1145_v8 = vpop.f32.mrb[14].mxu0  ;;  %v1208_v9 = vpop.f32.mrb[14].mxu1  ;;  %v10321_v5 = vld [vmem:[#allocation12 + $0x48] ss:$16 sps:$4 sm:$0xff]  }
 0x3f3   : > { %v1146_v10 = vadd.f32 %v1145_v8, %v11875_v59  ;;  %v1209_v11 = vadd.f32 %v1208_v9, %v11878_v60  ;;  %v1147_v12 = vpop.f32.mrb[15].mxu0  ;;  %v1210_v13 = vpop.f32.mrb[15].mxu1  ;;  %v1233_v0 = vmax.f32 %v1142_v2, 0.0  ;;  %v1235_v16 = vmax.f32 %v1205_v3, 0.0 }
 0x3f4   : > { %v1148_v14 = vadd.f32 %v1147_v12, %v11881_v61  ;;  %v1211_v15 = vadd.f32 %v1210_v13, %v11884_v62  ;;  %v1234_v19 = vmax.f32 %v1144_v6, 0.0  ;;  %v1236_v20 = vmax.f32 %v1207_v7, 0.0 }
 0x3f5   : > { %v1237_v17 = vmax.f32 %v1146_v10, 0.0  ;;  %v1239_v18 = vmax.f32 %v1209_v11, 0.0  ;;  %v10326_v10 = vld [vmem:[#allocation12 + $0x6c] ss:$16 sps:$4 sm:$0xff]  }
 0x3f6   : > { %v1238_v21 = vmax.f32 %v1148_v14, 0.0  ;;  %v1240_v22 = vmax.f32 %v1211_v15, 0.0 }
 0x3f7   : > { %v11894_v23 = vpack.c.bf16 %v1237_v17, %v1233_v0  ;;  %v11896_v24 = vpack.c.bf16 %v1239_v18, %v1235_v16 }
 0x3f8   : > { %v11898_v25 = vpack.c.bf16 %v1238_v21, %v1234_v19  ;;  %v11900_v26 = vpack.c.bf16 %v1240_v22, %v1236_v20  ;;  %v1151_v27 = vpop.f32.mrb[16].mxu0  ;;  %v1214_v29 = vpop.f32.mrb[16].mxu1 }
 0x3f9   : > { %v1152_v30 = vadd.f32 %v1151_v27, %v11875_v59  ;;  %v1153_v31 = vpop.f32.mrb[17].mxu0  ;;  %v1215_v33 = vadd.f32 %v1214_v29, %v11878_v60  ;;  %v1216_v34 = vpop.f32.mrb[17].mxu1 }
 0x3fa   : > { %v1154_v35 = vadd.f32 %v1153_v31, %v11881_v61  ;;  %v1155_v36 = vpop.f32.mrb[18].mxu0  ;;  %2091 = vmatprep.mubr.bf16.mxu1 %v11898_v25  ;;  %2154 = vmatprep.mubr.bf16.mxu0 %v11900_v26  ;;  %v1217_v37 = vadd.f32 %v1216_v34, %v11884_v62  ;;  %v1218_v38 = vpop.f32.mrb[18].mxu1 }
 0x3fb   : > { %v1241_v39 = vmax.f32 %v1152_v30, 0.0  ;;  %v1156_v40 = vadd.f32 %v1155_v36, %v11875_v59  ;;  %v1157_v41 = vpop.f32.mrb[19].mxu0  ;;  %2092 = vmatmul.mubr.bf16.vlgmr.msra.gmra.mrb[24].mxu1 %v11894_v23  ;;  %2155 = vmatmul.mubr.bf16.vlgmr.msra.gmra.mrb[24].mxu0 %v11896_v24  ;;  %v1243_v42 = vmax.f32 %v1215_v33, 0.0  ;;  %v1219_v43 = vadd.f32 %v1218_v38, %v11878_v60  ;;  %v1220_v44 = vpop.f32.mrb[19].mxu1  ;;  %v10332_v38 = vld [vmem:[#allocation12 + $0xac] ss:$16 sps:$4 sm:$0xff]  }
 0x3fc   : > { %v1242_v45 = vmax.f32 %v1154_v35, 0.0  ;;  %v1158_v46 = vadd.f32 %v1157_v41, %v11881_v61  ;;  %2186 = vmatpush1.bf16.msra.mxu1 %v10315_v28  ;;  %v1244_v48 = vmax.f32 %v1217_v37, 0.0  ;;  %v1221_v49 = vadd.f32 %v1220_v44, %v11884_v62  ;;  %v10324_v28 = vld [vmem:[#allocation12 + $0x68] ss:$16 sps:$4 sm:$0xff]  }
 0x3fd   : > { %v1245_v50 = vmax.f32 %v1156_v40, 0.0  ;;  %2187 = vmatprep.subr.bf16.mxu1 %v10320_v32  ;;  %v1247_v52 = vmax.f32 %v1219_v43, 0.0  ;;  %v10327_v37 = vld [vmem:[#allocation12 + $0x88] ss:$16 sps:$4 sm:$0xff]  }
 0x3fe   : > { %v1246_v56 = vmax.f32 %v1158_v46, 0.0  ;;  %v1248_v63 = vmax.f32 %v1221_v49, 0.0  ;;  %v10330_v40 = vld [vmem:[#allocation12 + $0xa8] ss:$16 sps:$4 sm:$0xff]  }
 0x3ff   : > { %v11914_v1 = vpack.c.bf16 %v1245_v50, %v1241_v39  ;;  %v11916_v2 = vpack.c.bf16 %v1247_v52, %v1243_v42  ;;  %v2351_v39 = vld [vmem:[#allocation15 + $0x20] sm:$0xff]  ;;  %v10338_v52 = vld [vmem:[#allocation12 + $0xec] ss:$16 sps:$4 sm:$0xff]  }
 0x400   : > { %v11918_v3 = vpack.c.bf16 %v1246_v56, %v1242_v45  ;;  %2188 = vmatpush1.bf16.msra.mxu1 %v10318_v47  ;;  %v1161_v4 = vpop.f32.mrb[20].mxu0  ;;  %v11920_v6 = vpack.c.bf16 %v1248_v63, %v1244_v48  ;;  %v1224_v7 = vpop.f32.mrb[20].mxu1  ;;  %v2355_v43 = vld [vmem:[#allocation15 + $0x40] sm:$0xff]  ;;  %v10335_v45 = vld [vmem:[#allocation12 + $0xcc] ss:$16 sps:$4 sm:$0xff]  }
 0x401   : > { %v1162_v8 = vadd.f32 %v1161_v4, %v11875_v59  ;;  %v1163_v9 = vpop.f32.mrb[21].mxu0  ;;  %2189 = vmatprep.subr.bf16.mxu1 %v10323_v51  ;;  %v1225_v11 = vadd.f32 %v1224_v7, %v11878_v60  ;;  %v1226_v12 = vpop.f32.mrb[21].mxu1  ;;  %v2359_v44 = vld [vmem:[#allocation15 + $0x60] sm:$0xff]  ;;  %v10341_v7 = vld [vmem:[#allocation12 + $0x10c] ss:$16 sps:$4 sm:$0xff]  }
 0x402   : > { %v1164_v13 = vadd.f32 %v1163_v9, %v11881_v61  ;;  %v1165_v14 = vpop.f32.mrb[22].mxu0  ;;  %2101 = vmatprep.mubr.bf16.mxu1 %v11918_v3  ;;  %v1227_v15 = vadd.f32 %v1226_v12, %v11884_v62  ;;  %v1228_v0 = vpop.f32.mrb[22].mxu1  ;;  %2164 = vmatprep.mubr.bf16.mxu0 %v11920_v6  ;;  %v8815_v46 = vcombine.high %v2355_v43, %v2359_v44  ;;  %v2363_v47 = vld [vmem:[#allocation15 + $0x80] sm:$0xff] }
 0x403   : > { %v1249_v16 = vmax.f32 %v1162_v8, 0.0  ;;  %v1166_v17 = vadd.f32 %v1165_v14, %v11875_v59  ;;  %v1167_v18 = vpop.f32.mrb[23].mxu0  ;;  %2102 = vmatmul.mubr.bf16.gmra.mrb[28].mxu1 %v11914_v1  ;;  %v1251_v19 = vmax.f32 %v1225_v11, 0.0  ;;  %v1229_v20 = vadd.f32 %v1228_v0, %v11878_v60  ;;  %v1230_v21 = vpop.f32.mrb[23].mxu1  ;;  %2165 = vmatmul.mubr.bf16.gmra.mrb[28].mxu0 %v11916_v2  ;;  %v10329_v59 = vld [vmem:[#allocation12 + $0x8c] ss:$16 sps:$4 sm:$0xff]  }
 0x404   : > { %v1250_v22 = vmax.f32 %v1164_v13, 0.0  ;;  %v1168_v27 = vadd.f32 %v1167_v18, %v11881_v61  ;;  %2190 = vmatpush1.bf16.msra.mxu1 %v10321_v5  ;;  %v1252_v29 = vmax.f32 %v1227_v15, 0.0  ;;  %v1231_v30 = vadd.f32 %v1230_v21, %v11884_v62  ;;  %v2347_v62 = vld [vmem:[#allocation15] sm:$0xff]  ;;  %v10344_v13 = vld [vmem:[#allocation12 + $0x12c] ss:$16 sps:$4 sm:$0xff]  }
 0x405   : > { %v1253_v31 = vmax.f32 %v1166_v17, 0.0  ;;  %2191 = vmatprep.subr.bf16.mxu1 %v10326_v10  ;;  %v1255_v32 = vmax.f32 %v1229_v20, 0.0  ;;  %v8806_v41 = vcombine.low %v2347_v62, %v2351_v39  ;;  %v8807_v42 = vcombine.high %v2347_v62, %v2351_v39  ;;  %v2367_v48 = vld [vmem:[#allocation15 + $0xa0] sm:$0xff]  ;;  %v10347_v18 = vld [vmem:[#allocation12 + $0x14c] ss:$16 sps:$4 sm:$0xff]  }
 0x406   : > { %v1254_v33 = vmax.f32 %v1168_v27, 0.0  ;;  %v1256_v34 = vmax.f32 %v1231_v30, 0.0  ;;  %v8814_v49 = vcombine.low %v2355_v43, %v2359_v44  ;;  %v10333_v50 = vld [vmem:[#allocation12 + $0xc8] ss:$16 sps:$4 sm:$0xff]   ;;  %v8823_v51 = vcombine.high %v2363_v47, %v2367_v48 }
 0x407   : > { %v11934_v35 = vpack.c.bf16 %v1253_v31, %v1249_v16  ;;  %v11936_v60 = vpack.c.bf16 %v1255_v32, %v1251_v19  ;;  %3925 = vmatprep.subr.bf16.mxu0 %v8807_v42  ;;  %v2375_v56 = vld [vmem:[#allocation15 + $0xe0] sm:$0xff]  ;;  %v8822_v63 = vcombine.low %v2363_v47, %v2367_v48 }
 0x408   : > { %v11938_v36 = vpack.c.bf16 %v1254_v33, %v1250_v22  ;;  %2192 = vmatpush1.bf16.msra.mxu1 %v10324_v28  ;;  %v11940_v61 = vpack.c.bf16 %v1256_v34, %v1252_v29  ;;  %3926 = vmatpush1.bf16.msra.mxu0 %v8806_v41  ;;  %v10336_v4 = vld [vmem:[#allocation12 + $0xe8] ss:$16 sps:$4 sm:$0xff]   ;;  %v10350_v28 = vld [vmem:[#allocation12 + $0x16c] ss:$16 sps:$4 sm:$0xff]  }
 0x409   : > { %2193 = vmatprep.subr.bf16.mxu1 %v10329_v59  ;;  %3927 = vmatprep.subr.bf16.mxu0 %v8815_v46  ;;  %v2379_v8 = vld [vmem:[#allocation15 + $0x100] sm:$0xff]  ;;  %v10353_v33 = vld [vmem:[#allocation12 + $0x18c] ss:$16 sps:$4 sm:$0xff]  }
 0x40a   : > { %2111 = vmatprep.mubr.bf16.mxu1 %v11938_v36  ;;  %2174 = vmatprep.mubr.bf16.mxu0 %v11940_v61  ;;  %v2383_v9 = vld [vmem:[#allocation15 + $0x120] sm:$0xff]  ;;  %v10359_v46 = vld [vmem:[#allocation12 + $0x1cc] ss:$16 sps:$4 sm:$0xff]  }
 0x40b   : > { %2112 = vmatmul.mubr.bf16.gmra.mrb[32].mxu1 %v11934_v35  ;;  %2175 = vmatmul.mubr.bf16.gmra.mrb[32].mxu0 %v11936_v60  ;;  %v10339_v11 = vld [vmem:[#allocation12 + $0x108] ss:$16 sps:$4 sm:$0xff]   ;;  %v8839_v12 = vcombine.high %v2379_v8, %v2383_v9  ;;  %v8838_v0 = vcombine.low %v2379_v8, %v2383_v9 }
 0x40c   : > { %2194 = vmatpush1.bf16.msra.mxu1 %v10327_v37  ;;  %2217 = vmatprep.mubr.bf16.mxu1 %v11898_v25  ;;  %v2371_v25 = vld [vmem:[#allocation15 + $0xc0] sm:$0xff] }
 0x40d   : > { %2195 = vmatprep.subr.bf16.mxu1 %v10332_v38  ;;  %3928 = vmatpush1.bf16.msra.mxu0 %v8814_v49  ;;  %v8831_v5 = vcombine.high %v2371_v25, %v2375_v56  ;;  %v8830_v10 = vcombine.low %v2371_v25, %v2375_v56  ;;  %v2387_v14 = vld [vmem:[#allocation15 + $0x140] sm:$0xff] }
 0x40e   : > { %3929 = vmatprep.subr.bf16.mxu0 %v8823_v51  ;;  %v2391_v15 = vld [vmem:[#allocation15 + $0x160] sm:$0xff] }
 0x40f   : > { %v10342_v16 = vld [vmem:[#allocation12 + $0x128] ss:$16 sps:$4 sm:$0xff]   ;;  %v8847_v17 = vcombine.high %v2387_v14, %v2391_v15  ;;  %v8846_v21 = vcombine.low %v2387_v14, %v2391_v15 }
 0x410   : > { %2196 = vmatpush1.bf16.msra.mxu1 %v10330_v40  ;;  %v2395_v19 = vld [vmem:[#allocation15 + $0x180] sm:$0xff]  ;;  %v10356_v40 = vld [vmem:[#allocation12 + $0x1ac] ss:$16 sps:$4 sm:$0xff]  }
 0x411   : > { %2197 = vmatprep.subr.bf16.mxu1 %v10335_v45  ;;  %3930 = vmatpush1.bf16.msra.mxu0 %v8822_v63  ;;  %v2399_v20 = vld [vmem:[#allocation15 + $0x1a0] sm:$0xff] }
 0x412   : > { %3931 = vmatprep.subr.bf16.mxu0 %v8831_v5  ;;  %v10345_v22 = vld [vmem:[#allocation12 + $0x148] ss:$16 sps:$4 sm:$0xff]   ;;  %v8855_v27 = vcombine.high %v2395_v19, %v2399_v20  ;;  %v8854_v31 = vcombine.low %v2395_v19, %v2399_v20  ;;  %v10380_v19 = vld [vmem:[#allocation12 + $0x2ac] ss:$16 sps:$4 sm:$0xff]  }
 0x413   : > { %v2403_v29 = vld [vmem:[#allocation15 + $0x1c0] sm:$0xff] }
 0x414   : > { %2198 = vmatpush1.bf16.msra.mxu1 %v10333_v50  ;;  %v2407_v30 = vld [vmem:[#allocation15 + $0x1e0] sm:$0xff] }
 0x415   : > { %2199 = vmatprep.subr.bf16.mxu1 %v10338_v52  ;;  %3932 = vmatpush1.bf16.msra.mxu0 %v8830_v10  ;;  %v10348_v59 = vld [vmem:[#allocation12 + $0x168] ss:$16 sps:$4 sm:$0xff]   ;;  %v8863_v32 = vcombine.high %v2403_v29, %v2407_v30  ;;  %v8862_v38 = vcombine.low %v2403_v29, %v2407_v30  ;;  %v10362_v52 = vld [vmem:[#allocation12 + $0x1ec] ss:$16 sps:$4 sm:$0xff]  }
 0x416   : > { %3933 = vmatprep.subr.bf16.mxu0 %v8839_v12  ;;  %v2411_v34 = vld [vmem:[#allocation15 + $0x200] sm:$0xff]  ;;  %v10368_v12 = vld [vmem:[#allocation12 + $0x22c] ss:$16 sps:$4 sm:$0xff]  }
 0x417   : > { %v2415_v37 = vld [vmem:[#allocation15 + $0x220] sm:$0xff]  ;;  %v10386_v29 = vld [vmem:[#allocation12 + $0x2ec] ss:$16 sps:$4 sm:$0xff]  }
 0x418   : > { %2200 = vmatpush1.bf16.msra.mxu1 %v10336_v4  ;;  %v10351_v62 = vld [vmem:[#allocation12 + $0x188] ss:$16 sps:$4 sm:$0xff]   ;;  %v8871_v39 = vcombine.high %v2411_v34, %v2415_v37  ;;  %v8870_v43 = vcombine.low %v2411_v34, %v2415_v37 }
 0x419   : > { %2201 = vmatprep.subr.bf16.mxu1 %v10341_v7  ;;  %3934 = vmatpush1.bf16.msra.mxu0 %v8838_v0  ;;  %v2419_v41 = vld [vmem:[#allocation15 + $0x240] sm:$0xff]  ;;  %v10365_v7 = vld [vmem:[#allocation12 + $0x20c] ss:$16 sps:$4 sm:$0xff]  }
 0x41a   : > { %3935 = vmatprep.subr.bf16.mxu0 %v8847_v17  ;;  %v2423_v42 = vld [vmem:[#allocation15 + $0x260] sm:$0xff]  ;;  %v10371_v0 = vld [vmem:[#allocation12 + $0x24c] ss:$16 sps:$4 sm:$0xff]  }
 0x41b   : > { %v10354_v44 = vld [vmem:[#allocation12 + $0x1a8] ss:$16 sps:$4 sm:$0xff]   ;;  %v8879_v45 = vcombine.high %v2419_v41, %v2423_v42  ;;  %v8878_v49 = vcombine.low %v2419_v41, %v2423_v42  ;;  %v10374_v17 = vld [vmem:[#allocation12 + $0x26c] ss:$16 sps:$4 sm:$0xff]  }
 0x41c   : > { %2202 = vmatpush1.bf16.msra.mxu1 %v10339_v11  ;;  %v2427_v47 = vld [vmem:[#allocation15 + $0x280] sm:$0xff]  ;;  %v10395_v41 = vld [vmem:[#allocation12 + $0x34c] ss:$16 sps:$4 sm:$0xff]  }
 0x41d   : > { %2203 = vmatprep.subr.bf16.mxu1 %v10344_v13  ;;  %3936 = vmatpush1.bf16.msra.mxu0 %v8846_v21  ;;  %v2431_v48 = vld [vmem:[#allocation15 + $0x2a0] sm:$0xff]  ;;  %v10383_v21 = vld [vmem:[#allocation12 + $0x2cc] ss:$16 sps:$4 sm:$0xff]  }
 0x41e   : > { %3937 = vmatprep.subr.bf16.mxu0 %v8855_v27  ;;  %v10357_v50 = vld [vmem:[#allocation12 + $0x1c8] ss:$16 sps:$4 sm:$0xff]   ;;  %v8887_v51 = vcombine.high %v2427_v47, %v2431_v48  ;;  %v8886_v63 = vcombine.low %v2427_v47, %v2431_v48  ;;  %v10404_v47 = vld [vmem:[#allocation12 + $0x3ac] ss:$16 sps:$4 sm:$0xff]  }
 0x41f   : > { %v2435_v25 = vld [vmem:[#allocation15 + $0x2c0] sm:$0xff] }
 0x420   : > { %2204 = vmatpush1.bf16.msra.mxu1 %v10342_v16  ;;  %v2439_v56 = vld [vmem:[#allocation15 + $0x2e0] sm:$0xff] }
 0x421   : > { %2205 = vmatprep.subr.bf16.mxu1 %v10347_v18  ;;  %3938 = vmatpush1.bf16.msra.mxu0 %v8854_v31  ;;  %v10360_v4 = vld [vmem:[#allocation12 + $0x1e8] ss:$16 sps:$4 sm:$0xff]   ;;  %v8895_v5 = vcombine.high %v2435_v25, %v2439_v56  ;;  %v8894_v10 = vcombine.low %v2435_v25, %v2439_v56  ;;  %v10377_v18 = vld [vmem:[#allocation12 + $0x28c] ss:$16 sps:$4 sm:$0xff]  }
 0x422   : > { %3939 = vmatprep.subr.bf16.mxu0 %v8863_v32  ;;  %v2443_v8 = vld [vmem:[#allocation15 + $0x300] sm:$0xff]  ;;  %v10407_v25 = vld [vmem:[#allocation12 + $0x3cc] ss:$16 sps:$4 sm:$0xff]  }
 0x423   : > { %v2447_v9 = vld [vmem:[#allocation15 + $0x320] sm:$0xff] }
 0x424   : > { %2206 = vmatpush1.bf16.msra.mxu1 %v10345_v22  ;;  %v10363_v11 = vld [vmem:[#allocation12 + $0x208] ss:$16 sps:$4 sm:$0xff]   ;;  %v8903_v13 = vcombine.high %v2443_v8, %v2447_v9  ;;  %v8902_v14 = vcombine.low %v2443_v8, %v2447_v9  ;;  %v2356_v9 = vld [vmem:[#allocation15 + $0x48] sm:$0xff] }
 0x425   : > { %2207 = vmatprep.subr.bf16.mxu1 %v10350_v28  ;;  %3940 = vmatpush1.bf16.msra.mxu0 %v8862_v38  ;;  %v10366_v15 = vld [vmem:[#allocation12 + $0x228] ss:$16 sps:$4 sm:$0xff]  }
 0x426   : > { %3941 = vmatprep.subr.bf16.mxu0 %v8871_v39  ;;  %v10369_v16 = vld [vmem:[#allocation12 + $0x248] ss:$16 sps:$4 sm:$0xff]   ;;  %v10392_v39 = vld [vmem:[#allocation12 + $0x32c] ss:$16 sps:$4 sm:$0xff]  }
 0x427   : > { %v10378_v20 = vld [vmem:[#allocation12 + $0x2a8] ss:$16 sps:$4 sm:$0xff]  }
 0x428   : > { %2208 = vmatpush1.bf16.msra.mxu1 %v10348_v59  ;;  %v2451_v22 = vld [vmem:[#allocation15 + $0x340] sm:$0xff] }
 0x429   : > { %2209 = vmatprep.subr.bf16.mxu1 %v10353_v33  ;;  %3942 = vmatpush1.bf16.msra.mxu0 %v8870_v43  ;;  %v10381_v28 = vld [vmem:[#allocation12 + $0x2c8] ss:$16 sps:$4 sm:$0xff]   ;;  %v10398_v43 = vld [vmem:[#allocation12 + $0x36c] ss:$16 sps:$4 sm:$0xff]  }
 0x42a   : > { %3943 = vmatprep.subr.bf16.mxu0 %v8879_v45  ;;  %v2459_v30 = vld [vmem:[#allocation15 + $0x380] sm:$0xff]  ;;  %v10401_v45 = vld [vmem:[#allocation12 + $0x38c] ss:$16 sps:$4 sm:$0xff]  }
 0x42b   : > { %v2463_v31 = vld [vmem:[#allocation15 + $0x3a0] sm:$0xff] }
 0x42c   : > { %2210 = vmatpush1.bf16.msra.mxu1 %v10351_v62  ;;  %v8919_v59 = vcombine.high %v2459_v30, %v2463_v31  ;;  %v10384_v32 = vld [vmem:[#allocation12 + $0x2e8] ss:$16 sps:$4 sm:$0xff]  }
 0x42d   : > { %2211 = vmatprep.subr.bf16.mxu1 %v10356_v40  ;;  %3944 = vmatpush1.bf16.msra.mxu0 %v8878_v49  ;;  %v2467_v33 = vld [vmem:[#allocation15 + $0x3c0] sm:$0xff] }
 0x42e   : > { %3945 = vmatprep.subr.bf16.mxu0 %v8887_v51  ;;  %v2471_v34 = vld [vmem:[#allocation15 + $0x3e0] sm:$0xff] }
 0x42f   : > { %v8927_v37 = vcombine.high %v2467_v33, %v2471_v34  ;;  %v8926_v38 = vcombine.low %v2467_v33, %v2471_v34  ;;  %v10387_v62 = vld [vmem:[#allocation12 + $0x308] ss:$16 sps:$4 sm:$0xff]   ;;  %v2420_v33 = vld [vmem:[#allocation15 + $0x248] sm:$0xff] }
 0x430   : > { %2212 = vmatpush1.bf16.msra.mxu1 %v10354_v44  ;;  %v10390_v40 = vld [vmem:[#allocation12 + $0x328] ss:$16 sps:$4 sm:$0xff]   ;;  %v2424_v34 = vld [vmem:[#allocation15 + $0x268] sm:$0xff] }
 0x431   : > { %2213 = vmatprep.subr.bf16.mxu1 %v10359_v46  ;;  %3946 = vmatpush1.bf16.msra.mxu0 %v8886_v63  ;;  %v10393_v42 = vld [vmem:[#allocation12 + $0x348] ss:$16 sps:$4 sm:$0xff]   ;;  %v10410_v63 = vld [vmem:[#allocation12 + $0x3ec] ss:$16 sps:$4 sm:$0xff]  }
 0x432   : > { %3947 = vmatprep.subr.bf16.mxu0 %v8895_v5  ;;  %v10396_v44 = vld [vmem:[#allocation12 + $0x368] ss:$16 sps:$4 sm:$0xff]   ;;  %v2352_v5 = vld [vmem:[#allocation15 + $0x28] sm:$0xff] }
 0x433   : > { %v10399_v46 = vld [vmem:[#allocation12 + $0x388] ss:$16 sps:$4 sm:$0xff]  }
 0x434   : > { %2214 = vmatpush1.bf16.msra.mxu1 %v10357_v50  ;;  %v11953_v48 = vld [vmem:[#allocation15 + $0x400] sm:$0xff] }
 0x435   : > { %2215 = vmatprep.subr.bf16.mxu1 %v10362_v52  ;;  %3948 = vmatpush1.bf16.msra.mxu0 %v8894_v10  ;;  %v11955_v49 = vld [vmem:[#allocation15 + $0x420] sm:$0xff]  ;;  %v2360_v10 = vld [vmem:[#allocation15 + $0x68] sm:$0xff] }
 0x436   : > { %3949 = vmatprep.subr.bf16.mxu0 %v8903_v13  ;;  %v10402_v50 = vld [vmem:[#allocation12 + $0x3a8] ss:$16 sps:$4 sm:$0xff]   ;;  %v8934_v51 = vcombine.low %v11953_v48, %v11955_v49  ;;  %v8935_v52 = vcombine.high %v11953_v48, %v11955_v49  ;;  %v2364_v13 = vld [vmem:[#allocation15 + $0x88] sm:$0xff] }
 0x437   : > { %v10405_v56 = vld [vmem:[#allocation12 + $0x3c8] ss:$16 sps:$4 sm:$0xff]   ;;  %v2504_v48 = vld [vmem:[#allocation15 + $0x4e8] sm:$0xff] }
 0x438   : > { %2216 = vmatpush1.bf16.msra.mxu1 %v10360_v4  ;;  %v2348_v4 = vld [vmem:[#allocation15 + $0x8] sm:$0xff] }
 0x439   : > { %2248 = vmatprep.subr.bf16.mxu1 %v10365_v7  ;;  %3950 = vmatpush1.bf16.msra.mxu0 %v8902_v14  ;;  %v10408_v7 = vld [vmem:[#allocation12 + $0x3e8] ss:$16 sps:$4 sm:$0xff]   ;;  %v8809_v8 = vcombine.high %v2348_v4, %v2352_v5  ;;  %v2368_v14 = vld [vmem:[#allocation15 + $0xa8] sm:$0xff] }
 0x43b   : > { %2218 = vmatmul.mubr.bf16.vlgmr.msra.gmra.mrb[36].mxu1 %v11894_v23  ;;  %v10372_v23 = vld [vmem:[#allocation12 + $0x268] ss:$16 sps:$4 sm:$0xff]  }
 0x43c   : > { %2227 = vmatprep.mubr.bf16.mxu1 %v11918_v3  ;;  %2249 = vmatpush1.bf16.msra.mxu1 %v10363_v11  ;;  %v10375_v3 = vld [vmem:[#allocation12 + $0x288] ss:$16 sps:$4 sm:$0xff]   ;;  %v8808_v11 = vcombine.low %v2348_v4, %v2352_v5  ;;  %v2460_v4 = vld [vmem:[#allocation15 + $0x388] sm:$0xff] }
 0x43d   : > { %2250 = vmatprep.subr.bf16.mxu1 %v10368_v12  ;;  %v8817_v12 = vcombine.high %v2356_v9, %v2360_v10  ;;  %v2464_v5 = vld [vmem:[#allocation15 + $0x3a8] sm:$0xff] }
 0x440   : > { %2251 = vmatpush1.bf16.msra.mxu1 %v10366_v15  ;;  %v8816_v15 = vcombine.low %v2356_v9, %v2360_v10  ;;  %v2468_v9 = vld [vmem:[#allocation15 + $0x3c8] sm:$0xff] }
 0x441   : > { %2252 = vmatprep.subr.bf16.mxu1 %v10371_v0  ;;  %v8825_v0 = vcombine.high %v2364_v13, %v2368_v14  ;;  %v2472_v10 = vld [vmem:[#allocation15 + $0x3e8] sm:$0xff] }
 0x443   : > { %2228 = vmatmul.mubr.bf16.gmra.mrb[40].mxu1 %v11914_v1  ;;  %v2455_v1 = vld [vmem:[#allocation15 + $0x360] sm:$0xff] }
 0x444   : > { %2237 = vmatprep.mubr.bf16.mxu1 %v11938_v36  ;;  %2253 = vmatpush1.bf16.msra.mxu1 %v10369_v16  ;;  %v8911_v27 = vcombine.high %v2451_v22, %v2455_v1  ;;  %v8910_v36 = vcombine.low %v2451_v22, %v2455_v1  ;;  %v2372_v16 = vld [vmem:[#allocation15 + $0xc8] sm:$0xff] }
 0x445   : > { %2254 = vmatprep.subr.bf16.mxu1 %v10374_v17  ;;  %v2376_v17 = vld [vmem:[#allocation15 + $0xe8] sm:$0xff] }
 0x446   : > { %3951 = vmatprep.subr.bf16.mxu0 %v8911_v27  ;;  %v2396_v27 = vld [vmem:[#allocation15 + $0x188] sm:$0xff] }
 0x447   : > { %3952 = vmatpush1.bf16.msra.mxu0 %v8910_v36  ;;  %v2400_v36 = vld [vmem:[#allocation15 + $0x1a8] sm:$0xff] }
 0x448   : > { %2255 = vmatpush1.bf16.msra.mxu1 %v10372_v23  ;;  %3953 = vmatprep.subr.bf16.mxu0 %v8919_v59  ;;  %v8824_v23 = vcombine.low %v2364_v13, %v2368_v14  ;;  %v2412_v59 = vld [vmem:[#allocation15 + $0x208] sm:$0xff] }
 0x449   : > { %2256 = vmatprep.subr.bf16.mxu1 %v10377_v18  ;;  %v8833_v18 = vcombine.high %v2372_v16, %v2376_v17  ;;  %v11966_v13 = vld [vmem:[#allocation15 + $0x408] sm:$0xff] }
 0x44a   : > { %v11968_v14 = vld [vmem:[#allocation15 + $0x428] sm:$0xff] }
 0x44b   : > { %2238 = vmatmul.mubr.bf16.gmra.mrb[44].mxu1 %v11934_v35  ;;  %v8918_v35 = vcombine.low %v2459_v30, %v2463_v31  ;;  %v8856_v30 = vcombine.low %v2396_v27, %v2400_v36 }
 0x44c   : > { %2257 = vmatpush1.bf16.msra.mxu1 %v10375_v3  ;;  %2280 = vmatprep.mubr.bf16.mxu1 %v11900_v26  ;;  %v10389_v26 = vld [vmem:[#allocation12 + $0x30c] ss:$16 sps:$4 sm:$0xff]  }
 0x44d   : > { %2258 = vmatprep.subr.bf16.mxu1 %v10380_v19  ;;  %3954 = vmatpush1.bf16.msra.mxu0 %v8918_v35  ;;  %v2380_v3 = vld [vmem:[#allocation15 + $0x108] sm:$0xff] }
 0x44e   : > { %3955 = vmatprep.subr.bf16.mxu0 %v8927_v37  ;;  %v2384_v19 = vld [vmem:[#allocation15 + $0x128] sm:$0xff]  ;;  %v8881_v37 = vcombine.high %v2420_v33, %v2424_v34 }
 0x44f   : > { %v8840_v22 = vcombine.low %v2380_v3, %v2384_v19  ;;  %v2416_v35 = vld [vmem:[#allocation15 + $0x228] sm:$0xff] }
 0x450   : > { %2259 = vmatpush1.bf16.msra.mxu1 %v10378_v20  ;;  %v2388_v20 = vld [vmem:[#allocation15 + $0x148] sm:$0xff] }
 0x451   : > { %2260 = vmatprep.subr.bf16.mxu1 %v10383_v21  ;;  %3956 = vmatpush1.bf16.msra.mxu0 %v8926_v38  ;;  %v2392_v21 = vld [vmem:[#allocation15 + $0x168] sm:$0xff] }
 0x452   : > { %3988 = vmatprep.subr.bf16.mxu0 %v8935_v52  ;;  %v8849_v1 = vcombine.high %v2388_v20, %v2392_v21  ;;  %v2428_v38 = vld [vmem:[#allocation15 + $0x288] sm:$0xff] }
 0x453   : > { %v2452_v52 = vld [vmem:[#allocation15 + $0x348] sm:$0xff] }
 0x454   : > { %2261 = vmatpush1.bf16.msra.mxu1 %v10381_v28  ;;  %v8848_v28 = vcombine.low %v2388_v20, %v2392_v21 }
 0x455   : > { %2262 = vmatprep.subr.bf16.mxu1 %v10386_v29  ;;  %v2404_v29 = vld [vmem:[#allocation15 + $0x1c8] sm:$0xff] }
 0x458   : > { %2263 = vmatpush1.bf16.msra.mxu1 %v10384_v32 }
 0x459   : > { %2264 = vmatprep.subr.bf16.mxu1 %v10389_v26  ;;  %v8873_v26 = vcombine.high %v2412_v59, %v2416_v35 }
 0x45c   : > { %2265 = vmatpush1.bf16.msra.mxu1 %v10387_v62  ;;  %v2432_v62 = vld [vmem:[#allocation15 + $0x2a8] sm:$0xff] }
 0x45d   : > { %2266 = vmatprep.subr.bf16.mxu1 %v10392_v39  ;;  %v8880_v39 = vcombine.low %v2420_v33, %v2424_v34  ;;  %v11992_v33 = vld [vmem:[#allocation15 + $0x10] sm:$0xff] }
 0x45e   : > { %v11994_v34 = vld [vmem:[#allocation15 + $0x30] sm:$0xff] }
 0x460   : > { %2267 = vmatpush1.bf16.msra.mxu1 %v10390_v40  ;;  %v8889_v40 = vcombine.high %v2428_v38, %v2432_v62 }
 0x461   : > { %2268 = vmatprep.subr.bf16.mxu1 %v10395_v41  ;;  %v2436_v41 = vld [vmem:[#allocation15 + $0x2c8] sm:$0xff] }
 0x464   : > { %2269 = vmatpush1.bf16.msra.mxu1 %v10393_v42  ;;  %v2440_v42 = vld [vmem:[#allocation15 + $0x2e8] sm:$0xff] }
 0x465   : > { %2270 = vmatprep.subr.bf16.mxu1 %v10398_v43  ;;  %v8888_v43 = vcombine.low %v2428_v38, %v2432_v62 }
 0x468   : > { %2271 = vmatpush1.bf16.msra.mxu1 %v10396_v44  ;;  %v8897_v44 = vcombine.high %v2436_v41, %v2440_v42 }
 0x469   : > { %2272 = vmatprep.subr.bf16.mxu1 %v10401_v45  ;;  %v2444_v45 = vld [vmem:[#allocation15 + $0x308] sm:$0xff] }
 0x46c   : > { %2273 = vmatpush1.bf16.msra.mxu1 %v10399_v46  ;;  %v2448_v46 = vld [vmem:[#allocation15 + $0x328] sm:$0xff] }
 0x46d   : > { %2274 = vmatprep.subr.bf16.mxu1 %v10404_v47  ;;  %v8896_v47 = vcombine.low %v2436_v41, %v2440_v42  ;;  %v11998_v41 = vld [vmem:[#allocation15 + $0x38] sm:$0xff] }
 0x470   : > { %2275 = vmatpush1.bf16.msra.mxu1 %v10402_v50  ;;  %v8905_v50 = vcombine.high %v2444_v45, %v2448_v46 }
 0x471   : > { %2276 = vmatprep.subr.bf16.mxu1 %v10407_v25  ;;  %v2456_v25 = vld [vmem:[#allocation15 + $0x368] sm:$0xff] }
 0x474   : > { %2277 = vmatpush1.bf16.msra.mxu1 %v10405_v56  ;;  %v8904_v56 = vcombine.low %v2444_v45, %v2448_v46  ;;  %v8810_v46 = vcombine.low %v11992_v33, %v11994_v34 }
 0x475   : > { %2278 = vmatprep.subr.bf16.mxu1 %v10410_v63  ;;  %v8913_v63 = vcombine.high %v2452_v52, %v2456_v25 }
 0x478   : > { %2279 = vmatpush1.bf16.msra.mxu1 %v10408_v7  ;;  %v8912_v7 = vcombine.low %v2452_v52, %v2456_v25 }
 0x479   : > { %4051 = vmatprep.subr.bf16.mxu1 %v8809_v8  ;;  %v8921_v8 = vcombine.high %v2460_v4, %v2464_v5 }
 0x47b   : > { %2281 = vmatmul.mubr.bf16.vlgmr.msra.gmra.mrb[36].mxu1 %v11896_v24  ;;  %v8832_v24 = vcombine.low %v2372_v16, %v2376_v17  ;;  %v11972_v16 = vld [vmem:[#allocation13] sm:$0xf] }
 0x47c   : > { %2290 = vmatprep.mubr.bf16.mxu1 %v11920_v6  ;;  %4052 = vmatpush1.bf16.msra.mxu1 %v8808_v11  ;;  %v8841_v6 = vcombine.high %v2380_v3, %v2384_v19  ;;  %v8920_v11 = vcombine.low %v2460_v4, %v2464_v5  ;;  %v11976_v17 = vrot.slane %v11972_v16, %v11863_v54 }
 0x47d   : > { %4053 = vmatprep.subr.bf16.mxu1 %v8817_v12  ;;  %v8929_v12 = vcombine.high %v2468_v9, %v2472_v10 }
 0x480   : > { %4054 = vmatpush1.bf16.msra.mxu1 %v8816_v15  ;;  %v8928_v15 = vcombine.low %v2468_v9, %v2472_v10 }
 0x481   : > { %4055 = vmatprep.subr.bf16.mxu1 %v8825_v0  ;;  %v8937_v0 = vcombine.high %v11966_v13, %v11968_v14 }
 0x483   : > { %2291 = vmatmul.mubr.bf16.gmra.mrb[40].mxu1 %v11916_v2  ;;  %v8857_v2 = vcombine.high %v2396_v27, %v2400_v36 }
 0x484   : > { %2300 = vmatprep.mubr.bf16.mxu1 %v11940_v61  ;;  %4056 = vmatpush1.bf16.msra.mxu1 %v8824_v23  ;;  %v2408_v61 = vld [vmem:[#allocation15 + $0x1e8] sm:$0xff]  ;;  %v11980_v23 = vrot.slane %v11972_v16, %v11869_v57 }
 0x485   : > { %4057 = vmatprep.subr.bf16.mxu1 %v8833_v18  ;;  %v8865_v31 = vcombine.high %v2404_v29, %v2408_v61  ;;  %v8864_v32 = vcombine.low %v2404_v29, %v2408_v61 }
 0x488   : > { %4058 = vmatpush1.bf16.msra.mxu1 %v8832_v24 }
 0x489   : > { %4059 = vmatprep.subr.bf16.mxu1 %v8841_v6 }
 0x48b   : > { %2301 = vmatmul.mubr.bf16.gmra.mrb[44].mxu1 %v11936_v60  ;;  %v8872_v60 = vcombine.low %v2412_v59, %v2416_v35  ;;  %v11988_v59 = vld [vmem:[#allocation15 + $0x460] sm:$0xff]  ;;  %v11990_v35 = vld [vmem:[#allocation15 + $0x448] sm:$0xff] }
 0x48c   : > { %4060 = vmatpush1.bf16.msra.mxu1 %v8840_v22 }
 0x48d   : > { %4061 = vmatprep.subr.bf16.mxu1 %v8849_v1 }
 0x490   : > { %4062 = vmatpush1.bf16.msra.mxu1 %v8848_v28 }
 0x491   : > { %4063 = vmatprep.subr.bf16.mxu1 %v8857_v2 }
 0x494   : > { %4064 = vmatpush1.bf16.msra.mxu1 %v8856_v30 }
 0x495   : > { %4065 = vmatprep.subr.bf16.mxu1 %v8865_v31  ;;  %v11986_v31 = vld [vmem:[#allocation15 + $0x440] sm:$0xff] }
 0x496   : > { %v8943_v9 = vcombine.high %v11986_v31, %v11988_v59 }
 0x498   : > { %4066 = vmatpush1.bf16.msra.mxu1 %v8864_v32 }
 0x499   : > { %4067 = vmatprep.subr.bf16.mxu1 %v8873_v26 }
 0x49c   : > { %4068 = vmatpush1.bf16.msra.mxu1 %v8872_v60  ;;  %v11996_v60 = vld [vmem:[#allocation15 + $0x18] sm:$0xff] }
 0x49d   : > { %4069 = vmatprep.subr.bf16.mxu1 %v8881_v37 }
 0x4a0   : > { %4070 = vmatpush1.bf16.msra.mxu1 %v8880_v39 }
 0x4a1   : > { %4071 = vmatprep.subr.bf16.mxu1 %v8889_v40  ;;  %v2488_v40 = vld [vmem:[#allocation15 + $0x468] sm:$0xff] }
 0x4a2   : > { %v8945_v10 = vcombine.high %v11990_v35, %v2488_v40 }
 0x4a4   : > { %4072 = vmatpush1.bf16.msra.mxu1 %v8888_v43 }
 0x4a5   : > { %4073 = vmatprep.subr.bf16.mxu1 %v8897_v44 }
 0x4a8   : > { %4074 = vmatpush1.bf16.msra.mxu1 %v8896_v47  ;;  %v8812_v47 = vcombine.low %v11996_v60, %v11998_v41 }
 0x4a9   : > { %4075 = vmatprep.subr.bf16.mxu1 %v8905_v50 }
 0x4ac   : > { %4076 = vmatpush1.bf16.msra.mxu1 %v8904_v56 }
 0x4ad   : > { %4077 = vmatprep.subr.bf16.mxu1 %v8913_v63  ;;  %v8936_v63 = vcombine.low %v11966_v13, %v11968_v14  ;;  %v2495_v13 = vld [vmem:[#allocation15 + $0x4a0] sm:$0xff]  ;;  %v2492_v14 = vld [vmem:[#allocation15 + $0x488] sm:$0xff] }
 0x4b0   : > { %4078 = vmatpush1.bf16.msra.mxu1 %v8912_v7 }
 0x4b1   : > { %4079 = vmatprep.subr.bf16.mxu1 %v8921_v8 }
 0x4b4   : > { %4080 = vmatpush1.bf16.msra.mxu1 %v8920_v11  ;;  %v12016_v11 = vld [vmem:[#allocation15 + $0x480] sm:$0xff] }
 0x4b5   : > { %4081 = vmatprep.subr.bf16.mxu1 %v8929_v12 }
 0x4b8   : > { %4082 = vmatpush1.bf16.msra.mxu1 %v8928_v15 }
 0x4b9   : > { %4114 = vmatprep.subr.bf16.mxu1 %v8937_v0  ;;  %v2496_v0 = vld [vmem:[#allocation15 + $0x4a8] sm:$0xff] }
 0x4ce   : > { %v2093_v18 = vpop.f32.mrb[24].mxu1  ;;  %v2156_v3 = vpop.f32.mrb[24].mxu0 }
 0x4cf   : > { %v2094_v19 = vadd.f32 %v2093_v18, %v11976_v17  ;;  %v2095_v24 = vpop.f32.mrb[25].mxu1  ;;  %v2158_v6 = vpop.f32.mrb[25].mxu0 }
 0x4d0   : > { %v2096_v20 = vadd.f32 %v2095_v24, %v11980_v23  ;;  %v2097_v21 = vpop.f32.mrb[26].mxu1  ;;  %v2160_v22 = vpop.f32.mrb[26].mxu0 }
 0x4d1   : > { %v2157_v1 = vadd.f32 %v2156_v3, %v2094_v19  ;;  %v2098_v27 = vadd.f32 %v2097_v21, %v11976_v17  ;;  %v2099_v36 = vpop.f32.mrb[27].mxu1  ;;  %v2162_v28 = vpop.f32.mrb[27].mxu0 }
 0x4d2   : > { %v2159_v2 = vadd.f32 %v2158_v6, %v2096_v20  ;;  %v2100_v29 = vadd.f32 %v2099_v36, %v11980_v23  ;;  %v8942_v6 = vcombine.low %v11986_v31, %v11988_v59  ;;  %v8944_v20 = vcombine.low %v11990_v35, %v2488_v40  ;;  %v2503_v36 = vld [vmem:[#allocation15 + $0x4e0] sm:$0xff] }
 0x4d3   : > { %v2161_v61 = vadd.f32 %v2160_v22, %v2098_v27  ;;  %v2311_v32 = vmax.f32 %v2157_v1, 0.0  ;;  %v8951_v22 = vcombine.high %v12016_v11, %v2495_v13  ;;  %v8953_v1 = vcombine.high %v2492_v14, %v2496_v0  ;;  %v2499_v27 = vld [vmem:[#allocation15 + $0x4c0] sm:$0xff] }
 0x4d4   : > { %v2163_v30 = vadd.f32 %v2162_v28, %v2100_v29  ;;  %v2312_v37 = vmax.f32 %v2159_v2, 0.0  ;;  %v8950_v59 = vcombine.low %v12016_v11, %v2495_v13  ;;  %v8952_v35 = vcombine.low %v2492_v14, %v2496_v0  ;;  %v2515_v13 = vld [vmem:[#allocation15 + $0x540] sm:$0xff] }
 0x4d5   : > { %v2315_v26 = vmax.f32 %v2161_v61, 0.0  ;;  %v2500_v61 = vld [vmem:[#allocation15 + $0x4c8] sm:$0xff]  ;;  %v2519_v0 = vld [vmem:[#allocation15 + $0x560] sm:$0xff] }
 0x4d6   : > { %v2316_v38 = vmax.f32 %v2163_v30, 0.0  ;;  %v2103_v62 = vpop.f32.mrb[28].mxu1  ;;  %v2166_v39 = vpop.f32.mrb[28].mxu0 }
 0x4d7   : > { %v12000_v42 = vpack.c.bf16 %v2315_v26, %v2311_v32  ;;  %v2104_v43 = vadd.f32 %v2103_v62, %v11976_v17  ;;  %v2105_v44 = vpop.f32.mrb[29].mxu1  ;;  %v2168_v45 = vpop.f32.mrb[29].mxu0  ;;  %v8959_v62 = vcombine.high %v2499_v27, %v2503_v36 }
 0x4d8   : > { %v12007_v50 = vpack.c.bf16 %v2316_v38, %v2312_v37  ;;  %v2106_v52 = vadd.f32 %v2105_v44, %v11980_v23  ;;  %v2107_v25 = vpop.f32.mrb[30].mxu1  ;;  %v2170_v56 = vpop.f32.mrb[30].mxu0 }
 0x4d9   : > { %v2108_v4 = vadd.f32 %v2107_v25, %v11976_v17  ;;  %v2167_v5 = vadd.f32 %v2166_v39, %v2104_v43  ;;  %v2109_v7 = vpop.f32.mrb[31].mxu1  ;;  %v2172_v8 = vpop.f32.mrb[31].mxu0 }
 0x4da   : > { %3957 = vmatprep.mubr.bf16.mxu0 %v12007_v50  ;;  %4083 = vmatprep.mubr.bf16.mxu1 %v12007_v50  ;;  %v2110_v12 = vadd.f32 %v2109_v7, %v11980_v23  ;;  %v2169_v15 = vadd.f32 %v2168_v45, %v2106_v52  ;;  %v8961_v45 = vcombine.high %v2500_v61, %v2504_v48  ;;  %v2507_v52 = vld [vmem:[#allocation15 + $0x500] sm:$0xff] }
 0x4db   : > { %3958 = vmatmul.mubr.bf16.vlgmr.msra.gmra.mrb[36].mxu0 %v12000_v42  ;;  %4084 = vmatmul.mubr.bf16.vlgmr.msra.gmra.mrb[48].mxu1 %v12000_v42  ;;  %v2319_v18 = vmax.f32 %v2167_v5, 0.0  ;;  %v2171_v3 = vadd.f32 %v2170_v56, %v2108_v4  ;;  %v2508_v4 = vld [vmem:[#allocation15 + $0x508] sm:$0xff] }
 0x4dc   : > { %v2320_v19 = vmax.f32 %v2169_v15, 0.0  ;;  %v2173_v24 = vadd.f32 %v2172_v8, %v2110_v12  ;;  %3989 = vmatpush1.bf16.msra.mxu0 %v8934_v51  ;;  %4115 = vmatpush1.bf16.msra.mxu1 %v8936_v63  ;;  %v2511_v63 = vld [vmem:[#allocation15 + $0x520] sm:$0xff]  ;;  %v2512_v5 = vld [vmem:[#allocation15 + $0x528] sm:$0xff] }
 0x4dd   : > { %v2323_v21 = vmax.f32 %v2171_v3, 0.0  ;;  %3990 = vmatprep.subr.bf16.mxu0 %v8943_v9  ;;  %4116 = vmatprep.subr.bf16.mxu1 %v8945_v10  ;;  %v8958_v10 = vcombine.low %v2499_v27, %v2503_v36  ;;  %v8967_v12 = vcombine.high %v2507_v52, %v2511_v63  ;;  %v8969_v15 = vcombine.high %v2508_v4, %v2512_v5  ;;  %v2520_v3 = vld [vmem:[#allocation15 + $0x568] sm:$0xff]  ;;  %v2527_v27 = vld [vmem:[#allocation15 + $0x5a0] sm:$0xff] }
 0x4de   : > { %v2324_v28 = vmax.f32 %v2173_v24, 0.0  ;;  %v2113_v2 = vpop.f32.mrb[32].mxu1  ;;  %v2176_v29 = vpop.f32.mrb[32].mxu0  ;;  %v2524_v36 = vld [vmem:[#allocation15 + $0x588] sm:$0xff] }
 0x4df   : > { %v12030_v49 = vpack.c.bf16 %v2323_v21, %v2319_v18  ;;  %v2114_v51 = vadd.f32 %v2113_v2, %v11976_v17  ;;  %v2115_v30 = vpop.f32.mrb[33].mxu1  ;;  %v2178_v31 = vpop.f32.mrb[33].mxu0  ;;  %v2516_v18 = vld [vmem:[#allocation15 + $0x548] sm:$0xff]  ;;  %v8975_v21 = vcombine.high %v2515_v13, %v2519_v0  ;;  %v8974_v2 = vcombine.low %v2515_v13, %v2519_v0 }
 0x4e0   : > { %v12034_v32 = vpack.c.bf16 %v2324_v28, %v2320_v19  ;;  %v2116_v26 = vadd.f32 %v2115_v30, %v11980_v23  ;;  %v2117_v37 = vpop.f32.mrb[34].mxu1  ;;  %v2180_v38 = vpop.f32.mrb[34].mxu0  ;;  %3991 = vmatpush1.bf16.msra.mxu0 %v8942_v6  ;;  %4117 = vmatpush1.bf16.msra.mxu1 %v8944_v20  ;;  %v8966_v6 = vcombine.low %v2507_v52, %v2511_v63  ;;  %v2528_v28 = vld [vmem:[#allocation15 + $0x5a8] sm:$0xff]  ;;  %v2535_v30 = vld [vmem:[#allocation15 + $0x5e0] sm:$0xff] }
 0x4e1   : > { %v2118_v39 = vadd.f32 %v2117_v37, %v11976_v17  ;;  %v2177_v40 = vadd.f32 %v2176_v29, %v2114_v51  ;;  %v2119_v43 = vpop.f32.mrb[35].mxu1  ;;  %v2182_v44 = vpop.f32.mrb[35].mxu0  ;;  %3992 = vmatprep.subr.bf16.mxu0 %v8951_v22  ;;  %4118 = vmatprep.subr.bf16.mxu1 %v8953_v1  ;;  %v8968_v20 = vcombine.low %v2508_v4, %v2512_v5  ;;  %v2523_v1 = vld [vmem:[#allocation15 + $0x580] sm:$0xff]  ;;  %v2548_v4 = vld [vmem:[#allocation15 + $0x648] sm:$0xff] }
 0x4e2   : > { %v2120_v25 = vadd.f32 %v2119_v43, %v11980_v23  ;;  %v2179_v56 = vadd.f32 %v2178_v31, %v2116_v26  ;;  %3967 = vmatprep.mubr.bf16.mxu0 %v12034_v32  ;;  %4093 = vmatprep.mubr.bf16.mxu1 %v12034_v32  ;;  %v8960_v23 = vcombine.low %v2500_v61, %v2504_v48  ;;  %v2531_v51 = vld [vmem:[#allocation15 + $0x5c0] sm:$0xff]  ;;  %v2532_v31 = vld [vmem:[#allocation15 + $0x5c8] sm:$0xff] }
 0x4e3   : > { %v2327_v7 = vmax.f32 %v2177_v40, 0.0  ;;  %v2181_v8 = vadd.f32 %v2180_v38, %v2118_v39  ;;  %3968 = vmatmul.mubr.bf16.gmra.mrb[40].mxu0 %v12030_v49  ;;  %4094 = vmatmul.mubr.bf16.gmra.mrb[52].mxu1 %v12030_v49  ;;  %v8977_v22 = vcombine.high %v2516_v18, %v2520_v3  ;;  %v8976_v29 = vcombine.low %v2516_v18, %v2520_v3  ;;  %v2543_v39 = vld [vmem:[#allocation15 + $0x620] sm:$0xff]  ;;  %v2540_v40 = vld [vmem:[#allocation15 + $0x608] sm:$0xff] }
 0x4e4   : > { %v2328_v17 = vmax.f32 %v2179_v56, 0.0  ;;  %v2183_v9 = vadd.f32 %v2182_v44, %v2120_v25  ;;  %3993 = vmatpush1.bf16.msra.mxu0 %v8950_v59  ;;  %4119 = vmatpush1.bf16.msra.mxu1 %v8952_v35  ;;  %v8983_v61 = vcombine.high %v2523_v1, %v2527_v27  ;;  %v8985_v48 = vcombine.high %v2524_v36, %v2528_v28  ;;  %v2536_v59 = vld [vmem:[#allocation15 + $0x5e8] sm:$0xff]  ;;  %v2547_v56 = vld [vmem:[#allocation15 + $0x640] sm:$0xff] }
 0x4e5   : > { %v2331_v11 = vmax.f32 %v2181_v8, 0.0  ;;  %3994 = vmatprep.subr.bf16.mxu0 %v8959_v62  ;;  %4120 = vmatprep.subr.bf16.mxu1 %v8961_v45  ;;  %v8982_v35 = vcombine.low %v2523_v1, %v2527_v27  ;;  %v8984_v26 = vcombine.low %v2524_v36, %v2528_v28  ;;  %v8991_v37 = vcombine.high %v2531_v51, %v2535_v30  ;;  %v2539_v62 = vld [vmem:[#allocation15 + $0x600] sm:$0xff]  ;;  %v2544_v43 = vld [vmem:[#allocation15 + $0x628] sm:$0xff] }
 0x4e6   : > { %v2332_v14 = vmax.f32 %v2183_v9, 0.0  ;;  %v8993_v38 = vcombine.high %v2532_v31, %v2536_v59  ;;  %v8990_v44 = vcombine.low %v2531_v51, %v2535_v30  ;;  %v8992_v45 = vcombine.low %v2532_v31, %v2536_v59  ;;  %v2551_v63 = vld [vmem:[#allocation15 + $0x660] sm:$0xff]  ;;  %v2552_v5 = vld [vmem:[#allocation15 + $0x668] sm:$0xff] }
 0x4e7   : > { %v12043_v19 = vpack.c.bf16 %v2331_v11, %v2327_v7  ;;  %v8999_v52 = vcombine.high %v2539_v62, %v2543_v39  ;;  %v9001_v25 = vcombine.high %v2540_v40, %v2544_v43  ;;  %v8998_v7 = vcombine.low %v2539_v62, %v2543_v39  ;;  %v2556_v11 = vld [vmem:[#allocation15 + $0x688] sm:$0xff]  ;;  %v2563_v18 = vld [vmem:[#allocation15 + $0x6c0] sm:$0xff] }
 0x4e8   : > { %v12045_v24 = vpack.c.bf16 %v2332_v14, %v2328_v17  ;;  %3995 = vmatpush1.bf16.msra.mxu0 %v8958_v10  ;;  %4121 = vmatpush1.bf16.msra.mxu1 %v8960_v23  ;;  %v9000_v8 = vcombine.low %v2540_v40, %v2544_v43  ;;  %v9007_v17 = vcombine.high %v2547_v56, %v2551_v63  ;;  %v2555_v10 = vld [vmem:[#allocation15 + $0x680] sm:$0xff] }
 0x4e9   : > { %3996 = vmatprep.subr.bf16.mxu0 %v8967_v12  ;;  %4122 = vmatprep.subr.bf16.mxu1 %v8969_v15  ;;  %v9009_v9 = vcombine.high %v2548_v4, %v2552_v5  ;;  %v2559_v23 = vld [vmem:[#allocation15 + $0x6a0] sm:$0xff]  ;;  %v2560_v12 = vld [vmem:[#allocation15 + $0x6a8] sm:$0xff]  ;;  %v9006_v15 = vcombine.low %v2547_v56, %v2551_v63  ;;  %v9008_v13 = vcombine.low %v2548_v4, %v2552_v5 }
 0x4ea   : > { %3977 = vmatprep.mubr.bf16.mxu0 %v12045_v24  ;;  %4103 = vmatprep.mubr.bf16.mxu1 %v12045_v24  ;;  %v9015_v14 = vcombine.high %v2555_v10, %v2559_v23  ;;  %v9017_v0 = vcombine.high %v2556_v11, %v2560_v12  ;;  %v2567_v3 = vld [vmem:[#allocation15 + $0x6e0] sm:$0xff] }
 0x4eb   : > { %3978 = vmatmul.mubr.bf16.gmra.mrb[44].mxu0 %v12043_v19  ;;  %4104 = vmatmul.mubr.bf16.gmra.mrb[56].mxu1 %v12043_v19  ;;  %v9023_v1 = vcombine.high %v2563_v18, %v2567_v3  ;;  %v2571_v36 = vld [vmem:[#allocation15 + $0x700] sm:$0xff] }
 0x4ec   : > { %3997 = vmatpush1.bf16.msra.mxu0 %v8966_v6  ;;  %4123 = vmatpush1.bf16.msra.mxu1 %v8968_v20  ;;  %v2564_v6 = vld [vmem:[#allocation15 + $0x6c8] sm:$0xff]  ;;  %v2575_v28 = vld [vmem:[#allocation15 + $0x720] sm:$0xff] }
 0x4ed   : > { %3998 = vmatprep.subr.bf16.mxu0 %v8975_v21  ;;  %4124 = vmatprep.subr.bf16.mxu1 %v8977_v22  ;;  %v2568_v20 = vld [vmem:[#allocation15 + $0x6e8] sm:$0xff]  ;;  %v9014_v21 = vcombine.low %v2555_v10, %v2559_v23  ;;  %v9016_v22 = vcombine.low %v2556_v11, %v2560_v12  ;;  %v9031_v51 = vcombine.high %v2571_v36, %v2575_v28  ;;  %v2579_v31 = vld [vmem:[#allocation15 + $0x740] sm:$0xff] }
 0x4ee   : > { %v9025_v27 = vcombine.high %v2564_v6, %v2568_v20  ;;  %v2583_v59 = vld [vmem:[#allocation15 + $0x760] sm:$0xff] }
 0x4ef   : > { %v9039_v62 = vcombine.high %v2579_v31, %v2583_v59  ;;  %v2587_v40 = vld [vmem:[#allocation15 + $0x780] sm:$0xff] }
 0x4f0   : > { %3999 = vmatpush1.bf16.msra.mxu0 %v8974_v2  ;;  %4125 = vmatpush1.bf16.msra.mxu1 %v8976_v29  ;;  %v2572_v2 = vld [vmem:[#allocation15 + $0x708] sm:$0xff]  ;;  %v2591_v43 = vld [vmem:[#allocation15 + $0x7a0] sm:$0xff] }
 0x4f1   : > { %4000 = vmatprep.subr.bf16.mxu0 %v8983_v61  ;;  %4126 = vmatprep.subr.bf16.mxu1 %v8985_v48  ;;  %v2576_v29 = vld [vmem:[#allocation15 + $0x728] sm:$0xff]  ;;  %v9022_v61 = vcombine.low %v2563_v18, %v2567_v3  ;;  %v9024_v48 = vcombine.low %v2564_v6, %v2568_v20  ;;  %v9047_v56 = vcombine.high %v2587_v40, %v2591_v43  ;;  %v2595_v4 = vld [vmem:[#allocation15 + $0x7c0] sm:$0xff] }
 0x4f2   : > { %v9033_v30 = vcombine.high %v2572_v2, %v2576_v29  ;;  %v2599_v5 = vld [vmem:[#allocation15 + $0x7e0] sm:$0xff] }
 0x4f3   : > { %v9055_v10 = vcombine.high %v2595_v4, %v2599_v5  ;;  %v9054_v11 = vcombine.low %v2595_v4, %v2599_v5 }
 0x4f4   : > { %4001 = vmatpush1.bf16.msra.mxu0 %v8982_v35  ;;  %4127 = vmatpush1.bf16.msra.mxu1 %v8984_v26  ;;  %v2580_v35 = vld [vmem:[#allocation15 + $0x748] sm:$0xff] }
 0x4f5   : > { %4002 = vmatprep.subr.bf16.mxu0 %v8991_v37  ;;  %4128 = vmatprep.subr.bf16.mxu1 %v8993_v38  ;;  %v2584_v26 = vld [vmem:[#allocation15 + $0x768] sm:$0xff]  ;;  %v9030_v37 = vcombine.low %v2571_v36, %v2575_v28  ;;  %v9032_v38 = vcombine.low %v2572_v2, %v2576_v29  ;;  %v2357_v2 = vld [vmem:[#allocation15 + $0x50] sm:$0xff] }
 0x4f6   : > { %v9041_v39 = vcombine.high %v2580_v35, %v2584_v26 }
 0x4f8   : > { %4003 = vmatpush1.bf16.msra.mxu0 %v8990_v44  ;;  %4129 = vmatpush1.bf16.msra.mxu1 %v8992_v45  ;;  %v2588_v44 = vld [vmem:[#allocation15 + $0x788] sm:$0xff] }
 0x4f9   : > { %4004 = vmatprep.subr.bf16.mxu0 %v8999_v52  ;;  %4130 = vmatprep.subr.bf16.mxu1 %v9001_v25  ;;  %v2592_v45 = vld [vmem:[#allocation15 + $0x7a8] sm:$0xff]  ;;  %v9038_v52 = vcombine.low %v2579_v31, %v2583_v59  ;;  %v9040_v25 = vcombine.low %v2580_v35, %v2584_v26 }
 0x4fa   : > { %v9049_v63 = vcombine.high %v2588_v44, %v2592_v45 }
 0x4fc   : > { %4005 = vmatpush1.bf16.msra.mxu0 %v8998_v7  ;;  %4131 = vmatpush1.bf16.msra.mxu1 %v9000_v8  ;;  %v2596_v7 = vld [vmem:[#allocation15 + $0x7c8] sm:$0xff] }
 0x4fd   : > { %4006 = vmatprep.subr.bf16.mxu0 %v9007_v17  ;;  %4132 = vmatprep.subr.bf16.mxu1 %v9009_v9  ;;  %v2600_v8 = vld [vmem:[#allocation15 + $0x7e8] sm:$0xff]  ;;  %v9046_v17 = vcombine.low %v2587_v40, %v2591_v43  ;;  %v9048_v9 = vcombine.low %v2588_v44, %v2592_v45  ;;  %v2369_v43 = vld [vmem:[#allocation15 + $0xb0] sm:$0xff]  ;;  %v2366_v44 = vld [vmem:[#allocation15 + $0x98] sm:$0xff] }
 0x4fe   : > { %v9057_v23 = vcombine.high %v2596_v7, %v2600_v8  ;;  %v9056_v12 = vcombine.low %v2596_v7, %v2600_v8  ;;  %v2370_v45 = vld [vmem:[#allocation15 + $0xb8] sm:$0xff] }
 0x500   : > { %4007 = vmatpush1.bf16.msra.mxu0 %v9006_v15  ;;  %4133 = vmatpush1.bf16.msra.mxu1 %v9008_v13  ;;  %v8811_v15 = vcombine.high %v11992_v33, %v11994_v34  ;;  %v8813_v13 = vcombine.high %v11996_v60, %v11998_v41 }
 0x501   : > { %4008 = vmatprep.subr.bf16.mxu0 %v9015_v14  ;;  %4134 = vmatprep.subr.bf16.mxu1 %v9017_v0  ;;  %v12057_v14 = vrot.slane %v11972_v16, %v11866_v55  ;;  %v12061_v0 = vrot.slane %v11972_v16, %v11872_v58  ;;  %v2358_v16 = vld [vmem:[#allocation15 + $0x58] sm:$0xff] }
 0x504   : > { %4009 = vmatpush1.bf16.msra.mxu0 %v9014_v21  ;;  %4135 = vmatpush1.bf16.msra.mxu1 %v9016_v22 }
 0x505   : > { %4010 = vmatprep.subr.bf16.mxu0 %v9023_v1  ;;  %4136 = vmatprep.subr.bf16.mxu1 %v9025_v27 }
 0x508   : > { %4011 = vmatpush1.bf16.msra.mxu0 %v9022_v61  ;;  %4137 = vmatpush1.bf16.msra.mxu1 %v9024_v48  ;;  %v2361_v48 = vld [vmem:[#allocation15 + $0x70] sm:$0xff] }
 0x509   : > { %4012 = vmatprep.subr.bf16.mxu0 %v9031_v51  ;;  %4138 = vmatprep.subr.bf16.mxu1 %v9033_v30  ;;  %v2362_v51 = vld [vmem:[#allocation15 + $0x78] sm:$0xff] }
 0x50a   : > { %v8820_v4 = vcombine.low %v2358_v16, %v2362_v51 }
 0x50c   : > { %4013 = vmatpush1.bf16.msra.mxu0 %v9030_v37  ;;  %4139 = vmatpush1.bf16.msra.mxu1 %v9032_v38  ;;  %v8819_v37 = vcombine.high %v2357_v2, %v2361_v48  ;;  %v8821_v38 = vcombine.high %v2358_v16, %v2362_v51 }
 0x50d   : > { %4014 = vmatprep.subr.bf16.mxu0 %v9039_v62  ;;  %4140 = vmatprep.subr.bf16.mxu1 %v9041_v39  ;;  %v2365_v62 = vld [vmem:[#allocation15 + $0x90] sm:$0xff] }
 0x50e   : > { %v8827_v8 = vcombine.high %v2365_v62, %v2369_v43  ;;  %v8826_v41 = vcombine.low %v2365_v62, %v2369_v43  ;;  %v2390_v62 = vld [vmem:[#allocation15 + $0x158] sm:$0xff] }
 0x510   : > { %4015 = vmatpush1.bf16.msra.mxu0 %v9038_v52  ;;  %4141 = vmatpush1.bf16.msra.mxu1 %v9040_v25 }
 0x511   : > { %4016 = vmatprep.subr.bf16.mxu0 %v9047_v56  ;;  %4142 = vmatprep.subr.bf16.mxu1 %v9049_v63  ;;  %v8818_v63 = vcombine.low %v2357_v2, %v2361_v48 }
 0x514   : > { %4017 = vmatpush1.bf16.msra.mxu0 %v9046_v17  ;;  %4143 = vmatpush1.bf16.msra.mxu1 %v9048_v9  ;;  %v8829_v17 = vcombine.high %v2366_v44, %v2370_v45  ;;  %v2373_v9 = vld [vmem:[#allocation15 + $0xd0] sm:$0xff] }
 0x515   : > { %4018 = vmatprep.subr.bf16.mxu0 %v9055_v10  ;;  %4144 = vmatprep.subr.bf16.mxu1 %v9057_v23 }
 0x518   : > { %4019 = vmatpush1.bf16.msra.mxu0 %v9054_v11  ;;  %4145 = vmatpush1.bf16.msra.mxu1 %v9056_v12  ;;  %v2377_v11 = vld [vmem:[#allocation15 + $0xf0] sm:$0xff]  ;;  %v2374_v12 = vld [vmem:[#allocation15 + $0xd8] sm:$0xff] }
 0x519   : > { %4177 = vmatprep.subr.bf16.mxu0 %v8811_v15  ;;  %4303 = vmatprep.subr.bf16.mxu1 %v8813_v13  ;;  %v2378_v15 = vld [vmem:[#allocation15 + $0xf8] sm:$0xff] }
 0x54e   : > { %v2282_v18 = vpop.f32.mrb[36].mxu1 }
 0x54f   : > { %v9750_v3 = vadd.f32 %v2282_v18, %v12057_v14  ;;  %v2284_v6 = vpop.f32.mrb[37].mxu1  ;;  %v8835_v18 = vcombine.high %v2373_v9, %v2377_v11 }
 0x550   : > { %v9751_v20 = vadd.f32 %v2284_v6, %v12061_v0  ;;  %v2286_v21 = vpop.f32.mrb[38].mxu1  ;;  %v2381_v6 = vld [vmem:[#allocation15 + $0x110] sm:$0xff] }
 0x551   : > { %v9752_v22 = vadd.f32 %v2286_v21, %v12057_v14  ;;  %v2288_v1 = vpop.f32.mrb[39].mxu1  ;;  %v2313_v36 = vmax.f32 %v9750_v3, 0.0  ;;  %v8837_v3 = vcombine.high %v2374_v12, %v2378_v15 }
 0x552   : > { %v9753_v27 = vadd.f32 %v2288_v1, %v12061_v0  ;;  %v2314_v29 = vmax.f32 %v9751_v20, 0.0  ;;  %v2382_v1 = vld [vmem:[#allocation15 + $0x118] sm:$0xff] }
 0x553   : > { %v2317_v28 = vmax.f32 %v9752_v22, 0.0  ;;  %v2385_v22 = vld [vmem:[#allocation15 + $0x130] sm:$0xff] }
 0x554   : > { %v2318_v61 = vmax.f32 %v9753_v27, 0.0  ;;  %v2386_v27 = vld [vmem:[#allocation15 + $0x138] sm:$0xff]  ;;  %v8843_v51 = vcombine.high %v2381_v6, %v2385_v22 }
 0x555   : > { %v12067_v30 = vpack.c.bf16 %v2317_v28, %v2313_v36  ;;  %v8844_v43 = vcombine.low %v2382_v1, %v2386_v27 }
 0x556   : > { %v12069_v31 = vpack.c.bf16 %v2318_v61, %v2314_v29  ;;  %v2292_v59 = vpop.f32.mrb[40].mxu1  ;;  %v8834_v29 = vcombine.low %v2373_v9, %v2377_v11  ;;  %v8836_v61 = vcombine.low %v2374_v12, %v2378_v15  ;;  %v2409_v9 = vld [vmem:[#allocation15 + $0x1f0] sm:$0xff] }
 0x557   : > { %v9754_v35 = vadd.f32 %v2292_v59, %v12057_v14  ;;  %v2294_v26 = vpop.f32.mrb[41].mxu1  ;;  %v8845_v59 = vcombine.high %v2382_v1, %v2386_v27  ;;  %v2426_v1 = vld [vmem:[#allocation15 + $0x278] sm:$0xff] }
 0x558   : > { %v9755_v39 = vadd.f32 %v2294_v26, %v12061_v0  ;;  %v2296_v40 = vpop.f32.mrb[42].mxu1  ;;  %4020 = vmatprep.mubr.bf16.mxu0 %v12069_v31  ;;  %4146 = vmatprep.mubr.bf16.mxu1 %v12069_v31 }
 0x559   : > { %v9756_v52 = vadd.f32 %v2296_v40, %v12057_v14  ;;  %v2298_v25 = vpop.f32.mrb[43].mxu1  ;;  %4021 = vmatmul.mubr.bf16.vlgmr.msra.gmra.mrb[36].mxu0 %v12067_v30  ;;  %4147 = vmatmul.mubr.bf16.vlgmr.msra.gmra.mrb[48].mxu1 %v12067_v30  ;;  %v2321_v5 = vmax.f32 %v9754_v35, 0.0 }
 0x55a   : > { %v9757_v56 = vadd.f32 %v2298_v25, %v12061_v0  ;;  %4178 = vmatpush1.bf16.msra.mxu0 %v8810_v46  ;;  %4304 = vmatpush1.bf16.msra.mxu1 %v8812_v47  ;;  %v2322_v10 = vmax.f32 %v9755_v39, 0.0  ;;  %v8828_v46 = vcombine.low %v2366_v44, %v2370_v45  ;;  %v2394_v39 = vld [vmem:[#allocation15 + $0x178] sm:$0xff]  ;;  %v2397_v44 = vld [vmem:[#allocation15 + $0x190] sm:$0xff] }
 0x55b   : > { %v2325_v7 = vmax.f32 %v9756_v52, 0.0  ;;  %4179 = vmatprep.subr.bf16.mxu0 %v8819_v37  ;;  %4305 = vmatprep.subr.bf16.mxu1 %v8821_v38  ;;  %v2393_v38 = vld [vmem:[#allocation15 + $0x170] sm:$0xff]  ;;  %v8853_v52 = vcombine.high %v2390_v62, %v2394_v39 }
 0x55c   : > { %v2326_v23 = vmax.f32 %v9757_v56, 0.0  ;;  %v2401_v25 = vld [vmem:[#allocation15 + $0x1b0] sm:$0xff]  ;;  %v2398_v56 = vld [vmem:[#allocation15 + $0x198] sm:$0xff] }
 0x55d   : > { %v12085_v33 = vpack.c.bf16 %v2325_v7, %v2321_v5  ;;  %v8852_v5 = vcombine.low %v2390_v62, %v2394_v39  ;;  %v8859_v7 = vcombine.high %v2397_v44, %v2401_v25  ;;  %v8858_v11 = vcombine.low %v2397_v44, %v2401_v25  ;;  %v2438_v62 = vld [vmem:[#allocation15 + $0x2d8] sm:$0xff]  ;;  %v2449_v25 = vld [vmem:[#allocation15 + $0x330] sm:$0xff] }
 0x55e   : > { %v12087_v34 = vpack.c.bf16 %v2326_v23, %v2322_v10  ;;  %4180 = vmatpush1.bf16.msra.mxu0 %v8818_v63  ;;  %4306 = vmatpush1.bf16.msra.mxu1 %v8820_v4  ;;  %v2302_v60 = vpop.f32.mrb[44].mxu1  ;;  %v2402_v63 = vld [vmem:[#allocation15 + $0x1b8] sm:$0xff] }
 0x55f   : > { %v9758_v47 = vadd.f32 %v2302_v60, %v12057_v14  ;;  %v2304_v13 = vpop.f32.mrb[45].mxu1  ;;  %4181 = vmatprep.subr.bf16.mxu0 %v8827_v8  ;;  %4307 = vmatprep.subr.bf16.mxu1 %v8829_v17  ;;  %v8861_v8 = vcombine.high %v2398_v56, %v2402_v63  ;;  %v2405_v17 = vld [vmem:[#allocation15 + $0x1d0] sm:$0xff]  ;;  %v2406_v10 = vld [vmem:[#allocation15 + $0x1d8] sm:$0xff]  ;;  %v8860_v12 = vcombine.low %v2398_v56, %v2402_v63 }
 0x560   : > { %v9759_v20 = vadd.f32 %v2304_v13, %v12061_v0  ;;  %v2306_v21 = vpop.f32.mrb[46].mxu1  ;;  %4030 = vmatprep.mubr.bf16.mxu0 %v12087_v34  ;;  %4156 = vmatprep.mubr.bf16.mxu1 %v12087_v34  ;;  %v2410_v23 = vld [vmem:[#allocation15 + $0x1f8] sm:$0xff]  ;;  %v8867_v15 = vcombine.high %v2405_v17, %v2409_v9  ;;  %v8866_v13 = vcombine.low %v2405_v17, %v2409_v9  ;;  %v2453_v17 = vld [vmem:[#allocation15 + $0x350] sm:$0xff] }
 0x561   : > { %v9760_v36 = vadd.f32 %v2306_v21, %v12057_v14  ;;  %v2308_v28 = vpop.f32.mrb[47].mxu1  ;;  %4031 = vmatmul.mubr.bf16.gmra.mrb[40].mxu0 %v12085_v33  ;;  %4157 = vmatmul.mubr.bf16.gmra.mrb[52].mxu1 %v12085_v33  ;;  %v2329_v48 = vmax.f32 %v9758_v47, 0.0  ;;  %v2389_v14 = vld [vmem:[#allocation15 + $0x150] sm:$0xff]  ;;  %v8869_v60 = vcombine.high %v2406_v10, %v2410_v23  ;;  %v2414_v47 = vld [vmem:[#allocation15 + $0x218] sm:$0xff] }
 0x562   : > { %v9761_v2 = vadd.f32 %v2308_v28, %v12061_v0  ;;  %4182 = vmatpush1.bf16.msra.mxu0 %v8826_v41  ;;  %4308 = vmatpush1.bf16.msra.mxu1 %v8828_v46  ;;  %v2330_v35 = vmax.f32 %v9759_v20, 0.0  ;;  %v8842_v0 = vcombine.low %v2381_v6, %v2385_v22  ;;  %v8851_v45 = vcombine.high %v2389_v14, %v2393_v38  ;;  %v2413_v41 = vld [vmem:[#allocation15 + $0x210] sm:$0xff]  ;;  %v2422_v22 = vld [vmem:[#allocation15 + $0x258] sm:$0xff] }
 0x563   : > { %v2333_v16 = vmax.f32 %v9760_v36, 0.0  ;;  %4183 = vmatprep.subr.bf16.mxu0 %v8835_v18  ;;  %4309 = vmatprep.subr.bf16.mxu1 %v8837_v3  ;;  %v8850_v4 = vcombine.low %v2389_v14, %v2393_v38  ;;  %v2417_v46 = vld [vmem:[#allocation15 + $0x230] sm:$0xff]  ;;  %v8868_v18 = vcombine.low %v2406_v10, %v2410_v23  ;;  %v2442_v39 = vld [vmem:[#allocation15 + $0x2f8] sm:$0xff] }
 0x564   : > { %v2334_v26 = vmax.f32 %v9761_v2, 0.0  ;;  %v8875_v3 = vcombine.high %v2413_v41, %v2417_v46  ;;  %v2421_v20 = vld [vmem:[#allocation15 + $0x250] sm:$0xff]  ;;  %v8874_v27 = vcombine.low %v2413_v41, %v2417_v46  ;;  %v8885_v2 = vcombine.high %v2422_v22, %v2426_v1  ;;  %v2446_v56 = vld [vmem:[#allocation15 + $0x318] sm:$0xff] }
 0x565   : > { %v12097_v37 = vpack.c.bf16 %v2333_v16, %v2329_v48  ;;  %v2425_v21 = vld [vmem:[#allocation15 + $0x270] sm:$0xff]  ;;  %v2430_v48 = vld [vmem:[#allocation15 + $0x298] sm:$0xff] }
 0x566   : > { %v12099_v40 = vpack.c.bf16 %v2334_v26, %v2330_v35  ;;  %4184 = vmatpush1.bf16.msra.mxu0 %v8834_v29  ;;  %4310 = vmatpush1.bf16.msra.mxu1 %v8836_v61  ;;  %v8883_v28 = vcombine.high %v2421_v20, %v2425_v21  ;;  %v2429_v29 = vld [vmem:[#allocation15 + $0x290] sm:$0xff]  ;;  %v2434_v16 = vld [vmem:[#allocation15 + $0x2b8] sm:$0xff] }
 0x567   : > { %4185 = vmatprep.subr.bf16.mxu0 %v8843_v51  ;;  %4311 = vmatprep.subr.bf16.mxu1 %v8845_v59  ;;  %v2433_v61 = vld [vmem:[#allocation15 + $0x2b0] sm:$0xff]  ;;  %v8882_v51 = vcombine.low %v2421_v20, %v2425_v21  ;;  %v8884_v59 = vcombine.low %v2422_v22, %v2426_v1  ;;  %v8893_v26 = vcombine.high %v2430_v48, %v2434_v16  ;;  %v2450_v63 = vld [vmem:[#allocation15 + $0x338] sm:$0xff] }
 0x568   : > { %4040 = vmatprep.mubr.bf16.mxu0 %v12099_v40  ;;  %4166 = vmatprep.mubr.bf16.mxu1 %v12099_v40  ;;  %v8891_v35 = vcombine.high %v2429_v29, %v2433_v61  ;;  %v2437_v14 = vld [vmem:[#allocation15 + $0x2d0] sm:$0xff]  ;;  %v2454_v10 = vld [vmem:[#allocation15 + $0x358] sm:$0xff] }
 0x569   : > { %4041 = vmatmul.mubr.bf16.gmra.mrb[44].mxu0 %v12097_v37  ;;  %4167 = vmatmul.mubr.bf16.gmra.mrb[56].mxu1 %v12097_v37  ;;  %v2441_v38 = vld [vmem:[#allocation15 + $0x2f0] sm:$0xff]  ;;  %v2458_v23 = vld [vmem:[#allocation15 + $0x378] sm:$0xff] }
 0x56a   : > { %4186 = vmatpush1.bf16.msra.mxu0 %v8842_v0  ;;  %4312 = vmatpush1.bf16.msra.mxu1 %v8844_v43  ;;  %v8890_v0 = vcombine.low %v2429_v29, %v2433_v61  ;;  %v8892_v43 = vcombine.low %v2430_v48, %v2434_v16  ;;  %v8899_v44 = vcombine.high %v2437_v14, %v2441_v38  ;;  %v2457_v9 = vld [vmem:[#allocation15 + $0x370] sm:$0xff]  ;;  %v2470_v22 = vld [vmem:[#allocation15 + $0x3d8] sm:$0xff] }
 0x56b   : > { %4209 = vmatprep.mubr.bf16.mxu0 %v12007_v50  ;;  %4335 = vmatprep.mubr.bf16.mxu1 %v12007_v50  ;;  %v2418_v50 = vld [vmem:[#allocation15 + $0x238] sm:$0xff]  ;;  %v2461_v41 = vld [vmem:[#allocation15 + $0x390] sm:$0xff] }
 0x56c   : > { %4187 = vmatprep.subr.bf16.mxu0 %v8851_v45  ;;  %4313 = vmatprep.subr.bf16.mxu1 %v8853_v52  ;;  %v8877_v6 = vcombine.high %v2414_v47, %v2418_v50  ;;  %v8876_v36 = vcombine.low %v2414_v47, %v2418_v50  ;;  %v8901_v45 = vcombine.high %v2438_v62, %v2442_v39  ;;  %v2445_v52 = vld [vmem:[#allocation15 + $0x310] sm:$0xff]  ;;  %v2462_v47 = vld [vmem:[#allocation15 + $0x398] sm:$0xff] }
 0x56d   : > { %v2465_v46 = vld [vmem:[#allocation15 + $0x3b0] sm:$0xff]  ;;  %v2466_v50 = vld [vmem:[#allocation15 + $0x3b8] sm:$0xff] }
 0x56e   : > { %4188 = vmatpush1.bf16.msra.mxu0 %v8850_v4  ;;  %4314 = vmatpush1.bf16.msra.mxu1 %v8852_v5  ;;  %v8898_v4 = vcombine.low %v2437_v14, %v2441_v38  ;;  %v8900_v5 = vcombine.low %v2438_v62, %v2442_v39  ;;  %v2469_v20 = vld [vmem:[#allocation15 + $0x3d0] sm:$0xff]  ;;  %v2474_v1 = vld [vmem:[#allocation15 + $0x3f8] sm:$0xff] }
 0x56f   : > { %4189 = vmatprep.subr.bf16.mxu0 %v8859_v7  ;;  %4315 = vmatprep.subr.bf16.mxu1 %v8861_v8  ;;  %v8907_v7 = vcombine.high %v2445_v52, %v2449_v25  ;;  %v8909_v8 = vcombine.high %v2446_v56, %v2450_v63  ;;  %v2473_v21 = vld [vmem:[#allocation15 + $0x3f0] sm:$0xff]  ;;  %v2478_v48 = vld [vmem:[#allocation15 + $0x418] sm:$0xff] }
 0x570   : > { %v2477_v29 = vld [vmem:[#allocation15 + $0x410] sm:$0xff]  ;;  %v2482_v16 = vld [vmem:[#allocation15 + $0x438] sm:$0xff] }
 0x571   : > { %v2481_v61 = vld [vmem:[#allocation15 + $0x430] sm:$0xff]  ;;  %v2486_v62 = vld [vmem:[#allocation15 + $0x458] sm:$0xff] }
 0x572   : > { %4190 = vmatpush1.bf16.msra.mxu0 %v8858_v11  ;;  %4316 = vmatpush1.bf16.msra.mxu1 %v8860_v12  ;;  %v8906_v11 = vcombine.low %v2445_v52, %v2449_v25  ;;  %v8908_v12 = vcombine.low %v2446_v56, %v2450_v63  ;;  %v2485_v14 = vld [vmem:[#allocation15 + $0x450] sm:$0xff]  ;;  %v2490_v39 = vld [vmem:[#allocation15 + $0x478] sm:$0xff] }
 0x573   : > { %4191 = vmatprep.subr.bf16.mxu0 %v8867_v15  ;;  %4317 = vmatprep.subr.bf16.mxu1 %v8869_v60  ;;  %v8915_v15 = vcombine.high %v2453_v17, %v2457_v9  ;;  %v8917_v60 = vcombine.high %v2454_v10, %v2458_v23  ;;  %v2489_v38 = vld [vmem:[#allocation15 + $0x470] sm:$0xff]  ;;  %v2494_v56 = vld [vmem:[#allocation15 + $0x498] sm:$0xff] }
 0x574   : > { %v2493_v52 = vld [vmem:[#allocation15 + $0x490] sm:$0xff]  ;;  %v2498_v63 = vld [vmem:[#allocation15 + $0x4b8] sm:$0xff] }
 0x575   : > { %v2497_v25 = vld [vmem:[#allocation15 + $0x4b0] sm:$0xff] }
 0x576   : > { %4192 = vmatpush1.bf16.msra.mxu0 %v8866_v13  ;;  %4318 = vmatpush1.bf16.msra.mxu1 %v8868_v18  ;;  %v8914_v13 = vcombine.low %v2453_v17, %v2457_v9  ;;  %v8916_v18 = vcombine.low %v2454_v10, %v2458_v23  ;;  %v2501_v17 = vld [vmem:[#allocation15 + $0x4d0] sm:$0xff]  ;;  %v2502_v10 = vld [vmem:[#allocation15 + $0x4d8] sm:$0xff] }
 0x577   : > { %4193 = vmatprep.subr.bf16.mxu0 %v8875_v3  ;;  %4319 = vmatprep.subr.bf16.mxu1 %v8877_v6  ;;  %v8923_v3 = vcombine.high %v2461_v41, %v2465_v46  ;;  %v8925_v6 = vcombine.high %v2462_v47, %v2466_v50  ;;  %v2505_v9 = vld [vmem:[#allocation15 + $0x4f0] sm:$0xff]  ;;  %v2506_v23 = vld [vmem:[#allocation15 + $0x4f8] sm:$0xff] }
 0x57a   : > { %4194 = vmatpush1.bf16.msra.mxu0 %v8874_v27  ;;  %4320 = vmatpush1.bf16.msra.mxu1 %v8876_v36  ;;  %v8922_v27 = vcombine.low %v2461_v41, %v2465_v46  ;;  %v8924_v36 = vcombine.low %v2462_v47, %v2466_v50  ;;  %v2510_v41 = vld [vmem:[#allocation15 + $0x518] sm:$0xff]  ;;  %v8962_v47 = vcombine.low %v2501_v17, %v2505_v9 }
 0x57b   : > { %4195 = vmatprep.subr.bf16.mxu0 %v8883_v28  ;;  %4321 = vmatprep.subr.bf16.mxu1 %v8885_v2  ;;  %v8931_v28 = vcombine.high %v2469_v20, %v2473_v21  ;;  %v8933_v2 = vcombine.high %v2470_v22, %v2474_v1  ;;  %v2514_v46 = vld [vmem:[#allocation15 + $0x538] sm:$0xff]  ;;  %v8964_v50 = vcombine.low %v2502_v10, %v2506_v23 }
 0x57e   : > { %4196 = vmatpush1.bf16.msra.mxu0 %v8882_v51  ;;  %4322 = vmatpush1.bf16.msra.mxu1 %v8884_v59  ;;  %v8930_v51 = vcombine.low %v2469_v20, %v2473_v21  ;;  %v8932_v59 = vcombine.low %v2470_v22, %v2474_v1  ;;  %v2518_v20 = vld [vmem:[#allocation15 + $0x558] sm:$0xff]  ;;  %v8972_v22 = vcombine.low %v2510_v41, %v2514_v46 }
 0x57f   : > { %4197 = vmatprep.subr.bf16.mxu0 %v8891_v35  ;;  %4323 = vmatprep.subr.bf16.mxu1 %v8893_v26  ;;  %v8939_v35 = vcombine.high %v2477_v29, %v2481_v61  ;;  %v8941_v26 = vcombine.high %v2478_v48, %v2482_v16  ;;  %v2522_v21 = vld [vmem:[#allocation15 + $0x578] sm:$0xff] }
 0x582   : > { %4198 = vmatpush1.bf16.msra.mxu0 %v8890_v0  ;;  %4324 = vmatpush1.bf16.msra.mxu1 %v8892_v43  ;;  %v8938_v0 = vcombine.low %v2477_v29, %v2481_v61  ;;  %v8940_v43 = vcombine.low %v2478_v48, %v2482_v16  ;;  %v8980_v61 = vcombine.low %v2518_v20, %v2522_v21 }
 0x583   : > { %4199 = vmatprep.subr.bf16.mxu0 %v8899_v44  ;;  %4325 = vmatprep.subr.bf16.mxu1 %v8901_v45  ;;  %v8947_v44 = vcombine.high %v2485_v14, %v2489_v38  ;;  %v8949_v45 = vcombine.high %v2486_v62, %v2490_v39 }
 0x586   : > { %4200 = vmatpush1.bf16.msra.mxu0 %v8898_v4  ;;  %4326 = vmatpush1.bf16.msra.mxu1 %v8900_v5  ;;  %v8946_v4 = vcombine.low %v2485_v14, %v2489_v38  ;;  %v8948_v5 = vcombine.low %v2486_v62, %v2490_v39  ;;  %v2541_v39 = vld [vmem:[#allocation15 + $0x610] sm:$0xff] }
 0x587   : > { %4201 = vmatprep.subr.bf16.mxu0 %v8907_v7  ;;  %4327 = vmatprep.subr.bf16.mxu1 %v8909_v8  ;;  %v8955_v7 = vcombine.high %v2493_v52, %v2497_v25  ;;  %v8957_v8 = vcombine.high %v2494_v56, %v2498_v63 }
 0x58a   : > { %4202 = vmatpush1.bf16.msra.mxu0 %v8906_v11  ;;  %4328 = vmatpush1.bf16.msra.mxu1 %v8908_v12  ;;  %v8956_v11 = vcombine.low %v2494_v56, %v2498_v63  ;;  %v8963_v12 = vcombine.high %v2501_v17, %v2505_v9  ;;  %v2549_v56 = vld [vmem:[#allocation15 + $0x650] sm:$0xff] }
 0x58b   : > { %4203 = vmatprep.subr.bf16.mxu0 %v8915_v15  ;;  %4329 = vmatprep.subr.bf16.mxu1 %v8917_v60  ;;  %v8965_v15 = vcombine.high %v2502_v10, %v2506_v23  ;;  %v2509_v60 = vld [vmem:[#allocation15 + $0x510] sm:$0xff] }
 0x58c   : > { %v2553_v63 = vld [vmem:[#allocation15 + $0x670] sm:$0xff] }
 0x58d   : > { %v9011_v17 = vcombine.high %v2549_v56, %v2553_v63  ;;  %v2557_v10 = vld [vmem:[#allocation15 + $0x690] sm:$0xff] }
 0x58e   : > { %4204 = vmatpush1.bf16.msra.mxu0 %v8914_v13  ;;  %4330 = vmatpush1.bf16.msra.mxu1 %v8916_v18  ;;  %v8973_v18 = vcombine.high %v2510_v41, %v2514_v46  ;;  %v2561_v23 = vld [vmem:[#allocation15 + $0x6b0] sm:$0xff] }
 0x58f   : > { %4205 = vmatprep.subr.bf16.mxu0 %v8923_v3  ;;  %4331 = vmatprep.subr.bf16.mxu1 %v8925_v6  ;;  %v2517_v3 = vld [vmem:[#allocation15 + $0x550] sm:$0xff] }
 0x590   : > { %v2521_v6 = vld [vmem:[#allocation15 + $0x570] sm:$0xff] }
 0x591   : > { %v8979_v1 = vcombine.high %v2517_v3, %v2521_v6  ;;  %v8978_v29 = vcombine.low %v2517_v3, %v2521_v6  ;;  %v2565_v41 = vld [vmem:[#allocation15 + $0x6d0] sm:$0xff] }
 0x592   : > { %4206 = vmatpush1.bf16.msra.mxu0 %v8922_v27  ;;  %4332 = vmatpush1.bf16.msra.mxu1 %v8924_v36  ;;  %v8981_v27 = vcombine.high %v2518_v20, %v2522_v21  ;;  %v2525_v36 = vld [vmem:[#allocation15 + $0x590] sm:$0xff] }
 0x593   : > { %4207 = vmatprep.subr.bf16.mxu0 %v8931_v28  ;;  %4333 = vmatprep.subr.bf16.mxu1 %v8933_v2  ;;  %v2526_v28 = vld [vmem:[#allocation15 + $0x598] sm:$0xff]  ;;  %v2569_v46 = vld [vmem:[#allocation15 + $0x6f0] sm:$0xff] }
 0x594   : > { %v2530_v2 = vld [vmem:[#allocation15 + $0x5b8] sm:$0xff]  ;;  %v9027_v3 = vcombine.high %v2565_v41, %v2569_v46  ;;  %v2573_v20 = vld [vmem:[#allocation15 + $0x710] sm:$0xff] }
 0x595   : > { %v8989_v16 = vcombine.high %v2526_v28, %v2530_v2  ;;  %v8988_v14 = vcombine.low %v2526_v28, %v2530_v2  ;;  %v2577_v21 = vld [vmem:[#allocation15 + $0x730] sm:$0xff] }
 0x596   : > { %4208 = vmatpush1.bf16.msra.mxu0 %v8930_v51  ;;  %4334 = vmatpush1.bf16.msra.mxu1 %v8932_v59  ;;  %v2533_v51 = vld [vmem:[#allocation15 + $0x5d0] sm:$0xff] }
 0x597   : > { %4240 = vmatprep.subr.bf16.mxu0 %v8939_v35  ;;  %4366 = vmatprep.subr.bf16.mxu1 %v8941_v26  ;;  %v2537_v59 = vld [vmem:[#allocation15 + $0x5f0] sm:$0xff]  ;;  %v2534_v35 = vld [vmem:[#allocation15 + $0x5d8] sm:$0xff] }
 0x598   : > { %v2538_v26 = vld [vmem:[#allocation15 + $0x5f8] sm:$0xff]  ;;  %v8995_v38 = vcombine.high %v2533_v51, %v2537_v59  ;;  %v2581_v28 = vld [vmem:[#allocation15 + $0x750] sm:$0xff] }
 0x599   : > { %4210 = vmatmul.mubr.bf16.vlgmr.msra.gmra.mrb[48].mxu0 %v12000_v42  ;;  %4336 = vmatmul.mubr.bf16.vlgmr.msra.gmra.mrb[60].mxu1 %v12000_v42  ;;  %v8954_v42 = vcombine.low %v2493_v52, %v2497_v25  ;;  %v8997_v62 = vcombine.high %v2534_v35, %v2538_v26  ;;  %v2585_v2 = vld [vmem:[#allocation15 + $0x770] sm:$0xff] }
 0x59a   : > { %4219 = vmatprep.mubr.bf16.mxu0 %v12034_v32  ;;  %4241 = vmatpush1.bf16.msra.mxu0 %v8938_v0  ;;  %v2545_v0 = vld [vmem:[#allocation15 + $0x630] sm:$0xff] }
 0x59b   : > { %4345 = vmatprep.mubr.bf16.mxu1 %v12034_v32  ;;  %4367 = vmatpush1.bf16.msra.mxu1 %v8940_v43  ;;  %v2513_v32 = vld [vmem:[#allocation15 + $0x530] sm:$0xff]  ;;  %v2546_v43 = vld [vmem:[#allocation15 + $0x638] sm:$0xff]  ;;  %v9003_v52 = vcombine.high %v2541_v39, %v2545_v0 }
 0x59c   : > { %4242 = vmatprep.subr.bf16.mxu0 %v8947_v44  ;;  %4368 = vmatprep.subr.bf16.mxu1 %v8949_v45  ;;  %v8971_v13 = vcombine.high %v2509_v60, %v2513_v32  ;;  %v8994_v44 = vcombine.low %v2533_v51, %v2537_v59  ;;  %v8996_v45 = vcombine.low %v2534_v35, %v2538_v26  ;;  %v2589_v35 = vld [vmem:[#allocation15 + $0x790] sm:$0xff] }
 0x59d   : > { %v9043_v51 = vcombine.high %v2581_v28, %v2585_v2  ;;  %v2593_v26 = vld [vmem:[#allocation15 + $0x7b0] sm:$0xff] }
 0x59e   : > { %4243 = vmatpush1.bf16.msra.mxu0 %v8946_v4  ;;  %v2550_v4 = vld [vmem:[#allocation15 + $0x658] sm:$0xff] }
 0x59f   : > { %4369 = vmatpush1.bf16.msra.mxu1 %v8948_v5  ;;  %4244 = vmatprep.subr.bf16.mxu0 %v8955_v7  ;;  %v2554_v5 = vld [vmem:[#allocation15 + $0x678] sm:$0xff]  ;;  %v9002_v7 = vcombine.low %v2541_v39, %v2545_v0  ;;  %v9051_v39 = vcombine.high %v2589_v35, %v2593_v26 }
 0x5a0   : > { %4370 = vmatprep.subr.bf16.mxu1 %v8957_v8  ;;  %v9013_v9 = vcombine.high %v2550_v4, %v2554_v5 }
 0x5a1   : > { %4220 = vmatmul.mubr.bf16.gmra.mrb[52].mxu0 %v12030_v49  ;;  %4346 = vmatmul.mubr.bf16.gmra.mrb[64].mxu1 %v12030_v49  ;;  %v8970_v49 = vcombine.low %v2509_v60, %v2513_v32  ;;  %v9019_v60 = vcombine.high %v2557_v10, %v2561_v23 }
 0x5a2   : > { %4229 = vmatprep.mubr.bf16.mxu0 %v12045_v24  ;;  %4245 = vmatpush1.bf16.msra.mxu0 %v8954_v42  ;;  %v2558_v42 = vld [vmem:[#allocation15 + $0x698] sm:$0xff] }
 0x5a3   : > { %4355 = vmatprep.mubr.bf16.mxu1 %v12045_v24  ;;  %4371 = vmatpush1.bf16.msra.mxu1 %v8956_v11  ;;  %v2529_v24 = vld [vmem:[#allocation15 + $0x5b0] sm:$0xff]  ;;  %v2562_v11 = vld [vmem:[#allocation15 + $0x6b8] sm:$0xff] }
 0x5a4   : > { %4246 = vmatprep.subr.bf16.mxu0 %v8963_v12  ;;  %4372 = vmatprep.subr.bf16.mxu1 %v8965_v15  ;;  %v8987_v48 = vcombine.high %v2525_v36, %v2529_v24  ;;  %v9010_v12 = vcombine.low %v2549_v56, %v2553_v63  ;;  %v9012_v15 = vcombine.low %v2550_v4, %v2554_v5 }
 0x5a5   : > { %v9021_v32 = vcombine.high %v2558_v42, %v2562_v11 }
 0x5a6   : > { %4247 = vmatpush1.bf16.msra.mxu0 %v8962_v47  ;;  %v2566_v47 = vld [vmem:[#allocation15 + $0x6d8] sm:$0xff] }
 0x5a7   : > { %4373 = vmatpush1.bf16.msra.mxu1 %v8964_v50  ;;  %4248 = vmatprep.subr.bf16.mxu0 %v8971_v13  ;;  %v2570_v50 = vld [vmem:[#allocation15 + $0x6f8] sm:$0xff]  ;;  %v9018_v13 = vcombine.low %v2557_v10, %v2561_v23  ;;  %v10419_v10 = vld [vmem:[#allocation18 + $0x3c] ss:$28 sps:$4 sm:$0xff]   ;;  %v10422_v23 = vld [vmem:[#allocation18 + $0x44] ss:$28 sps:$4 sm:$0xff]  }
 0x5a8   : > { %4374 = vmatprep.subr.bf16.mxu1 %v8973_v18  ;;  %v9020_v18 = vcombine.low %v2558_v42, %v2562_v11  ;;  %v9029_v6 = vcombine.high %v2566_v47, %v2570_v50  ;;  %v10417_v42 = vld [vmem:[#allocation18 + $0x38] ss:$28 sps:$4 sm:$0xff]   ;;  %v10420_v11 = vld [vmem:[#allocation18 + $0x40] ss:$28 sps:$4 sm:$0xff]  }
 0x5a9   : > { %4230 = vmatmul.mubr.bf16.gmra.mrb[56].mxu0 %v12043_v19  ;;  %4356 = vmatmul.mubr.bf16.gmra.mrb[68].mxu1 %v12043_v19  ;;  %v8986_v19 = vcombine.low %v2525_v36, %v2529_v24  ;;  %v9035_v36 = vcombine.high %v2573_v20, %v2577_v21 }
 0x5aa   : > { %4249 = vmatpush1.bf16.msra.mxu0 %v8970_v49  ;;  %4272 = vmatprep.mubr.bf16.mxu0 %v12069_v31  ;;  %v2574_v49 = vld [vmem:[#allocation15 + $0x718] sm:$0xff] }
 0x5ab   : > { %4375 = vmatpush1.bf16.msra.mxu1 %v8972_v22  ;;  %4398 = vmatprep.mubr.bf16.mxu1 %v12069_v31  ;;  %v2542_v31 = vld [vmem:[#allocation15 + $0x618] sm:$0xff] }
 0x5ac   : > { %4250 = vmatprep.subr.bf16.mxu0 %v8979_v1  ;;  %4376 = vmatprep.subr.bf16.mxu1 %v8981_v27  ;;  %v9005_v25 = vcombine.high %v2542_v31, %v2546_v43  ;;  %v9004_v8 = vcombine.low %v2542_v31, %v2546_v43  ;;  %v2578_v22 = vld [vmem:[#allocation15 + $0x738] sm:$0xff]  ;;  %v9026_v1 = vcombine.low %v2565_v41, %v2569_v46  ;;  %v2597_v31 = vld [vmem:[#allocation15 + $0x7d0] sm:$0xff] }
 0x5ad   : > { %v9028_v27 = vcombine.low %v2566_v47, %v2570_v50  ;;  %v9037_v24 = vcombine.high %v2574_v49, %v2578_v22  ;;  %v2601_v43 = vld [vmem:[#allocation15 + $0x7f0] sm:$0xff]  ;;  %v10437_v47 = vld [vmem:[#allocation18 + $0xe4] ss:$28 sps:$4 sm:$0xff]  }
 0x5ae   : > { %4251 = vmatpush1.bf16.msra.mxu0 %v8978_v29  ;;  %v2582_v29 = vld [vmem:[#allocation15 + $0x758] sm:$0xff]  ;;  %v9059_v56 = vcombine.high %v2597_v31, %v2601_v43  ;;  %v9058_v4 = vcombine.low %v2597_v31, %v2601_v43  ;;  %v10431_v41 = vld [vmem:[#allocation18 + $0xac] ss:$28 sps:$4 sm:$0xff]   ;;  %v10483_v43 = vld [vmem:[#allocation18 + $0x2a0] ss:$28 sps:$4 sm:$0xff]  }
 0x5af   : > { %4377 = vmatpush1.bf16.msra.mxu1 %v8980_v61  ;;  %4252 = vmatprep.subr.bf16.mxu0 %v8987_v48  ;;  %v2586_v61 = vld [vmem:[#allocation15 + $0x778] sm:$0xff]  ;;  %v9034_v48 = vcombine.low %v2573_v20, %v2577_v21  ;;  %v10440_v50 = vld [vmem:[#allocation18 + $0xec] ss:$28 sps:$4 sm:$0xff]   ;;  %v10452_v21 = vld [vmem:[#allocation18 + $0x15c] ss:$28 sps:$4 sm:$0xff]  }
 0x5b0   : > { %4378 = vmatprep.subr.bf16.mxu1 %v8989_v16  ;;  %v9036_v16 = vcombine.low %v2574_v49, %v2578_v22  ;;  %v9045_v59 = vcombine.high %v2582_v29, %v2586_v61  ;;  %v10432_v46 = vld [vmem:[#allocation18 + $0xb0] ss:$28 sps:$4 sm:$0xff]   ;;  %v10450_v22 = vld [vmem:[#allocation18 + $0x158] ss:$28 sps:$4 sm:$0xff]  }
 0x5b1   : > { %v10449_v20 = vld [vmem:[#allocation18 + $0x154] ss:$28 sps:$4 sm:$0xff]   ;;  %v10488_v31 = vld [vmem:[#allocation18 + $0x2ac] ss:$28 sps:$4 sm:$0xff]  }
 0x5b2   : > { %4253 = vmatpush1.bf16.msra.mxu0 %v8986_v19  ;;  %v2590_v19 = vld [vmem:[#allocation15 + $0x798] sm:$0xff] }
 0x5b3   : > { %4379 = vmatpush1.bf16.msra.mxu1 %v8988_v14  ;;  %4254 = vmatprep.subr.bf16.mxu0 %v8995_v38  ;;  %v2594_v14 = vld [vmem:[#allocation15 + $0x7b8] sm:$0xff]  ;;  %v9042_v38 = vcombine.low %v2581_v28, %v2585_v2  ;;  %v10464_v28 = vld [vmem:[#allocation18 + $0x1cc] ss:$28 sps:$4 sm:$0xff]   ;;  %v10459_v2 = vld [vmem:[#allocation18 + $0x1c0] ss:$28 sps:$4 sm:$0xff]  }
 0x5b4   : > { %4380 = vmatprep.subr.bf16.mxu1 %v8997_v62  ;;  %v9044_v62 = vcombine.low %v2582_v29, %v2586_v61  ;;  %v9053_v0 = vcombine.high %v2590_v19, %v2594_v14  ;;  %v10447_v49 = vld [vmem:[#allocation18 + $0x150] ss:$28 sps:$4 sm:$0xff]   ;;  %v10462_v29 = vld [vmem:[#allocation18 + $0x1c8] ss:$28 sps:$4 sm:$0xff]   ;;  %v10467_v61 = vld [vmem:[#allocation18 + $0x1fc] ss:$28 sps:$4 sm:$0xff]  }
 0x5b6   : > { %4255 = vmatpush1.bf16.msra.mxu0 %v8994_v44  ;;  %v2598_v44 = vld [vmem:[#allocation15 + $0x7d8] sm:$0xff] }
 0x5b7   : > { %4381 = vmatpush1.bf16.msra.mxu1 %v8996_v45  ;;  %4256 = vmatprep.subr.bf16.mxu0 %v9003_v52  ;;  %v2602_v45 = vld [vmem:[#allocation15 + $0x7f8] sm:$0xff]  ;;  %v9050_v52 = vcombine.low %v2589_v35, %v2593_v26  ;;  %v10476_v35 = vld [vmem:[#allocation18 + $0x23c] ss:$28 sps:$4 sm:$0xff]  }
 0x5b8   : > { %4382 = vmatprep.subr.bf16.mxu1 %v9005_v25  ;;  %v9052_v25 = vcombine.low %v2590_v19, %v2594_v14  ;;  %v9061_v63 = vcombine.high %v2598_v44, %v2602_v45  ;;  %v9060_v5 = vcombine.low %v2598_v44, %v2602_v45  ;;  %v10471_v26 = vld [vmem:[#allocation18 + $0x230] ss:$28 sps:$4 sm:$0xff]   ;;  %v10474_v19 = vld [vmem:[#allocation18 + $0x238] ss:$28 sps:$4 sm:$0xff]   ;;  %v10486_v44 = vld [vmem:[#allocation18 + $0x2a8] ss:$28 sps:$4 sm:$0xff]  }
 0x5b9   : > { %v10479_v14 = vld [vmem:[#allocation18 + $0x26c] ss:$28 sps:$4 sm:$0xff]   ;;  %v10491_v45 = vld [vmem:[#allocation18 + $0x2dc] ss:$28 sps:$4 sm:$0xff]  }
 0x5ba   : > { %4257 = vmatpush1.bf16.msra.mxu0 %v9002_v7  ;;  %v10413_v7 = vld [vmem:[#allocation18 + $0x4] ss:$28 sps:$4 sm:$0xff]  }
 0x5bb   : > { %4383 = vmatpush1.bf16.msra.mxu1 %v9004_v8  ;;  %4258 = vmatprep.subr.bf16.mxu0 %v9011_v17  ;;  %v10416_v8 = vld [vmem:[#allocation18 + $0xc] ss:$28 sps:$4 sm:$0xff]   ;;  %v10411_v17 = vld [vmem:[#allocation18] ss:$28 sps:$4 sm:$0xff]  }
 0x5bc   : > { %4384 = vmatprep.subr.bf16.mxu1 %v9013_v9  ;;  %v10414_v9 = vld [vmem:[#allocation18 + $0x8] ss:$28 sps:$4 sm:$0xff]  }
 0x5be   : > { %4259 = vmatpush1.bf16.msra.mxu0 %v9010_v12  ;;  %v10425_v12 = vld [vmem:[#allocation18 + $0x74] ss:$28 sps:$4 sm:$0xff]  }
 0x5bf   : > { %4385 = vmatpush1.bf16.msra.mxu1 %v9012_v15  ;;  %4260 = vmatprep.subr.bf16.mxu0 %v9019_v60  ;;  %v10428_v15 = vld [vmem:[#allocation18 + $0x7c] ss:$28 sps:$4 sm:$0xff]   ;;  %v10423_v60 = vld [vmem:[#allocation18 + $0x70] ss:$28 sps:$4 sm:$0xff]  }
 0x5c0   : > { %4386 = vmatprep.subr.bf16.mxu1 %v9021_v32  ;;  %v10426_v32 = vld [vmem:[#allocation18 + $0x78] ss:$28 sps:$4 sm:$0xff]  }
 0x5c2   : > { %4261 = vmatpush1.bf16.msra.mxu0 %v9018_v13  ;;  %v10435_v13 = vld [vmem:[#allocation18 + $0xe0] ss:$28 sps:$4 sm:$0xff]  }
 0x5c3   : > { %4387 = vmatpush1.bf16.msra.mxu1 %v9020_v18  ;;  %4262 = vmatprep.subr.bf16.mxu0 %v9027_v3  ;;  %v10438_v18 = vld [vmem:[#allocation18 + $0xe8] ss:$28 sps:$4 sm:$0xff]   ;;  %v10443_v3 = vld [vmem:[#allocation18 + $0x11c] ss:$28 sps:$4 sm:$0xff]  }
 0x5c4   : > { %4388 = vmatprep.subr.bf16.mxu1 %v9029_v6  ;;  %v10444_v6 = vld [vmem:[#allocation18 + $0x120] ss:$28 sps:$4 sm:$0xff]  }
 0x5c6   : > { %4263 = vmatpush1.bf16.msra.mxu0 %v9026_v1  ;;  %v10455_v1 = vld [vmem:[#allocation18 + $0x18c] ss:$28 sps:$4 sm:$0xff]  }
 0x5c7   : > { %4389 = vmatpush1.bf16.msra.mxu1 %v9028_v27  ;;  %4264 = vmatprep.subr.bf16.mxu0 %v9035_v36  ;;  %v10458_v27 = vld [vmem:[#allocation18 + $0x194] ss:$28 sps:$4 sm:$0xff]   ;;  %v10453_v36 = vld [vmem:[#allocation18 + $0x188] ss:$28 sps:$4 sm:$0xff]  }
 0x5c8   : > { %4390 = vmatprep.subr.bf16.mxu1 %v9037_v24  ;;  %v10461_v24 = vld [vmem:[#allocation18 + $0x1c4] ss:$28 sps:$4 sm:$0xff]  }
 0x5ca   : > { %4265 = vmatpush1.bf16.msra.mxu0 %v9034_v48  ;;  %v10470_v48 = vld [vmem:[#allocation18 + $0x204] ss:$28 sps:$4 sm:$0xff]  }
 0x5cb   : > { %4391 = vmatpush1.bf16.msra.mxu1 %v9036_v16  ;;  %4266 = vmatprep.subr.bf16.mxu0 %v9043_v51  ;;  %v10465_v16 = vld [vmem:[#allocation18 + $0x1f8] ss:$28 sps:$4 sm:$0xff]   ;;  %v10468_v51 = vld [vmem:[#allocation18 + $0x200] ss:$28 sps:$4 sm:$0xff]  }
 0x5cc   : > { %4392 = vmatprep.subr.bf16.mxu1 %v9045_v59  ;;  %v10473_v59 = vld [vmem:[#allocation18 + $0x234] ss:$28 sps:$4 sm:$0xff]  }
 0x5ce   : > { %4267 = vmatpush1.bf16.msra.mxu0 %v9042_v38  ;;  %v10482_v38 = vld [vmem:[#allocation18 + $0x274] ss:$28 sps:$4 sm:$0xff]  }
 0x5cf   : > { %4393 = vmatpush1.bf16.msra.mxu1 %v9044_v62  ;;  %4268 = vmatprep.subr.bf16.mxu0 %v9051_v39  ;;  %v10477_v62 = vld [vmem:[#allocation18 + $0x268] ss:$28 sps:$4 sm:$0xff]   ;;  %v10480_v39 = vld [vmem:[#allocation18 + $0x270] ss:$28 sps:$4 sm:$0xff]  }
 0x5d0   : > { %4394 = vmatprep.subr.bf16.mxu1 %v9053_v0  ;;  %v10485_v0 = vld [vmem:[#allocation18 + $0x2a4] ss:$28 sps:$4 sm:$0xff]  }
 0x5d2   : > { %4269 = vmatpush1.bf16.msra.mxu0 %v9050_v52  ;;  %v10494_v52 = vld [vmem:[#allocation18 + $0x2e4] ss:$28 sps:$4 sm:$0xff]  }
 0x5d3   : > { %4395 = vmatpush1.bf16.msra.mxu1 %v9052_v25  ;;  %4270 = vmatprep.subr.bf16.mxu0 %v9059_v56  ;;  %v10489_v25 = vld [vmem:[#allocation18 + $0x2d8] ss:$28 sps:$4 sm:$0xff]   ;;  %v10492_v56 = vld [vmem:[#allocation18 + $0x2e0] ss:$28 sps:$4 sm:$0xff]  }
 0x5d4   : > { %4396 = vmatprep.subr.bf16.mxu1 %v9061_v63  ;;  %v10497_v63 = vld [vmem:[#allocation18 + $0x314] ss:$28 sps:$4 sm:$0xff]  }
 0x5d6   : > { %4271 = vmatpush1.bf16.msra.mxu0 %v9058_v4  ;;  %v10500_v4 = vld [vmem:[#allocation18 + $0x31c] ss:$28 sps:$4 sm:$0xff]  }
 0x5d7   : > { %4397 = vmatpush1.bf16.msra.mxu1 %v9060_v5  ;;  %7354 = vmatprep.subr.bf16.mxu0 %v10413_v7  ;;  %v10495_v5 = vld [vmem:[#allocation18 + $0x310] ss:$28 sps:$4 sm:$0xff]   ;;  %v10498_v7 = vld [vmem:[#allocation18 + $0x318] ss:$28 sps:$4 sm:$0xff]  }
 0x5d8   : > { %7606 = vmatprep.subr.bf16.mxu1 %v10416_v8  ;;  %v10503_v8 = vld [vmem:[#allocation18 + $0x34c] ss:$28 sps:$4 sm:$0xff]  }
 0x5d9   : > { %4273 = vmatmul.mubr.bf16.vlgmr.msra.gmra.mrb[48].mxu0 %v12067_v30 }
 0x5da   : > { %4399 = vmatmul.mubr.bf16.vlgmr.msra.gmra.mrb[60].mxu1 %v12067_v30  ;;  %4282 = vmatprep.mubr.bf16.mxu0 %v12087_v34  ;;  %v10434_v30 = vld [vmem:[#allocation18 + $0xb4] ss:$28 sps:$4 sm:$0xff]  }
 0x5db   : > { %4408 = vmatprep.mubr.bf16.mxu1 %v12087_v34  ;;  %7355 = vmatpush1.bf16.msra.mxu0 %v10411_v17  ;;  %v10429_v34 = vld [vmem:[#allocation18 + $0xa8] ss:$28 sps:$4 sm:$0xff]   ;;  %v10506_v17 = vld [vmem:[#allocation18 + $0x354] ss:$28 sps:$4 sm:$0xff]  }
 0x5dc   : > { %7607 = vmatpush1.bf16.msra.mxu1 %v10414_v9  ;;  %7356 = vmatprep.subr.bf16.mxu0 %v10419_v10  ;;  %v10501_v9 = vld [vmem:[#allocation18 + $0x348] ss:$28 sps:$4 sm:$0xff]   ;;  %v10504_v10 = vld [vmem:[#allocation18 + $0x350] ss:$28 sps:$4 sm:$0xff]  }
 0x5dd   : > { %7608 = vmatprep.subr.bf16.mxu1 %v10422_v23  ;;  %v10509_v23 = vld [vmem:[#allocation18 + $0x384] ss:$28 sps:$4 sm:$0xff]  }
 0x5df   : > { %7357 = vmatpush1.bf16.msra.mxu0 %v10417_v42  ;;  %v10512_v42 = vld [vmem:[#allocation18 + $0x38c] ss:$28 sps:$4 sm:$0xff]  }
 0x5e0   : > { %7609 = vmatpush1.bf16.msra.mxu1 %v10420_v11  ;;  %7358 = vmatprep.subr.bf16.mxu0 %v10425_v12  ;;  %v12129_v11 = vld [vmem:[#allocation16] sm:$0xff] }
 0x5e1   : > { %4283 = vmatmul.mubr.bf16.gmra.mrb[52].mxu0 %v12085_v33  ;;  %7610 = vmatprep.subr.bf16.mxu1 %v10428_v15  ;;  %v12133_v12 = vrot.slane %v12129_v11, %v11863_v54  ;;  %v12137_v15 = vrot.slane %v12129_v11, %v11866_v55 }
 0x5e2   : > { %4409 = vmatmul.mubr.bf16.gmra.mrb[64].mxu1 %v12085_v33  ;;  %4292 = vmatprep.mubr.bf16.mxu0 %v12099_v40  ;;  %v10446_v33 = vld [vmem:[#allocation18 + $0x124] ss:$28 sps:$4 sm:$0xff]  }
 0x5e3   : > { %4418 = vmatprep.mubr.bf16.mxu1 %v12099_v40  ;;  %7359 = vmatpush1.bf16.msra.mxu0 %v10423_v60  ;;  %v10441_v40 = vld [vmem:[#allocation18 + $0x118] ss:$28 sps:$4 sm:$0xff]   ;;  %v12141_v60 = vrot.slane %v12129_v11, %v11869_v57 }
 0x5e4   : > { %7611 = vmatpush1.bf16.msra.mxu1 %v10426_v32  ;;  %7360 = vmatprep.subr.bf16.mxu0 %v10431_v41  ;;  %v12145_v32 = vrot.slane %v12129_v11, %v11872_v58 }
 0x5e5   : > { %7612 = vmatprep.subr.bf16.mxu1 %v10434_v30 }
 0x5e7   : > { %7361 = vmatpush1.bf16.msra.mxu0 %v10429_v34 }
 0x5e8   : > { %7613 = vmatpush1.bf16.msra.mxu1 %v10432_v46  ;;  %7362 = vmatprep.subr.bf16.mxu0 %v10437_v47 }
 0x5e9   : > { %4293 = vmatmul.mubr.bf16.gmra.mrb[56].mxu0 %v12097_v37  ;;  %7614 = vmatprep.subr.bf16.mxu1 %v10440_v50 }
 0x5ea   : > { %4419 = vmatmul.mubr.bf16.gmra.mrb[68].mxu1 %v12097_v37  ;;  %v10456_v37 = vld [vmem:[#allocation18 + $0x190] ss:$28 sps:$4 sm:$0xff]  }
 0x5eb   : > { %7363 = vmatpush1.bf16.msra.mxu0 %v10435_v13 }
 0x5ec   : > { %7615 = vmatpush1.bf16.msra.mxu1 %v10438_v18  ;;  %7364 = vmatprep.subr.bf16.mxu0 %v10443_v3 }
 0x5ed   : > { %7616 = vmatprep.subr.bf16.mxu1 %v10446_v33 }
 0x5ef   : > { %7365 = vmatpush1.bf16.msra.mxu0 %v10441_v40 }
 0x5f0   : > { %7617 = vmatpush1.bf16.msra.mxu1 %v10444_v6  ;;  %7366 = vmatprep.subr.bf16.mxu0 %v10449_v20 }
 0x5f1   : > { %7618 = vmatprep.subr.bf16.mxu1 %v10452_v21 }
 0x5f3   : > { %7367 = vmatpush1.bf16.msra.mxu0 %v10447_v49 }
 0x5f4   : > { %7619 = vmatpush1.bf16.msra.mxu1 %v10450_v22  ;;  %7368 = vmatprep.subr.bf16.mxu0 %v10455_v1 }
 0x5f5   : > { %7620 = vmatprep.subr.bf16.mxu1 %v10458_v27 }
 0x5f7   : > { %7369 = vmatpush1.bf16.msra.mxu0 %v10453_v36 }
 0x5f8   : > { %7621 = vmatpush1.bf16.msra.mxu1 %v10456_v37  ;;  %7370 = vmatprep.subr.bf16.mxu0 %v10461_v24 }
 0x5f9   : > { %7622 = vmatprep.subr.bf16.mxu1 %v10464_v28 }
 0x5fb   : > { %7371 = vmatpush1.bf16.msra.mxu0 %v10459_v2 }
 0x5fc   : > { %7623 = vmatpush1.bf16.msra.mxu1 %v10462_v29  ;;  %7372 = vmatprep.subr.bf16.mxu0 %v10467_v61 }
 0x5fd   : > { %7624 = vmatprep.subr.bf16.mxu1 %v10470_v48 }
 0x5ff   : > { %7373 = vmatpush1.bf16.msra.mxu0 %v10465_v16 }
 0x600   : > { %7625 = vmatpush1.bf16.msra.mxu1 %v10468_v51  ;;  %7374 = vmatprep.subr.bf16.mxu0 %v10473_v59 }
 0x601   : > { %7626 = vmatprep.subr.bf16.mxu1 %v10476_v35 }
 0x603   : > { %7375 = vmatpush1.bf16.msra.mxu0 %v10471_v26  ;;  %v10507_v26 = vld [vmem:[#allocation18 + $0x380] ss:$28 sps:$4 sm:$0xff]  }
 0x604   : > { %7627 = vmatpush1.bf16.msra.mxu1 %v10474_v19  ;;  %7376 = vmatprep.subr.bf16.mxu0 %v10479_v14  ;;  %v10510_v19 = vld [vmem:[#allocation18 + $0x388] ss:$28 sps:$4 sm:$0xff]  }
 0x605   : > { %7628 = vmatprep.subr.bf16.mxu1 %v10482_v38 }
 0x607   : > { %7377 = vmatpush1.bf16.msra.mxu0 %v10477_v62 }
 0x608   : > { %7629 = vmatpush1.bf16.msra.mxu1 %v10480_v39  ;;  %7378 = vmatprep.subr.bf16.mxu0 %v10485_v0  ;;  %v10515_v0 = vld [vmem:[#allocation18 + $0x3bc] ss:$28 sps:$4 sm:$0xff]  }
 0x609   : > { %7630 = vmatprep.subr.bf16.mxu1 %v10488_v31  ;;  %v10518_v31 = vld [vmem:[#allocation18 + $0x3c4] ss:$28 sps:$4 sm:$0xff]  }
 0x60b   : > { %7379 = vmatpush1.bf16.msra.mxu0 %v10483_v43 }
 0x60c   : > { %7631 = vmatpush1.bf16.msra.mxu1 %v10486_v44  ;;  %7380 = vmatprep.subr.bf16.mxu0 %v10491_v45 }
 0x60d   : > { %7632 = vmatprep.subr.bf16.mxu1 %v10494_v52 }
 0x60f   : > { %7381 = vmatpush1.bf16.msra.mxu0 %v10489_v25 }
 0x610   : > { %7633 = vmatpush1.bf16.msra.mxu1 %v10492_v56  ;;  %7382 = vmatprep.subr.bf16.mxu0 %v10497_v63 }
 0x611   : > { %7634 = vmatprep.subr.bf16.mxu1 %v10500_v4 }
 0x613   : > { %7383 = vmatpush1.bf16.msra.mxu0 %v10495_v5 }
 0x614   : > { %7635 = vmatpush1.bf16.msra.mxu1 %v10498_v7  ;;  %7384 = vmatprep.subr.bf16.mxu0 %v10503_v8  ;;  %v10513_v8 = vld [vmem:[#allocation18 + $0x3b8] ss:$28 sps:$4 sm:$0xff]  }
 0x615   : > { %7636 = vmatprep.subr.bf16.mxu1 %v10506_v17  ;;  %v10516_v17 = vld [vmem:[#allocation18 + $0x3c0] ss:$28 sps:$4 sm:$0xff]  }
 0x617   : > { %7385 = vmatpush1.bf16.msra.mxu0 %v10501_v9  ;;  %v10521_v9 = vld [vmem:[#allocation18 + $0x3f4] ss:$28 sps:$4 sm:$0xff]  }
 0x618   : > { %7637 = vmatpush1.bf16.msra.mxu1 %v10504_v10  ;;  %7417 = vmatprep.subr.bf16.mxu0 %v10509_v23 }
 0x619   : > { %7669 = vmatprep.subr.bf16.mxu1 %v10512_v42 }
 0x62c   : > { %v4022_v41 = vpop.f32.mrb[36].mxu0  ;;  %v4148_v30 = vpop.f32.mrb[48].mxu1 }
 0x62d   : > { %v9762_v34 = vadd.f32 %v4022_v41, %v12133_v12  ;;  %v9774_v46 = vadd.f32 %v4148_v30, %v12137_v15  ;;  %v4024_v47 = vpop.f32.mrb[37].mxu0  ;;  %v4150_v50 = vpop.f32.mrb[49].mxu1  ;;  %v10524_v30 = vld [vmem:[#allocation18 + $0x3fc] ss:$28 sps:$4 sm:$0xff]  }
 0x62e   : > { %v9763_v13 = vadd.f32 %v4024_v47, %v12141_v60  ;;  %v9775_v18 = vadd.f32 %v4150_v50, %v12145_v32  ;;  %v4026_v3 = vpop.f32.mrb[38].mxu0  ;;  %v4152_v33 = vpop.f32.mrb[50].mxu1 }
 0x62f   : > { %v9764_v40 = vadd.f32 %v4026_v3, %v12133_v12  ;;  %v9776_v6 = vadd.f32 %v4152_v33, %v12137_v15  ;;  %v4028_v20 = vpop.f32.mrb[39].mxu0  ;;  %v4154_v21 = vpop.f32.mrb[51].mxu1  ;;  %v4429_v1 = vmax.f32 %v9762_v34, 0.0  ;;  %v4431_v27 = vmax.f32 %v9774_v46, 0.0 }
 0x630   : > { %v9765_v49 = vadd.f32 %v4028_v20, %v12141_v60  ;;  %v9777_v22 = vadd.f32 %v4154_v21, %v12145_v32  ;;  %v4430_v24 = vmax.f32 %v9763_v13, 0.0  ;;  %v4432_v28 = vmax.f32 %v9775_v18, 0.0  ;;  %v10519_v20 = vld [vmem:[#allocation18 + $0x3f0] ss:$28 sps:$4 sm:$0xff]   ;;  %v10522_v21 = vld [vmem:[#allocation18 + $0x3f8] ss:$28 sps:$4 sm:$0xff]  }
 0x631   : > { %v4437_v36 = vmax.f32 %v9764_v40, 0.0  ;;  %v4439_v37 = vmax.f32 %v9776_v6, 0.0 }
 0x632   : > { %v4438_v2 = vmax.f32 %v9765_v49, 0.0  ;;  %v4440_v29 = vmax.f32 %v9777_v22, 0.0 }
 0x633   : > { %v12155_v61 = vpack.c.bf16 %v4437_v36, %v4429_v1  ;;  %v12157_v48 = vpack.c.bf16 %v4439_v37, %v4431_v27  ;;  %v10527_v36 = vld [vmem:[#allocation18 + $0x42c] ss:$28 sps:$4 sm:$0xff]   ;;  %v10530_v37 = vld [vmem:[#allocation18 + $0x434] ss:$28 sps:$4 sm:$0xff]  }
 0x634   : > { %v12159_v16 = vpack.c.bf16 %v4438_v2, %v4430_v24  ;;  %v12161_v51 = vpack.c.bf16 %v4440_v29, %v4432_v28  ;;  %v4032_v59 = vpop.f32.mrb[40].mxu0  ;;  %v4158_v35 = vpop.f32.mrb[52].mxu1 }
 0x635   : > { %v9766_v14 = vadd.f32 %v4032_v59, %v12133_v12  ;;  %v9778_v38 = vadd.f32 %v4158_v35, %v12137_v15  ;;  %v4034_v62 = vpop.f32.mrb[41].mxu0  ;;  %v4160_v39 = vpop.f32.mrb[53].mxu1 }
 0x636   : > { %v9767_v43 = vadd.f32 %v4034_v62, %v12141_v60  ;;  %v9779_v44 = vadd.f32 %v4160_v39, %v12145_v32  ;;  %v4036_v45 = vpop.f32.mrb[42].mxu0  ;;  %v4162_v52 = vpop.f32.mrb[54].mxu1  ;;  %7386 = vmatprep.mubr.bf16.mxu0 %v12159_v16  ;;  %7638 = vmatprep.mubr.bf16.mxu1 %v12159_v16  ;;  %v10525_v62 = vld [vmem:[#allocation18 + $0x428] ss:$28 sps:$4 sm:$0xff]   ;;  %v10528_v39 = vld [vmem:[#allocation18 + $0x430] ss:$28 sps:$4 sm:$0xff]  }
 0x637   : > { %v9768_v25 = vadd.f32 %v4036_v45, %v12133_v12  ;;  %v9780_v56 = vadd.f32 %v4162_v52, %v12137_v15  ;;  %v4038_v63 = vpop.f32.mrb[43].mxu0  ;;  %v4164_v4 = vpop.f32.mrb[55].mxu1  ;;  %7387 = vmatmul.mubr.bf16.vlgmr.msra.gmra.mrb[60].mxu0 %v12155_v61  ;;  %7639 = vmatmul.mubr.bf16.vlgmr.msra.gmra.mrb[72].mxu1 %v12155_v61  ;;  %v4445_v10 = vmax.f32 %v9766_v14, 0.0  ;;  %v4447_v23 = vmax.f32 %v9778_v38, 0.0 }
 0x638   : > { %v9769_v5 = vadd.f32 %v4038_v63, %v12141_v60  ;;  %v9781_v7 = vadd.f32 %v4164_v4, %v12145_v32  ;;  %7418 = vmatpush1.bf16.msra.mxu0 %v10507_v26  ;;  %7670 = vmatpush1.bf16.msra.mxu1 %v10510_v19  ;;  %v4446_v34 = vmax.f32 %v9767_v43, 0.0  ;;  %v4448_v46 = vmax.f32 %v9779_v44, 0.0 }
 0x639   : > { %v4453_v42 = vmax.f32 %v9768_v25, 0.0  ;;  %v4455_v41 = vmax.f32 %v9780_v56, 0.0  ;;  %7419 = vmatprep.subr.bf16.mxu0 %v10515_v0  ;;  %7671 = vmatprep.subr.bf16.mxu1 %v10518_v31  ;;  %v10533_v0 = vld [vmem:[#allocation18 + $0x464] ss:$28 sps:$4 sm:$0xff]  }
 0x63a   : > { %v4454_v47 = vmax.f32 %v9769_v5, 0.0  ;;  %v4456_v50 = vmax.f32 %v9781_v7, 0.0  ;;  %v10531_v5 = vld [vmem:[#allocation18 + $0x460] ss:$28 sps:$4 sm:$0xff]   ;;  %v10534_v7 = vld [vmem:[#allocation18 + $0x468] ss:$28 sps:$4 sm:$0xff]  }
 0x63b   : > { %v12175_v13 = vpack.c.bf16 %v4453_v42, %v4445_v10  ;;  %v12177_v18 = vpack.c.bf16 %v4455_v41, %v4447_v23  ;;  %v10540_v10 = vld [vmem:[#allocation18 + $0x4a0] ss:$28 sps:$4 sm:$0xff]   ;;  %v10545_v23 = vld [vmem:[#allocation18 + $0x4d4] ss:$28 sps:$4 sm:$0xff]  }
 0x63c   : > { %v12179_v3 = vpack.c.bf16 %v4454_v47, %v4446_v34  ;;  %v12181_v33 = vpack.c.bf16 %v4456_v50, %v4448_v46  ;;  %7420 = vmatpush1.bf16.msra.mxu0 %v10513_v8  ;;  %7672 = vmatpush1.bf16.msra.mxu1 %v10516_v17  ;;  %v4042_v40 = vpop.f32.mrb[44].mxu0  ;;  %v4168_v6 = vpop.f32.mrb[56].mxu1  ;;  %v10539_v8 = vld [vmem:[#allocation18 + $0x49c] ss:$28 sps:$4 sm:$0xff]   ;;  %v10542_v17 = vld [vmem:[#allocation18 + $0x4a4] ss:$28 sps:$4 sm:$0xff]  }
 0x63d   : > { %v9770_v49 = vadd.f32 %v4042_v40, %v12133_v12  ;;  %v9782_v22 = vadd.f32 %v4168_v6, %v12137_v15  ;;  %v4044_v1 = vpop.f32.mrb[45].mxu0  ;;  %v4170_v27 = vpop.f32.mrb[57].mxu1  ;;  %7421 = vmatprep.subr.bf16.mxu0 %v10521_v9  ;;  %7673 = vmatprep.subr.bf16.mxu1 %v10524_v30  ;;  %v10537_v9 = vld [vmem:[#allocation18 + $0x498] ss:$28 sps:$4 sm:$0xff]   ;;  %v10543_v41 = vld [vmem:[#allocation18 + $0x4d0] ss:$28 sps:$4 sm:$0xff]  }
 0x63e   : > { %v9771_v24 = vadd.f32 %v4044_v1, %v12141_v60  ;;  %v9783_v28 = vadd.f32 %v4170_v27, %v12145_v32  ;;  %v4046_v2 = vpop.f32.mrb[46].mxu0  ;;  %v4172_v29 = vpop.f32.mrb[58].mxu1  ;;  %7396 = vmatprep.mubr.bf16.mxu0 %v12179_v3  ;;  %7648 = vmatprep.mubr.bf16.mxu1 %v12179_v3  ;;  %v10548_v42 = vld [vmem:[#allocation18 + $0x4dc] ss:$28 sps:$4 sm:$0xff]   ;;  %v10551_v34 = vld [vmem:[#allocation18 + $0x50c] ss:$28 sps:$4 sm:$0xff]  }
 0x63f   : > { %v9772_v59 = vadd.f32 %v4046_v2, %v12133_v12  ;;  %v9784_v35 = vadd.f32 %v4172_v29, %v12137_v15  ;;  %v4048_v26 = vpop.f32.mrb[47].mxu0  ;;  %v4174_v19 = vpop.f32.mrb[59].mxu1  ;;  %7397 = vmatmul.mubr.bf16.gmra.mrb[64].mxu0 %v12175_v13  ;;  %7649 = vmatmul.mubr.bf16.gmra.mrb[76].mxu1 %v12175_v13  ;;  %v4461_v31 = vmax.f32 %v9770_v49, 0.0  ;;  %v4463_v43 = vmax.f32 %v9782_v22, 0.0  ;;  %v10536_v15 = vld [vmem:[#allocation18 + $0x46c] ss:$28 sps:$4 sm:$0xff]  }
 0x640   : > { %v9773_v14 = vadd.f32 %v4048_v26, %v12141_v60  ;;  %v9785_v38 = vadd.f32 %v4174_v19, %v12145_v32  ;;  %7422 = vmatpush1.bf16.msra.mxu0 %v10519_v20  ;;  %7674 = vmatpush1.bf16.msra.mxu1 %v10522_v21  ;;  %v4462_v45 = vmax.f32 %v9771_v24, 0.0  ;;  %v4464_v52 = vmax.f32 %v9783_v28, 0.0  ;;  %v10546_v30 = vld [vmem:[#allocation18 + $0x4d8] ss:$28 sps:$4 sm:$0xff]   ;;  %v10549_v47 = vld [vmem:[#allocation18 + $0x508] ss:$28 sps:$4 sm:$0xff]  }
 0x641   : > { %v4469_v12 = vmax.f32 %v9772_v59, 0.0  ;;  %v4471_v44 = vmax.f32 %v9784_v35, 0.0  ;;  %7423 = vmatprep.subr.bf16.mxu0 %v10527_v36  ;;  %7675 = vmatprep.subr.bf16.mxu1 %v10530_v37  ;;  %v10554_v46 = vld [vmem:[#allocation18 + $0x514] ss:$28 sps:$4 sm:$0xff]   ;;  %v10557_v40 = vld [vmem:[#allocation18 + $0x544] ss:$28 sps:$4 sm:$0xff]  }
 0x642   : > { %v4470_v25 = vmax.f32 %v9773_v14, 0.0  ;;  %v4472_v56 = vmax.f32 %v9785_v38, 0.0  ;;  %v10552_v50 = vld [vmem:[#allocation18 + $0x510] ss:$28 sps:$4 sm:$0xff]   ;;  %v10555_v20 = vld [vmem:[#allocation18 + $0x540] ss:$28 sps:$4 sm:$0xff]  }
 0x643   : > { %v12195_v63 = vpack.c.bf16 %v4469_v12, %v4461_v31  ;;  %v12197_v60 = vpack.c.bf16 %v4471_v44, %v4463_v43  ;;  %v10560_v6 = vld [vmem:[#allocation18 + $0x54c] ss:$28 sps:$4 sm:$0xff]   ;;  %v10563_v49 = vld [vmem:[#allocation18 + $0x57c] ss:$28 sps:$4 sm:$0xff]   ;;  %v10566_v22 = vld [vmem:[#allocation18 + $0x584] ss:$28 sps:$4 sm:$0xff]  }
 0x644   : > { %v12199_v32 = vpack.c.bf16 %v4470_v25, %v4462_v45  ;;  %v12201_v4 = vpack.c.bf16 %v4472_v56, %v4464_v52  ;;  %7424 = vmatpush1.bf16.msra.mxu0 %v10525_v62  ;;  %7676 = vmatpush1.bf16.msra.mxu1 %v10528_v39  ;;  %v10558_v21 = vld [vmem:[#allocation18 + $0x548] ss:$28 sps:$4 sm:$0xff]   ;;  %v10561_v1 = vld [vmem:[#allocation18 + $0x578] ss:$28 sps:$4 sm:$0xff]   ;;  %v10564_v27 = vld [vmem:[#allocation18 + $0x580] ss:$28 sps:$4 sm:$0xff]  }
 0x645   : > { %7425 = vmatprep.subr.bf16.mxu0 %v10533_v0  ;;  %7677 = vmatprep.subr.bf16.mxu1 %v10536_v15  ;;  %v10569_v36 = vld [vmem:[#allocation18 + $0x5b4] ss:$28 sps:$4 sm:$0xff]   ;;  %v10572_v37 = vld [vmem:[#allocation18 + $0x5bc] ss:$28 sps:$4 sm:$0xff]   ;;  %v10575_v2 = vld [vmem:[#allocation18 + $0x5ec] ss:$28 sps:$4 sm:$0xff]  }
 0x646   : > { %7406 = vmatprep.mubr.bf16.mxu0 %v12199_v32  ;;  %7658 = vmatprep.mubr.bf16.mxu1 %v12199_v32  ;;  %v10567_v24 = vld [vmem:[#allocation18 + $0x5b0] ss:$28 sps:$4 sm:$0xff]   ;;  %v10570_v28 = vld [vmem:[#allocation18 + $0x5b8] ss:$28 sps:$4 sm:$0xff]   ;;  %v10573_v59 = vld [vmem:[#allocation18 + $0x5e8] ss:$28 sps:$4 sm:$0xff]  }
 0x647   : > { %7407 = vmatmul.mubr.bf16.gmra.mrb[68].mxu0 %v12195_v63  ;;  %7659 = vmatmul.mubr.bf16.gmra.mrb[80].mxu1 %v12195_v63  ;;  %v10578_v29 = vld [vmem:[#allocation18 + $0x5f4] ss:$28 sps:$4 sm:$0xff]   ;;  %v10581_v26 = vld [vmem:[#allocation18 + $0x624] ss:$28 sps:$4 sm:$0xff]   ;;  %v10584_v19 = vld [vmem:[#allocation18 + $0x62c] ss:$28 sps:$4 sm:$0xff]  }
 0x648   : > { %7426 = vmatpush1.bf16.msra.mxu0 %v10531_v5  ;;  %7678 = vmatpush1.bf16.msra.mxu1 %v10534_v7  ;;  %v10576_v35 = vld [vmem:[#allocation18 + $0x5f0] ss:$28 sps:$4 sm:$0xff]   ;;  %v10579_v14 = vld [vmem:[#allocation18 + $0x620] ss:$28 sps:$4 sm:$0xff]   ;;  %v10582_v38 = vld [vmem:[#allocation18 + $0x628] ss:$28 sps:$4 sm:$0xff]  }
 0x649   : > { %7449 = vmatprep.mubr.bf16.mxu0 %v12161_v51  ;;  %7701 = vmatprep.mubr.bf16.mxu1 %v12161_v51  ;;  %v10587_v62 = vld [vmem:[#allocation18 + $0x65c] ss:$28 sps:$4 sm:$0xff]   ;;  %v10590_v39 = vld [vmem:[#allocation18 + $0x664] ss:$28 sps:$4 sm:$0xff]   ;;  %v10593_v43 = vld [vmem:[#allocation18 + $0x694] ss:$28 sps:$4 sm:$0xff]  }
 0x64a   : > { %7427 = vmatprep.subr.bf16.mxu0 %v10539_v8  ;;  %7679 = vmatprep.subr.bf16.mxu1 %v10542_v17  ;;  %v10585_v0 = vld [vmem:[#allocation18 + $0x658] ss:$28 sps:$4 sm:$0xff]   ;;  %v10588_v31 = vld [vmem:[#allocation18 + $0x660] ss:$28 sps:$4 sm:$0xff]   ;;  %v10591_v44 = vld [vmem:[#allocation18 + $0x690] ss:$28 sps:$4 sm:$0xff]  }
 0x64b   : > { %v10596_v12 = vld [vmem:[#allocation18 + $0x69c] ss:$28 sps:$4 sm:$0xff]   ;;  %v10599_v45 = vld [vmem:[#allocation18 + $0x6cc] ss:$28 sps:$4 sm:$0xff]   ;;  %v10602_v52 = vld [vmem:[#allocation18 + $0x6d4] ss:$28 sps:$4 sm:$0xff]  }
 0x64c   : > { %7428 = vmatpush1.bf16.msra.mxu0 %v10537_v9  ;;  %7680 = vmatpush1.bf16.msra.mxu1 %v10540_v10  ;;  %v10594_v15 = vld [vmem:[#allocation18 + $0x698] ss:$28 sps:$4 sm:$0xff]   ;;  %v10597_v25 = vld [vmem:[#allocation18 + $0x6c8] ss:$28 sps:$4 sm:$0xff]   ;;  %v10600_v56 = vld [vmem:[#allocation18 + $0x6d0] ss:$28 sps:$4 sm:$0xff]  }
 0x64d   : > { %7429 = vmatprep.subr.bf16.mxu0 %v10545_v23  ;;  %7681 = vmatprep.subr.bf16.mxu1 %v10548_v42  ;;  %v10605_v5 = vld [vmem:[#allocation18 + $0x704] ss:$28 sps:$4 sm:$0xff]   ;;  %v10608_v7 = vld [vmem:[#allocation18 + $0x70c] ss:$28 sps:$4 sm:$0xff]   ;;  %v10611_v9 = vld [vmem:[#allocation18 + $0x73c] ss:$28 sps:$4 sm:$0xff]  }
 0x64e   : > { %v10603_v8 = vld [vmem:[#allocation18 + $0x700] ss:$28 sps:$4 sm:$0xff]   ;;  %v10606_v17 = vld [vmem:[#allocation18 + $0x708] ss:$28 sps:$4 sm:$0xff]   ;;  %v10609_v23 = vld [vmem:[#allocation18 + $0x738] ss:$28 sps:$4 sm:$0xff]  }
 0x64f   : > { %v10614_v10 = vld [vmem:[#allocation18 + $0x744] ss:$28 sps:$4 sm:$0xff]  }
 0x650   : > { %7430 = vmatpush1.bf16.msra.mxu0 %v10543_v41  ;;  %7682 = vmatpush1.bf16.msra.mxu1 %v10546_v30  ;;  %v10612_v42 = vld [vmem:[#allocation18 + $0x740] ss:$28 sps:$4 sm:$0xff]   ;;  %v10617_v41 = vld [vmem:[#allocation18 + $0x774] ss:$28 sps:$4 sm:$0xff]  }
 0x651   : > { %7431 = vmatprep.subr.bf16.mxu0 %v10551_v34  ;;  %7683 = vmatprep.subr.bf16.mxu1 %v10554_v46  ;;  %v10620_v30 = vld [vmem:[#allocation18 + $0x77c] ss:$28 sps:$4 sm:$0xff]   ;;  %v10615_v34 = vld [vmem:[#allocation18 + $0x770] ss:$28 sps:$4 sm:$0xff]  }
 0x652   : > { %v10618_v46 = vld [vmem:[#allocation18 + $0x778] ss:$28 sps:$4 sm:$0xff]  }
 0x654   : > { %7432 = vmatpush1.bf16.msra.mxu0 %v10549_v47  ;;  %7684 = vmatpush1.bf16.msra.mxu1 %v10552_v50  ;;  %v10623_v47 = vld [vmem:[#allocation18 + $0x7ac] ss:$28 sps:$4 sm:$0xff]   ;;  %v10626_v50 = vld [vmem:[#allocation18 + $0x7b4] ss:$28 sps:$4 sm:$0xff]  }
 0x655   : > { %7433 = vmatprep.subr.bf16.mxu0 %v10557_v40  ;;  %7685 = vmatprep.subr.bf16.mxu1 %v10560_v6  ;;  %v10621_v40 = vld [vmem:[#allocation18 + $0x7a8] ss:$28 sps:$4 sm:$0xff]   ;;  %v10624_v6 = vld [vmem:[#allocation18 + $0x7b0] ss:$28 sps:$4 sm:$0xff]  }
 0x658   : > { %7434 = vmatpush1.bf16.msra.mxu0 %v10555_v20  ;;  %7686 = vmatpush1.bf16.msra.mxu1 %v10558_v21  ;;  %v10629_v20 = vld [vmem:[#allocation18 + $0x7e4] ss:$28 sps:$4 sm:$0xff]   ;;  %v10632_v21 = vld [vmem:[#allocation18 + $0x7ec] ss:$28 sps:$4 sm:$0xff]  }
 0x659   : > { %7435 = vmatprep.subr.bf16.mxu0 %v10563_v49  ;;  %7687 = vmatprep.subr.bf16.mxu1 %v10566_v22  ;;  %v10627_v49 = vld [vmem:[#allocation18 + $0x7e0] ss:$28 sps:$4 sm:$0xff]   ;;  %v10630_v22 = vld [vmem:[#allocation18 + $0x7e8] ss:$28 sps:$4 sm:$0xff]  }
 0x65c   : > { %7436 = vmatpush1.bf16.msra.mxu0 %v10561_v1  ;;  %7688 = vmatpush1.bf16.msra.mxu1 %v10564_v27  ;;  %v10635_v1 = vld [vmem:[#allocation18 + $0x81c] ss:$28 sps:$4 sm:$0xff]   ;;  %v10638_v27 = vld [vmem:[#allocation18 + $0x824] ss:$28 sps:$4 sm:$0xff]  }
 0x65d   : > { %7437 = vmatprep.subr.bf16.mxu0 %v10569_v36  ;;  %7689 = vmatprep.subr.bf16.mxu1 %v10572_v37  ;;  %v10633_v36 = vld [vmem:[#allocation18 + $0x818] ss:$28 sps:$4 sm:$0xff]   ;;  %v10636_v37 = vld [vmem:[#allocation18 + $0x820] ss:$28 sps:$4 sm:$0xff]  }
 0x660   : > { %7438 = vmatpush1.bf16.msra.mxu0 %v10567_v24  ;;  %7690 = vmatpush1.bf16.msra.mxu1 %v10570_v28  ;;  %v10641_v24 = vld [vmem:[#allocation18 + $0x854] ss:$28 sps:$4 sm:$0xff]   ;;  %v10644_v28 = vld [vmem:[#allocation18 + $0x85c] ss:$28 sps:$4 sm:$0xff]  }
 0x661   : > { %7439 = vmatprep.subr.bf16.mxu0 %v10575_v2  ;;  %7691 = vmatprep.subr.bf16.mxu1 %v10578_v29  ;;  %v10639_v2 = vld [vmem:[#allocation18 + $0x850] ss:$28 sps:$4 sm:$0xff]   ;;  %v10642_v29 = vld [vmem:[#allocation18 + $0x858] ss:$28 sps:$4 sm:$0xff]  }
 0x664   : > { %7440 = vmatpush1.bf16.msra.mxu0 %v10573_v59  ;;  %7692 = vmatpush1.bf16.msra.mxu1 %v10576_v35  ;;  %v10647_v59 = vld [vmem:[#allocation18 + $0x88c] ss:$28 sps:$4 sm:$0xff]   ;;  %v10650_v35 = vld [vmem:[#allocation18 + $0x894] ss:$28 sps:$4 sm:$0xff]  }
 0x665   : > { %7441 = vmatprep.subr.bf16.mxu0 %v10581_v26  ;;  %7693 = vmatprep.subr.bf16.mxu1 %v10584_v19  ;;  %v10645_v26 = vld [vmem:[#allocation18 + $0x888] ss:$28 sps:$4 sm:$0xff]   ;;  %v10648_v19 = vld [vmem:[#allocation18 + $0x890] ss:$28 sps:$4 sm:$0xff]  }
 0x668   : > { %7442 = vmatpush1.bf16.msra.mxu0 %v10579_v14  ;;  %7694 = vmatpush1.bf16.msra.mxu1 %v10582_v38  ;;  %v10653_v14 = vld [vmem:[#allocation18 + $0x8c4] ss:$28 sps:$4 sm:$0xff]   ;;  %v10656_v38 = vld [vmem:[#allocation18 + $0x8cc] ss:$28 sps:$4 sm:$0xff]  }
 0x669   : > { %7443 = vmatprep.subr.bf16.mxu0 %v10587_v62  ;;  %7695 = vmatprep.subr.bf16.mxu1 %v10590_v39  ;;  %v10651_v62 = vld [vmem:[#allocation18 + $0x8c0] ss:$28 sps:$4 sm:$0xff]   ;;  %v10654_v39 = vld [vmem:[#allocation18 + $0x8c8] ss:$28 sps:$4 sm:$0xff]  }
 0x66c   : > { %7444 = vmatpush1.bf16.msra.mxu0 %v10585_v0  ;;  %7696 = vmatpush1.bf16.msra.mxu1 %v10588_v31  ;;  %v10659_v0 = vld [vmem:[#allocation18 + $0x8fc] ss:$28 sps:$4 sm:$0xff]   ;;  %v10662_v31 = vld [vmem:[#allocation18 + $0x904] ss:$28 sps:$4 sm:$0xff]  }
 0x66d   : > { %7445 = vmatprep.subr.bf16.mxu0 %v10593_v43  ;;  %7697 = vmatprep.subr.bf16.mxu1 %v10596_v12  ;;  %v10657_v43 = vld [vmem:[#allocation18 + $0x8f8] ss:$28 sps:$4 sm:$0xff]   ;;  %v10660_v12 = vld [vmem:[#allocation18 + $0x900] ss:$28 sps:$4 sm:$0xff]  }
 0x670   : > { %7446 = vmatpush1.bf16.msra.mxu0 %v10591_v44  ;;  %7698 = vmatpush1.bf16.msra.mxu1 %v10594_v15  ;;  %v10665_v44 = vld [vmem:[#allocation18 + $0x934] ss:$28 sps:$4 sm:$0xff]   ;;  %v10668_v15 = vld [vmem:[#allocation18 + $0x93c] ss:$28 sps:$4 sm:$0xff]  }
 0x671   : > { %7447 = vmatprep.subr.bf16.mxu0 %v10599_v45  ;;  %7699 = vmatprep.subr.bf16.mxu1 %v10602_v52  ;;  %v10663_v45 = vld [vmem:[#allocation18 + $0x930] ss:$28 sps:$4 sm:$0xff]   ;;  %v10666_v52 = vld [vmem:[#allocation18 + $0x938] ss:$28 sps:$4 sm:$0xff]  }
 0x674   : > { %7448 = vmatpush1.bf16.msra.mxu0 %v10597_v25  ;;  %7700 = vmatpush1.bf16.msra.mxu1 %v10600_v56  ;;  %v10671_v25 = vld [vmem:[#allocation18 + $0x96c] ss:$28 sps:$4 sm:$0xff]   ;;  %v10674_v56 = vld [vmem:[#allocation18 + $0x974] ss:$28 sps:$4 sm:$0xff]  }
 0x675   : > { %7480 = vmatprep.subr.bf16.mxu0 %v10605_v5  ;;  %7732 = vmatprep.subr.bf16.mxu1 %v10608_v7  ;;  %v10669_v5 = vld [vmem:[#allocation18 + $0x968] ss:$28 sps:$4 sm:$0xff]   ;;  %v10672_v7 = vld [vmem:[#allocation18 + $0x970] ss:$28 sps:$4 sm:$0xff]  }
 0x677   : > { %7450 = vmatmul.mubr.bf16.vlgmr.msra.gmra.mrb[60].mxu0 %v12157_v48  ;;  %7702 = vmatmul.mubr.bf16.vlgmr.msra.gmra.mrb[72].mxu1 %v12157_v48 }
 0x678   : > { %7459 = vmatprep.mubr.bf16.mxu0 %v12181_v33  ;;  %7481 = vmatpush1.bf16.msra.mxu0 %v10603_v8  ;;  %v10677_v8 = vld [vmem:[#allocation18 + $0x9a4] ss:$28 sps:$4 sm:$0xff]  }
 0x679   : > { %7711 = vmatprep.mubr.bf16.mxu1 %v12181_v33  ;;  %7733 = vmatpush1.bf16.msra.mxu1 %v10606_v17  ;;  %v10680_v17 = vld [vmem:[#allocation18 + $0x9ac] ss:$28 sps:$4 sm:$0xff]  }
 0x67a   : > { %7482 = vmatprep.subr.bf16.mxu0 %v10611_v9  ;;  %7734 = vmatprep.subr.bf16.mxu1 %v10614_v10  ;;  %v10675_v9 = vld [vmem:[#allocation18 + $0x9a0] ss:$28 sps:$4 sm:$0xff]   ;;  %v10678_v10 = vld [vmem:[#allocation18 + $0x9a8] ss:$28 sps:$4 sm:$0xff]  }
 0x67c   : > { %7483 = vmatpush1.bf16.msra.mxu0 %v10609_v23  ;;  %v10683_v23 = vld [vmem:[#allocation18 + $0x9dc] ss:$28 sps:$4 sm:$0xff]  }
 0x67d   : > { %7735 = vmatpush1.bf16.msra.mxu1 %v10612_v42  ;;  %7484 = vmatprep.subr.bf16.mxu0 %v10617_v41  ;;  %v2623_v42 = vsub.s32 4, %v11860_v53  ;;  %v10686_v41 = vld [vmem:[#allocation18 + $0x9e4] ss:$28 sps:$4 sm:$0xff]  }
 0x67e   : > { %7736 = vmatprep.subr.bf16.mxu1 %v10620_v30  ;;  %v2631_v30 = vsub.s32 6, %v11860_v53 }
 0x67f   : > { %7460 = vmatmul.mubr.bf16.gmra.mrb[64].mxu0 %v12177_v18  ;;  %7712 = vmatmul.mubr.bf16.gmra.mrb[76].mxu1 %v12177_v18 }
 0x680   : > { %7469 = vmatprep.mubr.bf16.mxu0 %v12201_v4  ;;  %7485 = vmatpush1.bf16.msra.mxu0 %v10615_v34  ;;  %v2627_v34 = vsub.s32 5, %v11860_v53 }
 0x681   : > { %7721 = vmatprep.mubr.bf16.mxu1 %v12201_v4  ;;  %7737 = vmatpush1.bf16.msra.mxu1 %v10618_v46  ;;  %v2635_v46 = vsub.s32 7, %v11860_v53 }
 0x682   : > { %7486 = vmatprep.subr.bf16.mxu0 %v10623_v47  ;;  %7738 = vmatprep.subr.bf16.mxu1 %v10626_v50  ;;  %v10681_v47 = vld [vmem:[#allocation18 + $0x9d8] ss:$28 sps:$4 sm:$0xff]   ;;  %v10684_v50 = vld [vmem:[#allocation18 + $0x9e0] ss:$28 sps:$4 sm:$0xff]  }
 0x684   : > { %7487 = vmatpush1.bf16.msra.mxu0 %v10621_v40  ;;  %v12226_v40 = vrot.slane %v12129_v11, %v2623_v42 }
 0x685   : > { %7739 = vmatpush1.bf16.msra.mxu1 %v10624_v6  ;;  %7488 = vmatprep.subr.bf16.mxu0 %v10629_v20  ;;  %v10689_v6 = vld [vmem:[#allocation18 + $0xa14] ss:$28 sps:$4 sm:$0xff]   ;;  %v12231_v20 = vrot.slane %v12129_v11, %v2631_v30 }
 0x686   : > { %7740 = vmatprep.subr.bf16.mxu1 %v10632_v21  ;;  %v12236_v21 = vrot.slane %v12129_v11, %v2627_v34 }
 0x687   : > { %7470 = vmatmul.mubr.bf16.gmra.mrb[68].mxu0 %v12197_v60  ;;  %7722 = vmatmul.mubr.bf16.gmra.mrb[80].mxu1 %v12197_v60 }
 0x688   : > { %7489 = vmatpush1.bf16.msra.mxu0 %v10627_v49  ;;  %v10692_v49 = vld [vmem:[#allocation18 + $0xa1c] ss:$28 sps:$4 sm:$0xff]  }
 0x689   : > { %7741 = vmatpush1.bf16.msra.mxu1 %v10630_v22  ;;  %7490 = vmatprep.subr.bf16.mxu0 %v10635_v1  ;;  %v12239_v22 = vrot.slane %v12129_v11, %v2635_v46  ;;  %v10698_v11 = vld [vmem:[#allocation18 + $0xa54] ss:$28 sps:$4 sm:$0xff]  }
 0x68a   : > { %7742 = vmatprep.subr.bf16.mxu1 %v10638_v27  ;;  %v10687_v27 = vld [vmem:[#allocation18 + $0xa10] ss:$28 sps:$4 sm:$0xff]  }
 0x68c   : > { %7491 = vmatpush1.bf16.msra.mxu0 %v10633_v36 }
 0x68d   : > { %7743 = vmatpush1.bf16.msra.mxu1 %v10636_v37  ;;  %7492 = vmatprep.subr.bf16.mxu0 %v10641_v24 }
 0x68e   : > { %7744 = vmatprep.subr.bf16.mxu1 %v10644_v28  ;;  %v10690_v28 = vld [vmem:[#allocation18 + $0xa18] ss:$28 sps:$4 sm:$0xff]  }
 0x690   : > { %7493 = vmatpush1.bf16.msra.mxu0 %v10639_v2  ;;  %v10695_v2 = vld [vmem:[#allocation18 + $0xa4c] ss:$28 sps:$4 sm:$0xff]  }
 0x691   : > { %7745 = vmatpush1.bf16.msra.mxu1 %v10642_v29  ;;  %7494 = vmatprep.subr.bf16.mxu0 %v10647_v59 }
 0x692   : > { %7746 = vmatprep.subr.bf16.mxu1 %v10650_v35 }
 0x694   : > { %7495 = vmatpush1.bf16.msra.mxu0 %v10645_v26 }
 0x695   : > { %7747 = vmatpush1.bf16.msra.mxu1 %v10648_v19  ;;  %7496 = vmatprep.subr.bf16.mxu0 %v10653_v14 }
 0x696   : > { %7748 = vmatprep.subr.bf16.mxu1 %v10656_v38 }
 0x698   : > { %7497 = vmatpush1.bf16.msra.mxu0 %v10651_v62 }
 0x699   : > { %7749 = vmatpush1.bf16.msra.mxu1 %v10654_v39  ;;  %7498 = vmatprep.subr.bf16.mxu0 %v10659_v0 }
 0x69a   : > { %7750 = vmatprep.subr.bf16.mxu1 %v10662_v31 }
 0x69c   : > { %7499 = vmatpush1.bf16.msra.mxu0 %v10657_v43  ;;  %v10693_v43 = vld [vmem:[#allocation18 + $0xa48] ss:$28 sps:$4 sm:$0xff]  }
 0x69d   : > { %7751 = vmatpush1.bf16.msra.mxu1 %v10660_v12  ;;  %7500 = vmatprep.subr.bf16.mxu0 %v10665_v44 }
 0x69e   : > { %7752 = vmatprep.subr.bf16.mxu1 %v10668_v15 }
 0x6a0   : > { %7501 = vmatpush1.bf16.msra.mxu0 %v10663_v45  ;;  %v10696_v45 = vld [vmem:[#allocation18 + $0xa50] ss:$28 sps:$4 sm:$0xff]  }
 0x6a1   : > { %7753 = vmatpush1.bf16.msra.mxu1 %v10666_v52  ;;  %7502 = vmatprep.subr.bf16.mxu0 %v10671_v25  ;;  %v10701_v52 = vld [vmem:[#allocation18 + $0xa84] ss:$28 sps:$4 sm:$0xff]  }
 0x6a2   : > { %7754 = vmatprep.subr.bf16.mxu1 %v10674_v56 }
 0x6a4   : > { %7503 = vmatpush1.bf16.msra.mxu0 %v10669_v5 }
 0x6a5   : > { %7755 = vmatpush1.bf16.msra.mxu1 %v10672_v7  ;;  %7504 = vmatprep.subr.bf16.mxu0 %v10677_v8 }
 0x6a6   : > { %7756 = vmatprep.subr.bf16.mxu1 %v10680_v17 }
 0x6a8   : > { %7505 = vmatpush1.bf16.msra.mxu0 %v10675_v9 }
 0x6a9   : > { %7757 = vmatpush1.bf16.msra.mxu1 %v10678_v10  ;;  %7506 = vmatprep.subr.bf16.mxu0 %v10683_v23  ;;  %v10704_v10 = vld [vmem:[#allocation18 + $0xa8c] ss:$28 sps:$4 sm:$0xff]  }
 0x6aa   : > { %7758 = vmatprep.subr.bf16.mxu1 %v10686_v41 }
 0x6ac   : > { %v4274_v1 = vpop.f32.mrb[48].mxu0  ;;  %7507 = vmatpush1.bf16.msra.mxu0 %v10681_v47  ;;  %v10699_v47 = vld [vmem:[#allocation18 + $0xa80] ss:$28 sps:$4 sm:$0xff]  }
 0x6ad   : > { %v9786_v36 = vadd.f32 %v4274_v1, %v12226_v40  ;;  %v4400_v37 = vpop.f32.mrb[60].mxu1  ;;  %7759 = vmatpush1.bf16.msra.mxu1 %v10684_v50  ;;  %v4276_v24 = vpop.f32.mrb[49].mxu0  ;;  %7508 = vmatprep.subr.bf16.mxu0 %v10689_v6 }
 0x6ae   : > { %v9798_v29 = vadd.f32 %v4400_v37, %v12231_v20  ;;  %v9787_v59 = vadd.f32 %v4276_v24, %v12236_v21  ;;  %v4402_v35 = vpop.f32.mrb[61].mxu1  ;;  %v4278_v26 = vpop.f32.mrb[50].mxu0  ;;  %7760 = vmatprep.subr.bf16.mxu1 %v10692_v49 }
 0x6af   : > { %v9799_v19 = vadd.f32 %v4402_v35, %v12239_v22  ;;  %v9788_v14 = vadd.f32 %v4278_v26, %v12226_v40  ;;  %v4404_v38 = vpop.f32.mrb[62].mxu1  ;;  %v4280_v62 = vpop.f32.mrb[51].mxu0  ;;  %v4433_v12 = vmax.f32 %v9786_v36, 0.0  ;;  %v10707_v36 = vld [vmem:[#allocation18 + $0xabc] ss:$28 sps:$4 sm:$0xff]  }
 0x6b0   : > { %v9800_v39 = vadd.f32 %v4404_v38, %v12231_v20  ;;  %v9789_v0 = vadd.f32 %v4280_v62, %v12236_v21  ;;  %v4406_v31 = vpop.f32.mrb[63].mxu1  ;;  %7509 = vmatpush1.bf16.msra.mxu0 %v10687_v27  ;;  %v4435_v25 = vmax.f32 %v9798_v29, 0.0  ;;  %v4434_v56 = vmax.f32 %v9787_v59, 0.0  ;;  %v10702_v27 = vld [vmem:[#allocation18 + $0xa88] ss:$28 sps:$4 sm:$0xff]  }
 0x6b1   : > { %v4441_v44 = vmax.f32 %v9788_v14, 0.0  ;;  %v9801_v15 = vadd.f32 %v4406_v31, %v12239_v22  ;;  %7761 = vmatpush1.bf16.msra.mxu1 %v10690_v28  ;;  %7510 = vmatprep.subr.bf16.mxu0 %v10695_v2  ;;  %v4436_v8 = vmax.f32 %v9799_v19, 0.0  ;;  %v10710_v29 = vld [vmem:[#allocation18 + $0xac4] ss:$28 sps:$4 sm:$0xff]   ;;  %v10705_v62 = vld [vmem:[#allocation18 + $0xab8] ss:$28 sps:$4 sm:$0xff]  }
 0x6b2   : > { %v4443_v5 = vmax.f32 %v9800_v39, 0.0  ;;  %v4442_v7 = vmax.f32 %v9789_v0, 0.0  ;;  %7762 = vmatprep.subr.bf16.mxu1 %v10698_v11 }
 0x6b3   : > { %v12249_v17 = vpack.c.bf16 %v4441_v44, %v4433_v12  ;;  %v4444_v9 = vmax.f32 %v9801_v15, 0.0  ;;  %v10713_v12 = vld [vmem:[#allocation18 + $0xaf4] ss:$28 sps:$4 sm:$0xff]  }
 0x6b4   : > { %v12251_v23 = vpack.c.bf16 %v4443_v5, %v4435_v25  ;;  %v12253_v41 = vpack.c.bf16 %v4442_v7, %v4434_v56  ;;  %v4284_v46 = vpop.f32.mrb[52].mxu0  ;;  %7511 = vmatpush1.bf16.msra.mxu0 %v10693_v43  ;;  %v10708_v43 = vld [vmem:[#allocation18 + $0xac0] ss:$28 sps:$4 sm:$0xff]  }
 0x6b5   : > { %v12255_v50 = vpack.c.bf16 %v4444_v9, %v4436_v8  ;;  %v9790_v6 = vadd.f32 %v4284_v46, %v12226_v40  ;;  %v4410_v49 = vpop.f32.mrb[64].mxu1  ;;  %7763 = vmatpush1.bf16.msra.mxu1 %v10696_v45  ;;  %v4286_v1 = vpop.f32.mrb[53].mxu0  ;;  %7543 = vmatprep.subr.bf16.mxu0 %v10701_v52  ;;  %v10716_v7 = vld [vmem:[#allocation18 + $0xafc] ss:$28 sps:$4 sm:$0xff]   ;;  %v10711_v46 = vld [vmem:[#allocation18 + $0xaf0] ss:$28 sps:$4 sm:$0xff]  }
 0x6b6   : > { %v9802_v37 = vadd.f32 %v4410_v49, %v12231_v20  ;;  %v9791_v24 = vadd.f32 %v4286_v1, %v12236_v21  ;;  %v4412_v28 = vpop.f32.mrb[65].mxu1  ;;  %v4288_v2 = vpop.f32.mrb[54].mxu0  ;;  %7512 = vmatprep.mubr.bf16.mxu0 %v12253_v41  ;;  %7764 = vmatprep.mubr.bf16.mxu1 %v12253_v41 }
 0x6b7   : > { %v9803_v59 = vadd.f32 %v4412_v28, %v12239_v22  ;;  %v9792_v35 = vadd.f32 %v4288_v2, %v12226_v40  ;;  %v4414_v26 = vpop.f32.mrb[66].mxu1  ;;  %v4290_v11 = vpop.f32.mrb[55].mxu0  ;;  %7513 = vmatmul.mubr.bf16.vlgmr.msra.gmra.mrb[60].mxu0 %v12249_v17  ;;  %7795 = vmatprep.subr.bf16.mxu1 %v10704_v10  ;;  %v4449_v39 = vmax.f32 %v9790_v6, 0.0 }
 0x6b8   : > { %v9804_v19 = vadd.f32 %v4414_v26, %v12231_v20  ;;  %v9793_v14 = vadd.f32 %v4290_v11, %v12236_v21  ;;  %v4416_v38 = vpop.f32.mrb[67].mxu1  ;;  %7765 = vmatmul.mubr.bf16.vlgmr.msra.gmra.mrb[72].mxu1 %v12249_v17  ;;  %7544 = vmatpush1.bf16.msra.mxu0 %v10699_v47  ;;  %v4451_v44 = vmax.f32 %v9802_v37, 0.0  ;;  %v4450_v15 = vmax.f32 %v9791_v24, 0.0 }
 0x6b9   : > { %v4457_v0 = vmax.f32 %v9792_v35, 0.0  ;;  %v9805_v31 = vadd.f32 %v4416_v38, %v12239_v22  ;;  %7796 = vmatpush1.bf16.msra.mxu1 %v10702_v27  ;;  %7545 = vmatprep.subr.bf16.mxu0 %v10707_v36  ;;  %v4452_v25 = vmax.f32 %v9803_v59, 0.0  ;;  %v10714_v27 = vld [vmem:[#allocation18 + $0xaf8] ss:$28 sps:$4 sm:$0xff]   ;;  %v10719_v36 = vld [vmem:[#allocation18 + $0xb2c] ss:$28 sps:$4 sm:$0xff]  }
 0x6ba   : > { %v4459_v45 = vmax.f32 %v9804_v19, 0.0  ;;  %v4458_v52 = vmax.f32 %v9793_v14, 0.0  ;;  %7797 = vmatprep.subr.bf16.mxu1 %v10710_v29  ;;  %v10722_v29 = vld [vmem:[#allocation18 + $0xb34] ss:$28 sps:$4 sm:$0xff]  }
 0x6bb   : > { %v12269_v56 = vpack.c.bf16 %v4457_v0, %v4449_v39  ;;  %v4460_v5 = vmax.f32 %v9805_v31, 0.0 }
 0x6bc   : > { %v12271_v8 = vpack.c.bf16 %v4459_v45, %v4451_v44  ;;  %v12273_v9 = vpack.c.bf16 %v4458_v52, %v4450_v15  ;;  %v4294_v10 = vpop.f32.mrb[56].mxu0  ;;  %7546 = vmatpush1.bf16.msra.mxu0 %v10705_v62  ;;  %v10717_v62 = vld [vmem:[#allocation18 + $0xb28] ss:$28 sps:$4 sm:$0xff]  }
 0x6bd   : > { %v12275_v47 = vpack.c.bf16 %v4460_v5, %v4452_v25  ;;  %v9794_v6 = vadd.f32 %v4294_v10, %v12226_v40  ;;  %v4420_v49 = vpop.f32.mrb[68].mxu1  ;;  %7798 = vmatpush1.bf16.msra.mxu1 %v10708_v43  ;;  %v4296_v1 = vpop.f32.mrb[57].mxu0  ;;  %7547 = vmatprep.subr.bf16.mxu0 %v10713_v12  ;;  %v10725_v43 = vld [vmem:[#allocation18 + $0xb64] ss:$28 sps:$4 sm:$0xff]   ;;  %v10728_v25 = vld [vmem:[#allocation18 + $0xb6c] ss:$28 sps:$4 sm:$0xff]  }
 0x6be   : > { %v9806_v37 = vadd.f32 %v4420_v49, %v12231_v20  ;;  %v9795_v24 = vadd.f32 %v4296_v1, %v12236_v21  ;;  %v4422_v28 = vpop.f32.mrb[69].mxu1  ;;  %v4298_v2 = vpop.f32.mrb[58].mxu0  ;;  %7522 = vmatprep.mubr.bf16.mxu0 %v12273_v9  ;;  %7774 = vmatprep.mubr.bf16.mxu1 %v12273_v9  ;;  %v10734_v49 = vld [vmem:[#allocation18 + $0xba4] ss:$28 sps:$4 sm:$0xff]   ;;  %v10729_v1 = vld [vmem:[#allocation18 + $0xb98] ss:$28 sps:$4 sm:$0xff]  }
 0x6bf   : > { %v9807_v59 = vadd.f32 %v4422_v28, %v12239_v22  ;;  %v9796_v35 = vadd.f32 %v4298_v2, %v12226_v40  ;;  %v4424_v26 = vpop.f32.mrb[70].mxu1  ;;  %v4300_v11 = vpop.f32.mrb[59].mxu0  ;;  %7523 = vmatmul.mubr.bf16.gmra.mrb[64].mxu0 %v12269_v56  ;;  %7799 = vmatprep.subr.bf16.mxu1 %v10716_v7  ;;  %v4465_v39 = vmax.f32 %v9794_v6, 0.0  ;;  %v10720_v40 = vld [vmem:[#allocation18 + $0xb30] ss:$28 sps:$4 sm:$0xff]  }
 0x6c0   : > { %v9808_v19 = vadd.f32 %v4424_v26, %v12231_v20  ;;  %v9797_v14 = vadd.f32 %v4300_v11, %v12236_v21  ;;  %v4426_v38 = vpop.f32.mrb[71].mxu1  ;;  %7775 = vmatmul.mubr.bf16.gmra.mrb[76].mxu1 %v12269_v56  ;;  %7548 = vmatpush1.bf16.msra.mxu0 %v10711_v46  ;;  %v4467_v12 = vmax.f32 %v9806_v37, 0.0  ;;  %v4466_v44 = vmax.f32 %v9795_v24, 0.0  ;;  %v10726_v46 = vld [vmem:[#allocation18 + $0xb68] ss:$28 sps:$4 sm:$0xff]  }
 0x6c1   : > { %v4473_v0 = vmax.f32 %v9796_v35, 0.0  ;;  %v9809_v31 = vadd.f32 %v4426_v38, %v12239_v22  ;;  %7800 = vmatpush1.bf16.msra.mxu1 %v10714_v27  ;;  %7549 = vmatprep.subr.bf16.mxu0 %v10719_v36  ;;  %v4468_v20 = vmax.f32 %v9807_v59, 0.0  ;;  %v10723_v22 = vld [vmem:[#allocation18 + $0xb60] ss:$28 sps:$4 sm:$0xff]   ;;  %v10737_v36 = vld [vmem:[#allocation18 + $0xbd4] ss:$28 sps:$4 sm:$0xff]  }
 0x6c2   : > { %v4475_v15 = vmax.f32 %v9808_v19, 0.0  ;;  %v4474_v45 = vmax.f32 %v9797_v14, 0.0  ;;  %7801 = vmatprep.subr.bf16.mxu1 %v10722_v29  ;;  %v10731_v6 = vld [vmem:[#allocation18 + $0xb9c] ss:$28 sps:$4 sm:$0xff]   ;;  %v10735_v24 = vld [vmem:[#allocation18 + $0xbd0] ss:$28 sps:$4 sm:$0xff]  }
 0x6c3   : > { %v12289_v21 = vpack.c.bf16 %v4473_v0, %v4465_v39  ;;  %v4476_v52 = vmax.f32 %v9809_v31, 0.0  ;;  %v10732_v27 = vld [vmem:[#allocation18 + $0xba0] ss:$28 sps:$4 sm:$0xff]   ;;  %v10738_v28 = vld [vmem:[#allocation18 + $0xbd8] ss:$28 sps:$4 sm:$0xff]  }
 0x6c4   : > { %v12291_v5 = vpack.c.bf16 %v4475_v15, %v4467_v12  ;;  %v12293_v7 = vpack.c.bf16 %v4474_v45, %v4466_v44  ;;  %7550 = vmatpush1.bf16.msra.mxu0 %v10717_v62  ;;  %v10740_v37 = vld [vmem:[#allocation18 + $0xbdc] ss:$28 sps:$4 sm:$0xff]   ;;  %v10743_v2 = vld [vmem:[#allocation18 + $0xc0c] ss:$28 sps:$4 sm:$0xff]   ;;  %v10746_v29 = vld [vmem:[#allocation18 + $0xc14] ss:$28 sps:$4 sm:$0xff]  }
 0x6c5   : > { %v12295_v10 = vpack.c.bf16 %v4476_v52, %v4468_v20  ;;  %7802 = vmatpush1.bf16.msra.mxu1 %v10720_v40  ;;  %7551 = vmatprep.subr.bf16.mxu0 %v10725_v43  ;;  %v10741_v59 = vld [vmem:[#allocation18 + $0xc08] ss:$28 sps:$4 sm:$0xff]   ;;  %v10744_v35 = vld [vmem:[#allocation18 + $0xc10] ss:$28 sps:$4 sm:$0xff]   ;;  %v10747_v19 = vld [vmem:[#allocation18 + $0xc40] ss:$28 sps:$4 sm:$0xff]  }
 0x6c6   : > { %7532 = vmatprep.mubr.bf16.mxu0 %v12293_v7  ;;  %7784 = vmatprep.mubr.bf16.mxu1 %v12293_v7  ;;  %v10749_v26 = vld [vmem:[#allocation18 + $0xc44] ss:$28 sps:$4 sm:$0xff]   ;;  %v10752_v11 = vld [vmem:[#allocation18 + $0xc4c] ss:$28 sps:$4 sm:$0xff]   ;;  %v10755_v38 = vld [vmem:[#allocation18 + $0xc7c] ss:$28 sps:$4 sm:$0xff]  }
 0x6c7   : > { %7533 = vmatmul.mubr.bf16.gmra.mrb[68].mxu0 %v12289_v21  ;;  %7803 = vmatprep.subr.bf16.mxu1 %v10728_v25  ;;  %v10750_v14 = vld [vmem:[#allocation18 + $0xc48] ss:$28 sps:$4 sm:$0xff]   ;;  %v10753_v39 = vld [vmem:[#allocation18 + $0xc78] ss:$28 sps:$4 sm:$0xff]   ;;  %v10756_v0 = vld [vmem:[#allocation18 + $0xc80] ss:$28 sps:$4 sm:$0xff]  }
 0x6c8   : > { %7785 = vmatmul.mubr.bf16.gmra.mrb[80].mxu1 %v12289_v21  ;;  %7552 = vmatpush1.bf16.msra.mxu0 %v10723_v22  ;;  %v10758_v62 = vld [vmem:[#allocation18 + $0xc84] ss:$28 sps:$4 sm:$0xff]   ;;  %v10761_v31 = vld [vmem:[#allocation18 + $0xcb4] ss:$28 sps:$4 sm:$0xff]   ;;  %v10764_v40 = vld [vmem:[#allocation18 + $0xcbc] ss:$28 sps:$4 sm:$0xff]  }
 0x6c9   : > { %7575 = vmatprep.mubr.bf16.mxu0 %v12255_v50  ;;  %7804 = vmatpush1.bf16.msra.mxu1 %v10726_v46  ;;  %v10759_v43 = vld [vmem:[#allocation18 + $0xcb0] ss:$28 sps:$4 sm:$0xff]   ;;  %v10762_v12 = vld [vmem:[#allocation18 + $0xcb8] ss:$28 sps:$4 sm:$0xff]   ;;  %v10765_v45 = vld [vmem:[#allocation18 + $0xce8] ss:$28 sps:$4 sm:$0xff]  }
 0x6ca   : > { %7827 = vmatprep.mubr.bf16.mxu1 %v12255_v50  ;;  %7553 = vmatprep.subr.bf16.mxu0 %v10731_v6  ;;  %v10767_v44 = vld [vmem:[#allocation18 + $0xcec] ss:$28 sps:$4 sm:$0xff]   ;;  %v10770_v15 = vld [vmem:[#allocation18 + $0xcf4] ss:$28 sps:$4 sm:$0xff]   ;;  %v10773_v52 = vld [vmem:[#allocation18 + $0xd24] ss:$28 sps:$4 sm:$0xff]  }
 0x6cb   : > { %7805 = vmatprep.subr.bf16.mxu1 %v10734_v49  ;;  %v10768_v20 = vld [vmem:[#allocation18 + $0xcf0] ss:$28 sps:$4 sm:$0xff]   ;;  %v10771_v22 = vld [vmem:[#allocation18 + $0xd20] ss:$28 sps:$4 sm:$0xff]   ;;  %v10774_v46 = vld [vmem:[#allocation18 + $0xd28] ss:$28 sps:$4 sm:$0xff]  }
 0x6cc   : > { %7554 = vmatpush1.bf16.msra.mxu0 %v10729_v1  ;;  %v10776_v25 = vld [vmem:[#allocation18 + $0xd2c] ss:$28 sps:$4 sm:$0xff]   ;;  %v10779_v6 = vld [vmem:[#allocation18 + $0xd5c] ss:$28 sps:$4 sm:$0xff]   ;;  %v10782_v49 = vld [vmem:[#allocation18 + $0xd64] ss:$28 sps:$4 sm:$0xff]  }
 0x6cd   : > { %7806 = vmatpush1.bf16.msra.mxu1 %v10732_v27  ;;  %7555 = vmatprep.subr.bf16.mxu0 %v10737_v36  ;;  %v10777_v1 = vld [vmem:[#allocation18 + $0xd58] ss:$28 sps:$4 sm:$0xff]   ;;  %v10780_v27 = vld [vmem:[#allocation18 + $0xd60] ss:$28 sps:$4 sm:$0xff]  }
 0x6ce   : > { %7807 = vmatprep.subr.bf16.mxu1 %v10740_v37  ;;  %v10785_v36 = vld [vmem:[#allocation18 + $0xd94] ss:$28 sps:$4 sm:$0xff]   ;;  %v10788_v37 = vld [vmem:[#allocation18 + $0xd9c] ss:$28 sps:$4 sm:$0xff]  }
 0x6d0   : > { %7556 = vmatpush1.bf16.msra.mxu0 %v10735_v24  ;;  %v10783_v24 = vld [vmem:[#allocation18 + $0xd90] ss:$28 sps:$4 sm:$0xff]  }
 0x6d1   : > { %7808 = vmatpush1.bf16.msra.mxu1 %v10738_v28  ;;  %7557 = vmatprep.subr.bf16.mxu0 %v10743_v2  ;;  %v10786_v28 = vld [vmem:[#allocation18 + $0xd98] ss:$28 sps:$4 sm:$0xff]   ;;  %v10791_v2 = vld [vmem:[#allocation18 + $0xdcc] ss:$28 sps:$4 sm:$0xff]  }
 0x6d2   : > { %7809 = vmatprep.subr.bf16.mxu1 %v10746_v29  ;;  %v10794_v29 = vld [vmem:[#allocation18 + $0xdd4] ss:$28 sps:$4 sm:$0xff]  }
 0x6d4   : > { %7558 = vmatpush1.bf16.msra.mxu0 %v10741_v59  ;;  %v10789_v59 = vld [vmem:[#allocation18 + $0xdc8] ss:$28 sps:$4 sm:$0xff]  }
 0x6d5   : > { %7810 = vmatpush1.bf16.msra.mxu1 %v10744_v35  ;;  %7559 = vmatprep.subr.bf16.mxu0 %v10749_v26  ;;  %v10792_v35 = vld [vmem:[#allocation18 + $0xdd0] ss:$28 sps:$4 sm:$0xff]  }
 0x6d6   : > { %7811 = vmatprep.subr.bf16.mxu1 %v10752_v11  ;;  %v10797_v26 = vld [vmem:[#allocation18 + $0x14] ss:$28 sps:$4 sm:$0xff]  }
 0x6d7   : > { %v10798_v11 = vld [vmem:[#allocation18 + $0x1d8] ss:$28 sps:$4 sm:$0xff]  }
 0x6d8   : > { %7560 = vmatpush1.bf16.msra.mxu0 %v10747_v19  ;;  %v10795_v19 = vld [vmem:[#allocation18 + $0x10] ss:$28 sps:$4 sm:$0xff]  }
 0x6d9   : > { %7812 = vmatpush1.bf16.msra.mxu1 %v10750_v14  ;;  %7561 = vmatprep.subr.bf16.mxu0 %v10755_v38  ;;  %v10799_v14 = vld [vmem:[#allocation18 + $0x18] ss:$28 sps:$4 sm:$0xff]   ;;  %v10802_v38 = vld [vmem:[#allocation18 + $0x4c] ss:$28 sps:$4 sm:$0xff]  }
 0x6da   : > { %7813 = vmatprep.subr.bf16.mxu1 %v10758_v62  ;;  %v10803_v62 = vld [vmem:[#allocation18 + $0x210] ss:$28 sps:$4 sm:$0xff]  }
 0x6dc   : > { %7562 = vmatpush1.bf16.msra.mxu0 %v10753_v39  ;;  %v10800_v39 = vld [vmem:[#allocation18 + $0x48] ss:$28 sps:$4 sm:$0xff]  }
 0x6dd   : > { %7814 = vmatpush1.bf16.msra.mxu1 %v10756_v0  ;;  %7563 = vmatprep.subr.bf16.mxu0 %v10761_v31  ;;  %v10804_v0 = vld [vmem:[#allocation18 + $0x50] ss:$28 sps:$4 sm:$0xff]   ;;  %v10807_v31 = vld [vmem:[#allocation18 + $0x84] ss:$28 sps:$4 sm:$0xff]  }
 0x6de   : > { %7815 = vmatprep.subr.bf16.mxu1 %v10764_v40  ;;  %v10808_v40 = vld [vmem:[#allocation18 + $0x248] ss:$28 sps:$4 sm:$0xff]  }
 0x6e0   : > { %7564 = vmatpush1.bf16.msra.mxu0 %v10759_v43  ;;  %v10805_v43 = vld [vmem:[#allocation18 + $0x80] ss:$28 sps:$4 sm:$0xff]  }
 0x6e1   : > { %7816 = vmatpush1.bf16.msra.mxu1 %v10762_v12  ;;  %7565 = vmatprep.subr.bf16.mxu0 %v10767_v44  ;;  %v10809_v12 = vld [vmem:[#allocation18 + $0x88] ss:$28 sps:$4 sm:$0xff]   ;;  %v10812_v44 = vld [vmem:[#allocation18 + $0xbc] ss:$28 sps:$4 sm:$0xff]  }
 0x6e2   : > { %7817 = vmatprep.subr.bf16.mxu1 %v10770_v15  ;;  %v10813_v15 = vld [vmem:[#allocation18 + $0x280] ss:$28 sps:$4 sm:$0xff]  }
 0x6e4   : > { %7566 = vmatpush1.bf16.msra.mxu0 %v10765_v45  ;;  %v10810_v45 = vld [vmem:[#allocation18 + $0xb8] ss:$28 sps:$4 sm:$0xff]  }
 0x6e5   : > { %7818 = vmatpush1.bf16.msra.mxu1 %v10768_v20  ;;  %7567 = vmatprep.subr.bf16.mxu0 %v10773_v52  ;;  %v10814_v20 = vld [vmem:[#allocation18 + $0xc0] ss:$28 sps:$4 sm:$0xff]   ;;  %v10817_v52 = vld [vmem:[#allocation18 + $0xf4] ss:$28 sps:$4 sm:$0xff]  }
 0x6e6   : > { %7819 = vmatprep.subr.bf16.mxu1 %v10776_v25  ;;  %v10818_v25 = vld [vmem:[#allocation18 + $0x2b8] ss:$28 sps:$4 sm:$0xff]  }
 0x6e8   : > { %7568 = vmatpush1.bf16.msra.mxu0 %v10771_v22  ;;  %v10815_v22 = vld [vmem:[#allocation18 + $0xf0] ss:$28 sps:$4 sm:$0xff]  }
 0x6e9   : > { %7820 = vmatpush1.bf16.msra.mxu1 %v10774_v46  ;;  %7569 = vmatprep.subr.bf16.mxu0 %v10779_v6  ;;  %v10819_v46 = vld [vmem:[#allocation18 + $0xf8] ss:$28 sps:$4 sm:$0xff]   ;;  %v10822_v6 = vld [vmem:[#allocation18 + $0x12c] ss:$28 sps:$4 sm:$0xff]  }
 0x6ea   : > { %7821 = vmatprep.subr.bf16.mxu1 %v10782_v49  ;;  %v10823_v49 = vld [vmem:[#allocation18 + $0x2f0] ss:$28 sps:$4 sm:$0xff]  }
 0x6ec   : > { %7570 = vmatpush1.bf16.msra.mxu0 %v10777_v1  ;;  %v10820_v1 = vld [vmem:[#allocation18 + $0x128] ss:$28 sps:$4 sm:$0xff]  }
 0x6ed   : > { %7822 = vmatpush1.bf16.msra.mxu1 %v10780_v27  ;;  %7571 = vmatprep.subr.bf16.mxu0 %v10785_v36  ;;  %v10824_v27 = vld [vmem:[#allocation18 + $0x130] ss:$28 sps:$4 sm:$0xff]   ;;  %v10827_v36 = vld [vmem:[#allocation18 + $0x164] ss:$28 sps:$4 sm:$0xff]  }
 0x6ee   : > { %7823 = vmatprep.subr.bf16.mxu1 %v10788_v37  ;;  %v10828_v37 = vld [vmem:[#allocation18 + $0x328] ss:$28 sps:$4 sm:$0xff]  }
 0x6f0   : > { %7572 = vmatpush1.bf16.msra.mxu0 %v10783_v24  ;;  %v10825_v24 = vld [vmem:[#allocation18 + $0x160] ss:$28 sps:$4 sm:$0xff]  }
 0x6f1   : > { %7824 = vmatpush1.bf16.msra.mxu1 %v10786_v28  ;;  %7573 = vmatprep.subr.bf16.mxu0 %v10791_v2  ;;  %v10829_v28 = vld [vmem:[#allocation18 + $0x168] ss:$28 sps:$4 sm:$0xff]   ;;  %v10832_v2 = vld [vmem:[#allocation18 + $0x19c] ss:$28 sps:$4 sm:$0xff]  }
 0x6f2   : > { %7825 = vmatprep.subr.bf16.mxu1 %v10794_v29  ;;  %v10833_v29 = vld [vmem:[#allocation18 + $0x360] ss:$28 sps:$4 sm:$0xff]  }
 0x6f4   : > { %7574 = vmatpush1.bf16.msra.mxu0 %v10789_v59  ;;  %v10830_v59 = vld [vmem:[#allocation18 + $0x198] ss:$28 sps:$4 sm:$0xff]  }
 0x6f5   : > { %7826 = vmatpush1.bf16.msra.mxu1 %v10792_v35  ;;  %7858 = vmatprep.subr.bf16.mxu0 %v10797_v26  ;;  %v10837_v35 = vld [vmem:[#allocation18 + $0x1d4] ss:$28 sps:$4 sm:$0xff]  }
 0x6f6   : > { %9534 = vmatprep.subr.bf16.mxu1 %v10798_v11  ;;  %v10838_v26 = vld [vmem:[#allocation18 + $0x558] ss:$28 sps:$4 sm:$0xff]   ;;  %v10835_v11 = vld [vmem:[#allocation18 + $0x1d0] ss:$28 sps:$4 sm:$0xff]  }
 0x6f7   : > { %7576 = vmatmul.mubr.bf16.vlgmr.msra.gmra.mrb[60].mxu0 %v12251_v23 }
 0x6f8   : > { %7828 = vmatmul.mubr.bf16.vlgmr.msra.gmra.mrb[72].mxu1 %v12251_v23  ;;  %7585 = vmatprep.mubr.bf16.mxu0 %v12275_v47 }
 0x6f9   : > { %7837 = vmatprep.mubr.bf16.mxu1 %v12275_v47  ;;  %7859 = vmatpush1.bf16.msra.mxu0 %v10795_v19  ;;  %v10839_v19 = vld [vmem:[#allocation18 + $0x398] ss:$28 sps:$4 sm:$0xff]  }
 0x6fa   : > { %9535 = vmatpush3.bf16.msra.mxu1 %v10799_v14  ;;  %7860 = vmatprep.subr.bf16.mxu0 %v10802_v38  ;;  %v10842_v14 = vld [vmem:[#allocation18 + $0x20c] ss:$28 sps:$4 sm:$0xff]  }
 0x6fb   : > { %9536 = vmatprep.subr.bf16.mxu1 %v10803_v62  ;;  %v10843_v38 = vld [vmem:[#allocation18 + $0x590] ss:$28 sps:$4 sm:$0xff]   ;;  %v10840_v62 = vld [vmem:[#allocation18 + $0x208] ss:$28 sps:$4 sm:$0xff]  }
 0x6fd   : > { %7861 = vmatpush1.bf16.msra.mxu0 %v10800_v39  ;;  %v10844_v39 = vld [vmem:[#allocation18 + $0x3d0] ss:$28 sps:$4 sm:$0xff]  }
 0x6fe   : > { %9537 = vmatpush3.bf16.msra.mxu1 %v10804_v0  ;;  %7862 = vmatprep.subr.bf16.mxu0 %v10807_v31  ;;  %v10847_v0 = vld [vmem:[#allocation18 + $0x244] ss:$28 sps:$4 sm:$0xff]  }
 0x6ff   : > { %7586 = vmatmul.mubr.bf16.gmra.mrb[64].mxu0 %v12271_v8  ;;  %9538 = vmatprep.subr.bf16.mxu1 %v10808_v40  ;;  %v10848_v31 = vld [vmem:[#allocation18 + $0x5c8] ss:$28 sps:$4 sm:$0xff]   ;;  %v10845_v40 = vld [vmem:[#allocation18 + $0x240] ss:$28 sps:$4 sm:$0xff]  }
 0x700   : > { %7838 = vmatmul.mubr.bf16.gmra.mrb[76].mxu1 %v12271_v8  ;;  %7595 = vmatprep.mubr.bf16.mxu0 %v12295_v10 }
 0x701   : > { %7847 = vmatprep.mubr.bf16.mxu1 %v12295_v10  ;;  %7863 = vmatpush1.bf16.msra.mxu0 %v10805_v43  ;;  %v10849_v43 = vld [vmem:[#allocation18 + $0x408] ss:$28 sps:$4 sm:$0xff]  }
 0x702   : > { %9539 = vmatpush3.bf16.msra.mxu1 %v10809_v12  ;;  %7864 = vmatprep.subr.bf16.mxu0 %v10812_v44  ;;  %v10852_v12 = vld [vmem:[#allocation18 + $0x27c] ss:$28 sps:$4 sm:$0xff]  }
 0x703   : > { %9540 = vmatprep.subr.bf16.mxu1 %v10813_v15  ;;  %v10853_v44 = vld [vmem:[#allocation18 + $0x600] ss:$28 sps:$4 sm:$0xff]   ;;  %v10850_v15 = vld [vmem:[#allocation18 + $0x278] ss:$28 sps:$4 sm:$0xff]  }
 0x705   : > { %7865 = vmatpush1.bf16.msra.mxu0 %v10810_v45  ;;  %v10854_v45 = vld [vmem:[#allocation18 + $0x440] ss:$28 sps:$4 sm:$0xff]  }
 0x706   : > { %9541 = vmatpush3.bf16.msra.mxu1 %v10814_v20  ;;  %7866 = vmatprep.subr.bf16.mxu0 %v10817_v52  ;;  %v10857_v20 = vld [vmem:[#allocation18 + $0x2b4] ss:$28 sps:$4 sm:$0xff]  }
 0x707   : > { %7596 = vmatmul.mubr.bf16.gmra.mrb[68].mxu0 %v12291_v5  ;;  %9542 = vmatprep.subr.bf16.mxu1 %v10818_v25  ;;  %v10858_v52 = vld [vmem:[#allocation18 + $0x638] ss:$28 sps:$4 sm:$0xff]   ;;  %v10855_v25 = vld [vmem:[#allocation18 + $0x2b0] ss:$28 sps:$4 sm:$0xff]  }
 0x708   : > { %7848 = vmatmul.mubr.bf16.gmra.mrb[80].mxu1 %v12291_v5  ;;  %7890 = vmatprep.mubr.bf16.mxu0 %v12159_v16 }
 0x709   : > { %7867 = vmatpush1.bf16.msra.mxu0 %v10815_v22  ;;  %8142 = vmatprep.mubr.bf16.mxu1 %v12159_v16  ;;  %v10834_v16 = vld [vmem:[#allocation18 + $0x1a0] ss:$28 sps:$4 sm:$0xff]   ;;  %v10859_v22 = vld [vmem:[#allocation18 + $0x478] ss:$28 sps:$4 sm:$0xff]  }
 0x70a   : > { %9543 = vmatpush3.bf16.msra.mxu1 %v10819_v46  ;;  %7868 = vmatprep.subr.bf16.mxu0 %v10822_v6  ;;  %v10862_v46 = vld [vmem:[#allocation18 + $0x2ec] ss:$28 sps:$4 sm:$0xff]  }
 0x70b   : > { %9544 = vmatprep.subr.bf16.mxu1 %v10823_v49  ;;  %v10863_v6 = vld [vmem:[#allocation18 + $0x670] ss:$28 sps:$4 sm:$0xff]   ;;  %v10860_v49 = vld [vmem:[#allocation18 + $0x2e8] ss:$28 sps:$4 sm:$0xff]  }
 0x70d   : > { %7869 = vmatpush1.bf16.msra.mxu0 %v10820_v1  ;;  %v10864_v1 = vld [vmem:[#allocation18 + $0x4b0] ss:$28 sps:$4 sm:$0xff]  }
 0x70e   : > { %9545 = vmatpush3.bf16.msra.mxu1 %v10824_v27  ;;  %7870 = vmatprep.subr.bf16.mxu0 %v10827_v36  ;;  %v10867_v27 = vld [vmem:[#allocation18 + $0x324] ss:$28 sps:$4 sm:$0xff]  }
 0x70f   : > { %9546 = vmatprep.subr.bf16.mxu1 %v10828_v37  ;;  %v10868_v36 = vld [vmem:[#allocation18 + $0x6a8] ss:$28 sps:$4 sm:$0xff]   ;;  %v10865_v37 = vld [vmem:[#allocation18 + $0x320] ss:$28 sps:$4 sm:$0xff]  }
 0x711   : > { %7871 = vmatpush1.bf16.msra.mxu0 %v10825_v24  ;;  %v10869_v24 = vld [vmem:[#allocation18 + $0x4e8] ss:$28 sps:$4 sm:$0xff]  }
 0x712   : > { %9547 = vmatpush3.bf16.msra.mxu1 %v10829_v28  ;;  %7872 = vmatprep.subr.bf16.mxu0 %v10832_v2  ;;  %v10872_v28 = vld [vmem:[#allocation18 + $0x35c] ss:$28 sps:$4 sm:$0xff]  }
 0x713   : > { %9548 = vmatprep.subr.bf16.mxu1 %v10833_v29  ;;  %v10873_v2 = vld [vmem:[#allocation18 + $0x6e0] ss:$28 sps:$4 sm:$0xff]   ;;  %v10870_v29 = vld [vmem:[#allocation18 + $0x358] ss:$28 sps:$4 sm:$0xff]  }
 0x715   : > { %7873 = vmatpush1.bf16.msra.mxu0 %v10830_v59  ;;  %v10874_v59 = vld [vmem:[#allocation18 + $0x520] ss:$28 sps:$4 sm:$0xff]  }
 0x716   : > { %9549 = vmatpush3.bf16.msra.mxu1 %v10834_v16  ;;  %7874 = vmatprep.subr.bf16.mxu0 %v10837_v35  ;;  %v10877_v16 = vld [vmem:[#allocation18 + $0x394] ss:$28 sps:$4 sm:$0xff]  }
 0x717   : > { %9568 = vmatprep.subr.bf16.mxu1 %v10838_v26  ;;  %v10878_v35 = vld [vmem:[#allocation18 + $0x8d8] ss:$28 sps:$4 sm:$0xff]   ;;  %v10875_v26 = vld [vmem:[#allocation18 + $0x390] ss:$28 sps:$4 sm:$0xff]  }
 0x719   : > { %8143 = vmatmul.mubr.bf16.vlgmr.msra.gmra.mrb[84].mxu1 %v12155_v61  ;;  %7875 = vmatpush1.bf16.msra.mxu0 %v10835_v11  ;;  %v10879_v11 = vld [vmem:[#allocation18 + $0x718] ss:$28 sps:$4 sm:$0xff]  }
 0x71a   : > { %8150 = vmatprep.mubr.bf16.mxu1 %v12179_v3  ;;  %9569 = vmatpush3.bf16.msra.mxu1 %v10839_v19  ;;  %v10882_v19 = vld [vmem:[#allocation18 + $0x3cc] ss:$28 sps:$4 sm:$0xff]  }
 0x71b   : > { %7876 = vmatprep.subr.bf16.mxu0 %v10842_v14  ;;  %9570 = vmatprep.subr.bf16.mxu1 %v10843_v38  ;;  %v10883_v14 = vld [vmem:[#allocation18 + $0x910] ss:$28 sps:$4 sm:$0xff]   ;;  %v10880_v38 = vld [vmem:[#allocation18 + $0x3c8] ss:$28 sps:$4 sm:$0xff]  }
 0x71d   : > { %7877 = vmatpush1.bf16.msra.mxu0 %v10840_v62  ;;  %v10884_v62 = vld [vmem:[#allocation18 + $0x750] ss:$28 sps:$4 sm:$0xff]  }
 0x71e   : > { %9571 = vmatpush3.bf16.msra.mxu1 %v10844_v39  ;;  %7878 = vmatprep.subr.bf16.mxu0 %v10847_v0  ;;  %v10887_v39 = vld [vmem:[#allocation18 + $0x404] ss:$28 sps:$4 sm:$0xff]  }
 0x71f   : > { %9572 = vmatprep.subr.bf16.mxu1 %v10848_v31  ;;  %v10888_v0 = vld [vmem:[#allocation18 + $0x948] ss:$28 sps:$4 sm:$0xff]   ;;  %v10885_v31 = vld [vmem:[#allocation18 + $0x400] ss:$28 sps:$4 sm:$0xff]  }
 0x721   : > { %8151 = vmatmul.mubr.bf16.gmra.mrb[88].mxu1 %v12175_v13  ;;  %7879 = vmatpush1.bf16.msra.mxu0 %v10845_v40  ;;  %v10892_v40 = vld [vmem:[#allocation18 + $0x43c] ss:$28 sps:$4 sm:$0xff]  }
 0x722   : > { %8158 = vmatprep.mubr.bf16.mxu1 %v12199_v32  ;;  %9573 = vmatpush3.bf16.msra.mxu1 %v10849_v43  ;;  %v10890_v43 = vld [vmem:[#allocation18 + $0x438] ss:$28 sps:$4 sm:$0xff]  }
 0x723   : > { %7880 = vmatprep.subr.bf16.mxu0 %v10852_v12  ;;  %9574 = vmatprep.subr.bf16.mxu1 %v10853_v44  ;;  %v10894_v12 = vld [vmem:[#allocation18 + $0x7c0] ss:$28 sps:$4 sm:$0xff]   ;;  %v10897_v44 = vld [vmem:[#allocation18 + $0x474] ss:$28 sps:$4 sm:$0xff]  }
 0x725   : > { %7881 = vmatpush1.bf16.msra.mxu0 %v10850_v15  ;;  %v10898_v15 = vld [vmem:[#allocation18 + $0x9b8] ss:$28 sps:$4 sm:$0xff]  }
 0x726   : > { %9575 = vmatpush3.bf16.msra.mxu1 %v10854_v45  ;;  %7882 = vmatprep.subr.bf16.mxu0 %v10857_v20  ;;  %v10895_v45 = vld [vmem:[#allocation18 + $0x470] ss:$28 sps:$4 sm:$0xff]  }
 0x727   : > { %9576 = vmatprep.subr.bf16.mxu1 %v10858_v52  ;;  %v10902_v20 = vld [vmem:[#allocation18 + $0x4ac] ss:$28 sps:$4 sm:$0xff]  }
 0x728   : > { %v10900_v52 = vld [vmem:[#allocation18 + $0x4a8] ss:$28 sps:$4 sm:$0xff]  }
 0x729   : > { %8159 = vmatmul.mubr.bf16.gmra.mrb[92].mxu1 %v12195_v63  ;;  %7883 = vmatpush1.bf16.msra.mxu0 %v10855_v25  ;;  %v10904_v25 = vld [vmem:[#allocation18 + $0x830] ss:$28 sps:$4 sm:$0xff]  }
 0x72a   : > { %9577 = vmatpush3.bf16.msra.mxu1 %v10859_v22  ;;  %8199 = vmatprep.mubr.bf16.mxu1 %v12161_v51  ;;  %v10907_v22 = vld [vmem:[#allocation18 + $0x4e4] ss:$28 sps:$4 sm:$0xff]  }
 0x72b   : > { %7884 = vmatprep.subr.bf16.mxu0 %v10862_v46  ;;  %9578 = vmatprep.subr.bf16.mxu1 %v10863_v6  ;;  %v10908_v46 = vld [vmem:[#allocation18 + $0xa28] ss:$28 sps:$4 sm:$0xff]   ;;  %v10905_v6 = vld [vmem:[#allocation18 + $0x4e0] ss:$28 sps:$4 sm:$0xff]  }
 0x72d   : > { %7885 = vmatpush1.bf16.msra.mxu0 %v10860_v49  ;;  %v10912_v49 = vld [vmem:[#allocation18 + $0x51c] ss:$28 sps:$4 sm:$0xff]  }
 0x72e   : > { %9579 = vmatpush3.bf16.msra.mxu1 %v10864_v1  ;;  %7886 = vmatprep.subr.bf16.mxu0 %v10867_v27  ;;  %v10913_v1 = vld [vmem:[#allocation18 + $0xa60] ss:$28 sps:$4 sm:$0xff]  }
 0x72f   : > { %9580 = vmatprep.subr.bf16.mxu1 %v10868_v36  ;;  %v10914_v27 = vld [vmem:[#allocation18 + $0x8a0] ss:$28 sps:$4 sm:$0xff]   ;;  %v10917_v36 = vld [vmem:[#allocation18 + $0x554] ss:$28 sps:$4 sm:$0xff]  }
 0x731   : > { %7887 = vmatpush1.bf16.msra.mxu0 %v10865_v37  ;;  %v10918_v37 = vld [vmem:[#allocation18 + $0xc58] ss:$28 sps:$4 sm:$0xff]  }
 0x732   : > { %9581 = vmatpush3.bf16.msra.mxu1 %v10869_v24  ;;  %7888 = vmatprep.subr.bf16.mxu0 %v10872_v28  ;;  %v10915_v24 = vld [vmem:[#allocation18 + $0x550] ss:$28 sps:$4 sm:$0xff]   ;;  %v10919_v28 = vld [vmem:[#allocation18 + $0xa98] ss:$28 sps:$4 sm:$0xff]  }
 0x733   : > { %9582 = vmatprep.subr.bf16.mxu1 %v10873_v2  ;;  %v10922_v2 = vld [vmem:[#allocation18 + $0x58c] ss:$28 sps:$4 sm:$0xff]  }
 0x735   : > { %7889 = vmatpush1.bf16.msra.mxu0 %v10870_v29  ;;  %v10923_v29 = vld [vmem:[#allocation18 + $0xc90] ss:$28 sps:$4 sm:$0xff]  }
 0x736   : > { %9583 = vmatpush3.bf16.msra.mxu1 %v10874_v59  ;;  %7921 = vmatprep.subr.bf16.mxu0 %v10877_v16  ;;  %v10920_v59 = vld [vmem:[#allocation18 + $0x588] ss:$28 sps:$4 sm:$0xff]   ;;  %v10924_v16 = vld [vmem:[#allocation18 + $0xad0] ss:$28 sps:$4 sm:$0xff]  }
 0x737   : > { %9602 = vmatprep.subr.bf16.mxu1 %v10878_v35  ;;  %v10927_v35 = vld [vmem:[#allocation18 + $0x5c4] ss:$28 sps:$4 sm:$0xff]  }
 0x738   : > { %7891 = vmatmul.mubr.bf16.vlgmr.msra.gmra.mrb[72].mxu0 %v12155_v61  ;;  %v10889_v61 = vld [vmem:[#allocation18 + $0x788] ss:$28 sps:$4 sm:$0xff]  }
 0x739   : > { %8200 = vmatmul.mubr.bf16.vlgmr.msra.gmra.mrb[96].mxu1 %v12157_v48  ;;  %7900 = vmatprep.mubr.bf16.mxu0 %v12179_v3  ;;  %v10893_v3 = vld [vmem:[#allocation18 + $0x980] ss:$28 sps:$4 sm:$0xff]  }
 0x73a   : > { %7922 = vmatpush1.bf16.msra.mxu0 %v10875_v26  ;;  %8207 = vmatprep.mubr.bf16.mxu1 %v12181_v33  ;;  %v10928_v26 = vld [vmem:[#allocation18 + $0xcc8] ss:$28 sps:$4 sm:$0xff]  }
 0x73b   : > { %9603 = vmatpush3.bf16.msra.mxu1 %v10879_v11  ;;  %7923 = vmatprep.subr.bf16.mxu0 %v10882_v19  ;;  %v10925_v11 = vld [vmem:[#allocation18 + $0x5c0] ss:$28 sps:$4 sm:$0xff]   ;;  %v10929_v19 = vld [vmem:[#allocation18 + $0xb08] ss:$28 sps:$4 sm:$0xff]  }
 0x73c   : > { %9604 = vmatprep.subr.bf16.mxu1 %v10883_v14  ;;  %v10932_v14 = vld [vmem:[#allocation18 + $0x5fc] ss:$28 sps:$4 sm:$0xff]  }
 0x73e   : > { %7924 = vmatpush1.bf16.msra.mxu0 %v10880_v38  ;;  %v10933_v38 = vld [vmem:[#allocation18 + $0xd00] ss:$28 sps:$4 sm:$0xff]  }
 0x73f   : > { %9605 = vmatpush3.bf16.msra.mxu1 %v10884_v62  ;;  %7925 = vmatprep.subr.bf16.mxu0 %v10887_v39  ;;  %v10930_v62 = vld [vmem:[#allocation18 + $0x5f8] ss:$28 sps:$4 sm:$0xff]   ;;  %v10934_v39 = vld [vmem:[#allocation18 + $0xb40] ss:$28 sps:$4 sm:$0xff]  }
 0x740   : > { %7901 = vmatmul.mubr.bf16.gmra.mrb[76].mxu0 %v12175_v13  ;;  %9606 = vmatprep.subr.bf16.mxu1 %v10888_v0  ;;  %v10899_v13 = vld [vmem:[#allocation18 + $0x7f8] ss:$28 sps:$4 sm:$0xff]  }
 0x741   : > { %8208 = vmatmul.mubr.bf16.gmra.mrb[100].mxu1 %v12177_v18  ;;  %7910 = vmatprep.mubr.bf16.mxu0 %v12199_v32  ;;  %v10903_v32 = vld [vmem:[#allocation18 + $0x9f0] ss:$28 sps:$4 sm:$0xff]  }
 0x742   : > { %7926 = vmatpush1.bf16.msra.mxu0 %v10885_v31  ;;  %8215 = vmatprep.mubr.bf16.mxu1 %v12201_v4  ;;  %v10937_v0 = vld [vmem:[#allocation18 + $0x634] ss:$28 sps:$4 sm:$0xff]  }
 0x743   : > { %9607 = vmatpush3.bf16.msra.mxu1 %v10889_v61  ;;  %7927 = vmatprep.subr.bf16.mxu0 %v10892_v40  ;;  %v10938_v31 = vld [vmem:[#allocation18 + $0xd38] ss:$28 sps:$4 sm:$0xff]   ;;  %v10935_v61 = vld [vmem:[#allocation18 + $0x630] ss:$28 sps:$4 sm:$0xff]  }
 0x744   : > { %9608 = vmatprep.subr.bf16.mxu1 %v10893_v3  ;;  %v10939_v40 = vld [vmem:[#allocation18 + $0xb78] ss:$28 sps:$4 sm:$0xff]   ;;  %v10942_v3 = vld [vmem:[#allocation18 + $0x66c] ss:$28 sps:$4 sm:$0xff]  }
 0x746   : > { %7928 = vmatpush1.bf16.msra.mxu0 %v10890_v43  ;;  %v10943_v43 = vld [vmem:[#allocation18 + $0xd70] ss:$28 sps:$4 sm:$0xff]  }
 0x747   : > { %9609 = vmatpush3.bf16.msra.mxu1 %v10894_v12  ;;  %7929 = vmatprep.subr.bf16.mxu0 %v10897_v44  ;;  %v10940_v12 = vld [vmem:[#allocation18 + $0x668] ss:$28 sps:$4 sm:$0xff]   ;;  %v10944_v44 = vld [vmem:[#allocation18 + $0xbb0] ss:$28 sps:$4 sm:$0xff]  }
 0x748   : > { %7911 = vmatmul.mubr.bf16.gmra.mrb[80].mxu0 %v12195_v63  ;;  %9610 = vmatprep.subr.bf16.mxu1 %v10898_v15  ;;  %v10909_v63 = vld [vmem:[#allocation18 + $0x868] ss:$28 sps:$4 sm:$0xff]  }
 0x749   : > { %8216 = vmatmul.mubr.bf16.gmra.mrb[104].mxu1 %v12197_v60  ;;  %7953 = vmatprep.mubr.bf16.mxu0 %v12161_v51  ;;  %v10910_v51 = vld [vmem:[#allocation18 + $0x518] ss:$28 sps:$4 sm:$0xff]   ;;  %v10947_v15 = vld [vmem:[#allocation18 + $0x6a4] ss:$28 sps:$4 sm:$0xff]  }
 0x74a   : > { %7930 = vmatpush1.bf16.msra.mxu0 %v10895_v45  ;;  %8256 = vmatprep.mubr.bf16.mxu1 %v12253_v41  ;;  %v10948_v45 = vld [vmem:[#allocation18 + $0xda8] ss:$28 sps:$4 sm:$0xff]  }
 0x74b   : > { %9611 = vmatpush3.bf16.msra.mxu1 %v10899_v13  ;;  %7931 = vmatprep.subr.bf16.mxu0 %v10902_v20  ;;  %v10945_v13 = vld [vmem:[#allocation18 + $0x6a0] ss:$28 sps:$4 sm:$0xff]   ;;  %v10949_v20 = vld [vmem:[#allocation18 + $0xbe8] ss:$28 sps:$4 sm:$0xff]  }
 0x74c   : > { %9612 = vmatprep.subr.bf16.mxu1 %v10903_v32  ;;  %v10952_v32 = vld [vmem:[#allocation18 + $0x6dc] ss:$28 sps:$4 sm:$0xff]  }
 0x74e   : > { %7932 = vmatpush1.bf16.msra.mxu0 %v10900_v52  ;;  %v10953_v52 = vld [vmem:[#allocation18 + $0xde0] ss:$28 sps:$4 sm:$0xff]  }
 0x74f   : > { %9613 = vmatpush3.bf16.msra.mxu1 %v10904_v25  ;;  %7933 = vmatprep.subr.bf16.mxu0 %v10907_v22  ;;  %v10950_v25 = vld [vmem:[#allocation18 + $0x6d8] ss:$28 sps:$4 sm:$0xff]   ;;  %v10954_v22 = vld [vmem:[#allocation18 + $0xc20] ss:$28 sps:$4 sm:$0xff]  }
 0x750   : > { %9614 = vmatprep.subr.bf16.mxu1 %v10908_v46  ;;  %v10957_v46 = vld [vmem:[#allocation18 + $0x714] ss:$28 sps:$4 sm:$0xff]  }
 0x752   : > { %7934 = vmatpush1.bf16.msra.mxu0 %v10905_v6  ;;  %v10955_v6 = vld [vmem:[#allocation18 + $0x710] ss:$28 sps:$4 sm:$0xff]  }
 0x753   : > { %9615 = vmatpush3.bf16.msra.mxu1 %v10909_v63  ;;  %7935 = vmatprep.subr.bf16.mxu0 %v10912_v49  ;;  %v10960_v63 = vld [vmem:[#allocation18 + $0x74c] ss:$28 sps:$4 sm:$0xff]  }
 0x754   : > { %9616 = vmatprep.subr.bf16.mxu1 %v10913_v1  ;;  %v10958_v49 = vld [vmem:[#allocation18 + $0x748] ss:$28 sps:$4 sm:$0xff]  }
 0x755   : > { %v10963_v1 = vld [vmem:[#allocation18 + $0x784] ss:$28 sps:$4 sm:$0xff]  }
 0x756   : > { %7936 = vmatpush1.bf16.msra.mxu0 %v10910_v51  ;;  %v10961_v51 = vld [vmem:[#allocation18 + $0x780] ss:$28 sps:$4 sm:$0xff]  }
 0x757   : > { %9617 = vmatpush3.bf16.msra.mxu1 %v10914_v27  ;;  %7937 = vmatprep.subr.bf16.mxu0 %v10917_v36  ;;  %v10966_v27 = vld [vmem:[#allocation18 + $0x7bc] ss:$28 sps:$4 sm:$0xff]   ;;  %v10967_v36 = vld [vmem:[#allocation18 + $0x7f0] ss:$28 sps:$4 sm:$0xff]  }
 0x758   : > { %9636 = vmatprep.subr.bf16.mxu1 %v10918_v37  ;;  %v10972_v37 = vld [vmem:[#allocation18 + $0x82c] ss:$28 sps:$4 sm:$0xff]  }
 0x75a   : > { %8257 = vmatmul.mubr.bf16.vlgmr.msra.gmra.mrb[108].mxu1 %v12249_v17  ;;  %7938 = vmatpush1.bf16.msra.mxu0 %v10915_v24  ;;  %v10973_v24 = vld [vmem:[#allocation18 + $0x860] ss:$28 sps:$4 sm:$0xff]  }
 0x75b   : > { %8264 = vmatprep.mubr.bf16.mxu1 %v12273_v9  ;;  %9637 = vmatpush3.bf16.msra.mxu1 %v10919_v28  ;;  %v10978_v28 = vld [vmem:[#allocation18 + $0x89c] ss:$28 sps:$4 sm:$0xff]  }
 0x75c   : > { %7939 = vmatprep.subr.bf16.mxu0 %v10922_v2  ;;  %9638 = vmatprep.subr.bf16.mxu1 %v10923_v29  ;;  %v10976_v2 = vld [vmem:[#allocation18 + $0x898] ss:$28 sps:$4 sm:$0xff]  }
 0x75d   : > { %v10981_v29 = vld [vmem:[#allocation18 + $0x8d4] ss:$28 sps:$4 sm:$0xff]  }
 0x75e   : > { %7940 = vmatpush1.bf16.msra.mxu0 %v10920_v59  ;;  %v10979_v59 = vld [vmem:[#allocation18 + $0x8d0] ss:$28 sps:$4 sm:$0xff]  }
 0x75f   : > { %9639 = vmatpush3.bf16.msra.mxu1 %v10924_v16  ;;  %7941 = vmatprep.subr.bf16.mxu0 %v10927_v35  ;;  %v10982_v16 = vld [vmem:[#allocation18 + $0x908] ss:$28 sps:$4 sm:$0xff]   ;;  %v10985_v35 = vld [vmem:[#allocation18 + $0x940] ss:$28 sps:$4 sm:$0xff]  }
 0x760   : > { %9640 = vmatprep.subr.bf16.mxu1 %v10928_v26  ;;  %v10990_v26 = vld [vmem:[#allocation18 + $0x97c] ss:$28 sps:$4 sm:$0xff]  }
 0x762   : > { %8265 = vmatmul.mubr.bf16.gmra.mrb[112].mxu1 %v12269_v56  ;;  %7942 = vmatpush1.bf16.msra.mxu0 %v10925_v11  ;;  %v10988_v11 = vld [vmem:[#allocation18 + $0x978] ss:$28 sps:$4 sm:$0xff]  }
 0x763   : > { %8272 = vmatprep.mubr.bf16.mxu1 %v12293_v7  ;;  %9641 = vmatpush3.bf16.msra.mxu1 %v10929_v19  ;;  %v10993_v19 = vld [vmem:[#allocation18 + $0x9b4] ss:$28 sps:$4 sm:$0xff]  }
 0x764   : > { %7943 = vmatprep.subr.bf16.mxu0 %v10932_v14  ;;  %9642 = vmatprep.subr.bf16.mxu1 %v10933_v38  ;;  %v10991_v14 = vld [vmem:[#allocation18 + $0x9b0] ss:$28 sps:$4 sm:$0xff]  }
 0x765   : > { %v10996_v38 = vld [vmem:[#allocation18 + $0x9ec] ss:$28 sps:$4 sm:$0xff]  }
 0x766   : > { %7944 = vmatpush1.bf16.msra.mxu0 %v10930_v62  ;;  %v10994_v62 = vld [vmem:[#allocation18 + $0x9e8] ss:$28 sps:$4 sm:$0xff]  }
 0x767   : > { %9643 = vmatpush3.bf16.msra.mxu1 %v10934_v39  ;;  %7945 = vmatprep.subr.bf16.mxu0 %v10937_v0  ;;  %v10999_v39 = vld [vmem:[#allocation18 + $0xa24] ss:$28 sps:$4 sm:$0xff]  }
 0x768   : > { %9644 = vmatprep.subr.bf16.mxu1 %v10938_v31  ;;  %v10997_v0 = vld [vmem:[#allocation18 + $0xa20] ss:$28 sps:$4 sm:$0xff]  }
 0x769   : > { %v11002_v31 = vld [vmem:[#allocation18 + $0xa5c] ss:$28 sps:$4 sm:$0xff]  }
 0x76a   : > { %8273 = vmatmul.mubr.bf16.gmra.mrb[116].mxu1 %v12289_v21  ;;  %7946 = vmatpush1.bf16.msra.mxu0 %v10935_v61  ;;  %v11000_v61 = vld [vmem:[#allocation18 + $0xa58] ss:$28 sps:$4 sm:$0xff]  }
 0x76b   : > { %9645 = vmatpush3.bf16.msra.mxu1 %v10939_v40  ;;  %8313 = vmatprep.mubr.bf16.mxu1 %v12255_v50  ;;  %v11005_v40 = vld [vmem:[#allocation18 + $0xa94] ss:$28 sps:$4 sm:$0xff]  }
 0x76c   : > { %7947 = vmatprep.subr.bf16.mxu0 %v10942_v3  ;;  %9646 = vmatprep.subr.bf16.mxu1 %v10943_v43  ;;  %v11003_v3 = vld [vmem:[#allocation18 + $0xa90] ss:$28 sps:$4 sm:$0xff]  }
 0x76d   : > { %v11008_v43 = vld [vmem:[#allocation18 + $0xacc] ss:$28 sps:$4 sm:$0xff]  }
 0x76e   : > { %7948 = vmatpush1.bf16.msra.mxu0 %v10940_v12  ;;  %v11006_v12 = vld [vmem:[#allocation18 + $0xac8] ss:$28 sps:$4 sm:$0xff]  }
 0x76f   : > { %9647 = vmatpush3.bf16.msra.mxu1 %v10944_v44  ;;  %7949 = vmatprep.subr.bf16.mxu0 %v10947_v15  ;;  %v11011_v44 = vld [vmem:[#allocation18 + $0xb04] ss:$28 sps:$4 sm:$0xff]  }
 0x770   : > { %9648 = vmatprep.subr.bf16.mxu1 %v10948_v45  ;;  %v11009_v15 = vld [vmem:[#allocation18 + $0xb00] ss:$28 sps:$4 sm:$0xff]  }
 0x771   : > { %v11014_v45 = vld [vmem:[#allocation18 + $0xb3c] ss:$28 sps:$4 sm:$0xff]  }
 0x772   : > { %7950 = vmatpush1.bf16.msra.mxu0 %v10945_v13  ;;  %v11012_v13 = vld [vmem:[#allocation18 + $0xb38] ss:$28 sps:$4 sm:$0xff]  }
 0x773   : > { %9649 = vmatpush3.bf16.msra.mxu1 %v10949_v20  ;;  %7951 = vmatprep.subr.bf16.mxu0 %v10952_v32  ;;  %v11017_v20 = vld [vmem:[#allocation18 + $0xb74] ss:$28 sps:$4 sm:$0xff]  }
 0x774   : > { %9650 = vmatprep.subr.bf16.mxu1 %v10953_v52 }
 0x776   : > { %7952 = vmatpush1.bf16.msra.mxu0 %v10950_v25 }
 0x777   : > { %9651 = vmatpush3.bf16.msra.mxu1 %v10954_v22  ;;  %7984 = vmatprep.subr.bf16.mxu0 %v10957_v46 }
 0x779   : > { %7954 = vmatmul.mubr.bf16.vlgmr.msra.gmra.mrb[72].mxu0 %v12157_v48  ;;  %v10964_v48 = vld [vmem:[#allocation18 + $0x7b8] ss:$28 sps:$4 sm:$0xff]  }
 0x77a   : > { %8314 = vmatmul.mubr.bf16.vlgmr.msra.gmra.mrb[120].mxu1 %v12251_v23  ;;  %7963 = vmatprep.mubr.bf16.mxu0 %v12181_v33  ;;  %v10969_v33 = vld [vmem:[#allocation18 + $0x7f4] ss:$28 sps:$4 sm:$0xff]  }
 0x77b   : > { %7985 = vmatpush1.bf16.msra.mxu0 %v10955_v6  ;;  %8321 = vmatprep.mubr.bf16.mxu1 %v12275_v47  ;;  %v11018_v6 = vld [vmem:[#allocation18 + $0xba8] ss:$28 sps:$4 sm:$0xff]  }
 0x77c   : > { %7986 = vmatprep.subr.bf16.mxu0 %v10960_v63 }
 0x77f   : > { %7987 = vmatpush1.bf16.msra.mxu0 %v10958_v49  ;;  %v11023_v49 = vld [vmem:[#allocation18 + $0xbe4] ss:$28 sps:$4 sm:$0xff]  }
 0x780   : > { %7988 = vmatprep.subr.bf16.mxu0 %v10963_v1 }
 0x781   : > { %7964 = vmatmul.mubr.bf16.gmra.mrb[76].mxu0 %v12177_v18  ;;  %v10970_v18 = vld [vmem:[#allocation18 + $0x828] ss:$28 sps:$4 sm:$0xff]  }
 0x782   : > { %8322 = vmatmul.mubr.bf16.gmra.mrb[124].mxu1 %v12271_v8  ;;  %7973 = vmatprep.mubr.bf16.mxu0 %v12201_v4  ;;  %v10975_v4 = vld [vmem:[#allocation18 + $0x864] ss:$28 sps:$4 sm:$0xff]  }
 0x783   : > { %7989 = vmatpush1.bf16.msra.mxu0 %v10961_v51  ;;  %8329 = vmatprep.mubr.bf16.mxu1 %v12295_v10 }
 0x784   : > { %7990 = vmatprep.subr.bf16.mxu0 %v10966_v27 }
 0x787   : > { %7991 = vmatpush1.bf16.msra.mxu0 %v10964_v48 }
 0x788   : > { %7992 = vmatprep.subr.bf16.mxu0 %v10969_v33 }
 0x789   : > { %7974 = vmatmul.mubr.bf16.gmra.mrb[80].mxu0 %v12197_v60  ;;  %v10984_v60 = vld [vmem:[#allocation18 + $0x90c] ss:$28 sps:$4 sm:$0xff]  }
 0x78a   : > { %8330 = vmatmul.mubr.bf16.gmra.mrb[128].mxu1 %v12291_v5  ;;  %8016 = vmatprep.mubr.bf16.mxu0 %v12253_v41  ;;  %v10987_v41 = vld [vmem:[#allocation18 + $0x944] ss:$28 sps:$4 sm:$0xff]  }
 0x78b   : > { %7993 = vmatpush1.bf16.msra.mxu0 %v10967_v36 }
 0x78c   : > { %7994 = vmatprep.subr.bf16.mxu0 %v10972_v37 }
 0x78f   : > { %7995 = vmatpush1.bf16.msra.mxu0 %v10970_v18 }
 0x790   : > { %7996 = vmatprep.subr.bf16.mxu0 %v10975_v4 }
 0x793   : > { %7997 = vmatpush1.bf16.msra.mxu0 %v10973_v24 }
 0x794   : > { %7998 = vmatprep.subr.bf16.mxu0 %v10978_v28 }
 0x797   : > { %7999 = vmatpush1.bf16.msra.mxu0 %v10976_v2 }
 0x798   : > { %8000 = vmatprep.subr.bf16.mxu0 %v10981_v29  ;;  %v11021_v29 = vld [vmem:[#allocation18 + $0xbe0] ss:$28 sps:$4 sm:$0xff]  }
 0x79b   : > { %8001 = vmatpush1.bf16.msra.mxu0 %v10979_v59 }
 0x79c   : > { %8002 = vmatprep.subr.bf16.mxu0 %v10984_v60 }
 0x79f   : > { %8003 = vmatpush1.bf16.msra.mxu0 %v10982_v16  ;;  %v11026_v16 = vld [vmem:[#allocation18 + $0xc1c] ss:$28 sps:$4 sm:$0xff]  }
 0x7a0   : > { %8004 = vmatprep.subr.bf16.mxu0 %v10987_v41 }
 0x7a3   : > { %8005 = vmatpush1.bf16.msra.mxu0 %v10985_v35 }
 0x7a4   : > { %8006 = vmatprep.subr.bf16.mxu0 %v10990_v26 }
 0x7a7   : > { %8007 = vmatpush1.bf16.msra.mxu0 %v10988_v11 }
 0x7a8   : > { %8008 = vmatprep.subr.bf16.mxu0 %v10993_v19 }
 0x7ab   : > { %8009 = vmatpush1.bf16.msra.mxu0 %v10991_v14  ;;  %v11024_v14 = vld [vmem:[#allocation18 + $0xc18] ss:$28 sps:$4 sm:$0xff]  }
 0x7ac   : > { %8010 = vmatprep.subr.bf16.mxu0 %v10996_v38 }
 0x7af   : > { %8011 = vmatpush1.bf16.msra.mxu0 %v10994_v62 }
 0x7b0   : > { %8012 = vmatprep.subr.bf16.mxu0 %v10999_v39 }
 0x7b3   : > { %8013 = vmatpush1.bf16.msra.mxu0 %v10997_v0 }
 0x7b4   : > { %8014 = vmatprep.subr.bf16.mxu0 %v11002_v31  ;;  %v11029_v31 = vld [vmem:[#allocation18 + $0xc54] ss:$28 sps:$4 sm:$0xff]  }
 0x7b7   : > { %8015 = vmatpush1.bf16.msra.mxu0 %v11000_v61 }
 0x7b8   : > { %8047 = vmatprep.subr.bf16.mxu0 %v11005_v40 }
 0x7ba   : > { %8017 = vmatmul.mubr.bf16.vlgmr.msra.gmra.mrb[72].mxu0 %v12249_v17  ;;  %v12354_v17 = vld [vmem:[#allocation19] sm:$0xff] }
 0x7bb   : > { %8026 = vmatprep.mubr.bf16.mxu0 %v12273_v9  ;;  %8048 = vmatpush1.bf16.msra.mxu0 %v11003_v3  ;;  %v11015_v9 = vld [vmem:[#allocation18 + $0xb70] ss:$28 sps:$4 sm:$0xff]   ;;  %v12358_v32 = vrot.slane %v12354_v17, %v11863_v54  ;;  %v12363_v52 = vrot.slane %v12354_v17, %v11866_v55  ;;  %v12371_v25 = vrot.slane %v12354_v17, %v11872_v58 }
 0x7bc   : > { %8049 = vmatprep.subr.bf16.mxu0 %v11008_v43 }
 0x7bf   : > { %8050 = vmatpush1.bf16.msra.mxu0 %v11006_v12 }
 0x7c0   : > { %8051 = vmatprep.subr.bf16.mxu0 %v11011_v44 }
 0x7c2   : > { %8027 = vmatmul.mubr.bf16.gmra.mrb[76].mxu0 %v12269_v56  ;;  %v12367_v56 = vrot.slane %v12354_v17, %v11869_v57 }
 0x7c3   : > { %8036 = vmatprep.mubr.bf16.mxu0 %v12293_v7  ;;  %8052 = vmatpush1.bf16.msra.mxu0 %v11009_v15  ;;  %v11020_v7 = vld [vmem:[#allocation18 + $0xbac] ss:$28 sps:$4 sm:$0xff]  }
 0x7c4   : > { %8053 = vmatprep.subr.bf16.mxu0 %v11014_v45 }
 0x7c7   : > { %8054 = vmatpush1.bf16.msra.mxu0 %v11012_v13 }
 0x7c8   : > { %8055 = vmatprep.subr.bf16.mxu0 %v11017_v20 }
 0x7ca   : > { %8037 = vmatmul.mubr.bf16.gmra.mrb[80].mxu0 %v12289_v21  ;;  %v7577_v22 = vpop.f32.mrb[60].mxu0 }
 0x7cb   : > { %8056 = vmatpush1.bf16.msra.mxu0 %v11015_v9  ;;  %8079 = vmatprep.mubr.bf16.mxu0 %v12255_v50  ;;  %v9810_v54 = vadd.f32 %v7577_v22, %v12358_v32  ;;  %v7829_v46 = vpop.f32.mrb[72].mxu1  ;;  %v7579_v55 = vpop.f32.mrb[61].mxu0 }
 0x7cc   : > { %v9822_v57 = vadd.f32 %v7829_v46, %v12363_v52  ;;  %v9811_v58 = vadd.f32 %v7579_v55, %v12367_v56  ;;  %v7831_v21 = vpop.f32.mrb[73].mxu1  ;;  %8057 = vmatprep.subr.bf16.mxu0 %v11020_v7  ;;  %v7581_v63 = vpop.f32.mrb[62].mxu0 }
 0x7cd   : > { %v8338_v50 = vmax.f32 %v9810_v54, 0.0  ;;  %v9823_v1 = vadd.f32 %v7831_v21, %v12371_v25  ;;  %v9812_v51 = vadd.f32 %v7581_v63, %v12358_v32  ;;  %v7833_v27 = vpop.f32.mrb[74].mxu1  ;;  %v7583_v48 = vpop.f32.mrb[63].mxu0  ;;  %v11027_v54 = vld [vmem:[#allocation18 + $0xc50] ss:$28 sps:$4 sm:$0xff]  }
 0x7ce   : > { %v8340_v33 = vmax.f32 %v9822_v57, 0.0  ;;  %v8339_v36 = vmax.f32 %v9811_v58, 0.0  ;;  %v9824_v37 = vadd.f32 %v7833_v27, %v12363_v52  ;;  %v9813_v18 = vadd.f32 %v7583_v48, %v12367_v56  ;;  %v7835_v4 = vpop.f32.mrb[75].mxu1 }
 0x7cf   : > { %8380 = vst [vmem:[%s12379_s27] sm:$0xff] %v8338_v50  ;;  %v8341_v24 = vmax.f32 %v9823_v1, 0.0  ;;  %v8345_v28 = vmax.f32 %v9812_v51, 0.0  ;;  %8058 = vmatpush1.bf16.msra.mxu0 %v11018_v6  ;;  %v9825_v2 = vadd.f32 %v7835_v4, %v12371_v25  ;;  %v11032_v6 = vld [vmem:[#allocation18 + $0xc8c] ss:$28 sps:$4 sm:$0xff]  }
 0x7d0   : > { %8382 = vst [vmem:[%s12379_s27 + $0x10] sm:$0xff] %v8340_v33  ;;  %8381 = vst [vmem:[%s12379_s27 + $0x8] sm:$0xff] %v8339_v36  ;;  %v8347_v59 = vmax.f32 %v9824_v37, 0.0  ;;  %v8346_v60 = vmax.f32 %v9813_v18, 0.0  ;;  %8059 = vmatprep.subr.bf16.mxu0 %v11023_v49  ;;  %v11030_v50 = vld [vmem:[#allocation18 + $0xc88] ss:$28 sps:$4 sm:$0xff]  }
 0x7d1   : > { %8383 = vst [vmem:[%s12379_s27 + $0x18] sm:$0xff] %v8341_v24  ;;  %8387 = vst [vmem:[%s12379_s27 + $0x38] sm:$0xff] %v8345_v28  ;;  %v8348_v41 = vmax.f32 %v9825_v2, 0.0  ;;  %v11035_v33 = vld [vmem:[#allocation18 + $0xcc4] ss:$28 sps:$4 sm:$0xff]  }
 0x7d2   : > { %8389 = vst [vmem:[%s12379_s27 + $0x48] sm:$0xff] %v8347_v59  ;;  %8388 = vst [vmem:[%s12379_s27 + $0x40] sm:$0xff] %v8346_v60  ;;  %v7587_v35 = vpop.f32.mrb[64].mxu0 }
 0x7d3   : > { %8390 = vst [vmem:[%s12379_s27 + $0x50] sm:$0xff] %v8348_v41  ;;  %8060 = vmatpush1.bf16.msra.mxu0 %v11021_v29  ;;  %v9814_v26 = vadd.f32 %v7587_v35, %v12358_v32  ;;  %v7839_v11 = vpop.f32.mrb[76].mxu1  ;;  %v7589_v19 = vpop.f32.mrb[65].mxu0  ;;  %v11033_v35 = vld [vmem:[#allocation18 + $0xcc0] ss:$28 sps:$4 sm:$0xff]  }
 0x7d4   : > { %v9826_v38 = vadd.f32 %v7839_v11, %v12363_v52  ;;  %v9815_v62 = vadd.f32 %v7589_v19, %v12367_v56  ;;  %v7841_v39 = vpop.f32.mrb[77].mxu1  ;;  %8061 = vmatprep.subr.bf16.mxu0 %v11026_v16  ;;  %v7591_v0 = vpop.f32.mrb[66].mxu0  ;;  %v11036_v19 = vld [vmem:[#allocation18 + $0xcf8] ss:$28 sps:$4 sm:$0xff]  }
 0x7d5   : > { %v8352_v61 = vmax.f32 %v9814_v26, 0.0  ;;  %v9827_v40 = vadd.f32 %v7841_v39, %v12371_v25  ;;  %v9816_v3 = vadd.f32 %v7591_v0, %v12358_v32  ;;  %v7843_v43 = vpop.f32.mrb[78].mxu1  ;;  %v7593_v12 = vpop.f32.mrb[67].mxu0  ;;  %v11047_v0 = vld [vmem:[#allocation18 + $0xda4] ss:$28 sps:$4 sm:$0xff]  }
 0x7d6   : > { %v8354_v44 = vmax.f32 %v9826_v38, 0.0  ;;  %v8353_v15 = vmax.f32 %v9815_v62, 0.0  ;;  %v9828_v45 = vadd.f32 %v7843_v43, %v12363_v52  ;;  %v9817_v13 = vadd.f32 %v7593_v12, %v12367_v56  ;;  %v7845_v20 = vpop.f32.mrb[79].mxu1  ;;  %v11039_v38 = vld [vmem:[#allocation18 + $0xd30] ss:$28 sps:$4 sm:$0xff]  }
 0x7d7   : > { %8394 = vst [vmem:[%s12379_s27 + $0x70] sm:$0xff] %v8352_v61  ;;  %v8355_v9 = vmax.f32 %v9827_v40, 0.0  ;;  %v8359_v7 = vmax.f32 %v9816_v3, 0.0  ;;  %8062 = vmatpush1.bf16.msra.mxu0 %v11024_v14  ;;  %v9829_v22 = vadd.f32 %v7845_v20, %v12371_v25  ;;  %v11041_v14 = vld [vmem:[#allocation18 + $0xd34] ss:$28 sps:$4 sm:$0xff]  }
 0x7d8   : > { %8396 = vst [vmem:[%s12379_s27 + $0x80] sm:$0xff] %v8354_v44  ;;  %8395 = vst [vmem:[%s12379_s27 + $0x78] sm:$0xff] %v8353_v15  ;;  %v8361_v46 = vmax.f32 %v9828_v45, 0.0  ;;  %v8360_v55 = vmax.f32 %v9817_v13, 0.0  ;;  %8063 = vmatprep.subr.bf16.mxu0 %v11029_v31  ;;  %v11042_v62 = vld [vmem:[#allocation18 + $0xd68] ss:$28 sps:$4 sm:$0xff]  }
 0x7d9   : > { %8397 = vst [vmem:[%s12379_s27 + $0x88] sm:$0xff] %v8355_v9  ;;  %8401 = vst [vmem:[%s12379_s27 + $0xa8] sm:$0xff] %v8359_v7  ;;  %v8362_v57 = vmax.f32 %v9829_v22, 0.0  ;;  %v11045_v43 = vld [vmem:[#allocation18 + $0xda0] ss:$28 sps:$4 sm:$0xff]  }
 0x7da   : > { %8403 = vst [vmem:[%s12379_s27 + $0xb8] sm:$0xff] %v8361_v46  ;;  %8402 = vst [vmem:[%s12379_s27 + $0xb0] sm:$0xff] %v8360_v55  ;;  %v7597_v58 = vpop.f32.mrb[68].mxu0  ;;  %v11050_v44 = vld [vmem:[#allocation18 + $0xddc] ss:$28 sps:$4 sm:$0xff]  }
 0x7db   : > { %8404 = vst [vmem:[%s12379_s27 + $0xc0] sm:$0xff] %v8362_v57  ;;  %8064 = vmatpush1.bf16.msra.mxu0 %v11027_v54  ;;  %v9818_v21 = vadd.f32 %v7597_v58, %v12358_v32  ;;  %v7849_v63 = vpop.f32.mrb[80].mxu1  ;;  %v7599_v49 = vpop.f32.mrb[69].mxu0  ;;  %v11048_v15 = vld [vmem:[#allocation18 + $0xdd8] ss:$28 sps:$4 sm:$0xff]  }
 0x7dc   : > { %v9830_v1 = vadd.f32 %v7849_v63, %v12363_v52  ;;  %v9819_v51 = vadd.f32 %v7599_v49, %v12367_v56  ;;  %v7851_v27 = vpop.f32.mrb[81].mxu1  ;;  %8065 = vmatprep.subr.bf16.mxu0 %v11032_v6  ;;  %v7601_v48 = vpop.f32.mrb[70].mxu0 }
 0x7dd   : > { %v8366_v36 = vmax.f32 %v9818_v21, 0.0  ;;  %v9831_v37 = vadd.f32 %v7851_v27, %v12371_v25  ;;  %v9820_v18 = vadd.f32 %v7601_v48, %v12358_v32  ;;  %v7853_v4 = vpop.f32.mrb[82].mxu1  ;;  %v7603_v24 = vpop.f32.mrb[71].mxu0  ;;  %v5042_v21 = vrot.slane %v12354_v17, %v2631_v30 }
 0x7de   : > { %v8368_v28 = vmax.f32 %v9830_v1, 0.0  ;;  %v8367_v2 = vmax.f32 %v9819_v51, 0.0  ;;  %v9832_v29 = vadd.f32 %v7853_v4, %v12363_v52  ;;  %v9821_v59 = vadd.f32 %v7603_v24, %v12367_v56  ;;  %v7855_v60 = vpop.f32.mrb[83].mxu1  ;;  %v11038_v52 = vld [vmem:[#allocation18 + $0xcfc] ss:$28 sps:$4 sm:$0xff]  }
 0x7df   : > { %8408 = vst [vmem:[%s12379_s27 + $0xe0] sm:$0xff] %v8366_v36  ;;  %v8369_v16 = vmax.f32 %v9831_v37, 0.0  ;;  %v8373_v41 = vmax.f32 %v9820_v18, 0.0  ;;  %8066 = vmatpush1.bf16.msra.mxu0 %v11030_v50  ;;  %v9833_v32 = vadd.f32 %v7855_v60, %v12371_v25  ;;  %v11044_v25 = vld [vmem:[#allocation18 + $0xd6c] ss:$28 sps:$4 sm:$0xff]  }
 0x7e0   : > { %8410 = vst [vmem:[%s12379_s27 + $0xf0] sm:$0xff] %v8368_v28  ;;  %8409 = vst [vmem:[%s12379_s27 + $0xe8] sm:$0xff] %v8367_v2  ;;  %v8375_v26 = vmax.f32 %v9832_v29, 0.0  ;;  %v8374_v11 = vmax.f32 %v9821_v59, 0.0  ;;  %8067 = vmatprep.subr.bf16.mxu0 %v11035_v33 }
 0x7e1   : > { %8411 = vst [vmem:[%s12379_s27 + $0xf8] sm:$0xff] %v8369_v16  ;;  %8415 = vst [vmem:[%s12379_s27 + $0x118] sm:$0xff] %v8373_v41  ;;  %v8376_v56 = vmax.f32 %v9833_v32, 0.0 }
 0x7e2   : > { %8417 = vst [vmem:[%s12379_s27 + $0x128] sm:$0xff] %v8375_v26  ;;  %8416 = vst [vmem:[%s12379_s27 + $0x120] sm:$0xff] %v8374_v11 }
 0x7e3   : > { %8418 = vst [vmem:[%s12379_s27 + $0x130] sm:$0xff] %v8376_v56  ;;  %8068 = vmatpush1.bf16.msra.mxu0 %v11033_v35 }
 0x7e4   : > { %8069 = vmatprep.subr.bf16.mxu0 %v11038_v52 }
 0x7e7   : > { %8070 = vmatpush1.bf16.msra.mxu0 %v11036_v19 }
 0x7e8   : > { %8071 = vmatprep.subr.bf16.mxu0 %v11041_v14 }
 0x7eb   : > { %8072 = vmatpush1.bf16.msra.mxu0 %v11039_v38 }
 0x7ec   : > { %v9550_v39 = vpop.f32.mrb[84].mxu1  ;;  %8073 = vmatprep.subr.bf16.mxu0 %v11044_v25 }
 0x7ed   : > { %v9551_v31 = vpop.f32.mrb[85].mxu1 }
 0x7ee   : > { %v9552_v61 = vadd.f32 %v9551_v31, %v9550_v39  ;;  %v9553_v40 = vpop.f32.mrb[86].mxu1 }
 0x7ef   : > { %8074 = vmatpush1.bf16.msra.mxu0 %v11042_v62  ;;  %v9554_v3 = vpop.f32.mrb[87].mxu1 }
 0x7f0   : > { %v9555_v12 = vadd.f32 %v9554_v3, %v9553_v40  ;;  %8075 = vmatprep.subr.bf16.mxu0 %v11047_v0  ;;  %v8145_v49 = vadd.f32 %v9552_v61, %v5042_v21 }
 0x7f2   : > { %v8148_v51 = vadd.f32 %v9555_v12, %v5042_v21 }
 0x7f3   : > { %8076 = vmatpush1.bf16.msra.mxu0 %v11045_v43 }
 0x7f4   : > { %v9556_v45 = vpop.f32.mrb[88].mxu1  ;;  %8077 = vmatprep.subr.bf16.mxu0 %v11050_v44 }
 0x7f5   : > { %v9557_v13 = vpop.f32.mrb[89].mxu1 }
 0x7f6   : > { %v9558_v20 = vadd.f32 %v9557_v13, %v9556_v45  ;;  %v9559_v9 = vpop.f32.mrb[90].mxu1 }
 0x7f7   : > { %8078 = vmatpush1.bf16.msra.mxu0 %v11048_v15  ;;  %v9560_v7 = vpop.f32.mrb[91].mxu1 }
 0x7f8   : > { %v9561_v22 = vadd.f32 %v9560_v7, %v9559_v9  ;;  %v8153_v37 = vadd.f32 %v9558_v20, %v5042_v21 }
 0x7fa   : > { %8080 = vmatmul.mubr.bf16.vlgmr.msra.gmra.mrb[72].mxu0 %v12251_v23  ;;  %v8156_v24 = vadd.f32 %v9561_v22, %v5042_v21 }
 0x7fb   : > { %8089 = vmatprep.mubr.bf16.mxu0 %v12275_v47 }
 0x7fc   : > { %v9562_v54 = vpop.f32.mrb[92].mxu1 }
 0x7fd   : > { %v9563_v46 = vpop.f32.mrb[93].mxu1 }
 0x7fe   : > { %v9564_v55 = vadd.f32 %v9563_v46, %v9562_v54  ;;  %v9565_v6 = vpop.f32.mrb[94].mxu1 }
 0x7ff   : > { %v9566_v57 = vpop.f32.mrb[95].mxu1 }
 0x800   : > { %v9567_v58 = vadd.f32 %v9566_v57, %v9565_v6  ;;  %v8161_v59 = vadd.f32 %v9564_v55, %v5042_v21 }
 0x802   : > { %8090 = vmatmul.mubr.bf16.gmra.mrb[76].mxu0 %v12271_v8  ;;  %v8164_v32 = vadd.f32 %v9567_v58, %v5042_v21 }
 0x803   : > { %8099 = vmatprep.mubr.bf16.mxu0 %v12295_v10 }
 0x80a   : > { %8100 = vmatmul.mubr.bf16.gmra.mrb[80].mxu0 %v12291_v5 }
 0x80c   : > { %v9584_v63 = vpop.f32.mrb[96].mxu1 }
 0x80d   : > { %v9585_v23 = vpop.f32.mrb[97].mxu1 }
 0x80e   : > { %v9586_v47 = vadd.f32 %v9585_v23, %v9584_v63  ;;  %v9587_v50 = vpop.f32.mrb[98].mxu1 }
 0x80f   : > { %v9588_v1 = vpop.f32.mrb[99].mxu1 }
 0x810   : > { %v8202_v27 = vadd.f32 %v9586_v47, %v8145_v49  ;;  %v9589_v48 = vadd.f32 %v9588_v1, %v9587_v50 }
 0x812   : > { %v8205_v33 = vadd.f32 %v9589_v48, %v8148_v51 }
 0x814   : > { %v9590_v36 = vpop.f32.mrb[100].mxu1 }
 0x815   : > { %v9591_v8 = vpop.f32.mrb[101].mxu1 }
 0x816   : > { %v9592_v10 = vadd.f32 %v9591_v8, %v9590_v36  ;;  %v9593_v18 = vpop.f32.mrb[102].mxu1 }
 0x817   : > { %v9594_v4 = vpop.f32.mrb[103].mxu1 }
 0x818   : > { %v8210_v30 = vadd.f32 %v9592_v10, %v8153_v37  ;;  %v9595_v28 = vadd.f32 %v9594_v4, %v9593_v18 }
 0x81a   : > { %v8213_v5 = vadd.f32 %v9595_v28, %v8156_v24 }
 0x81c   : > { %v9596_v2 = vpop.f32.mrb[104].mxu1 }
 0x81d   : > { %v9597_v29 = vpop.f32.mrb[105].mxu1 }
 0x81e   : > { %v9598_v60 = vadd.f32 %v9597_v29, %v9596_v2  ;;  %v9599_v16 = vpop.f32.mrb[106].mxu1 }
 0x81f   : > { %v9600_v41 = vpop.f32.mrb[107].mxu1 }
 0x820   : > { %v8218_v35 = vadd.f32 %v9598_v60, %v8161_v59  ;;  %v9601_v26 = vadd.f32 %v9600_v41, %v9599_v16  ;;  %v5034_v16 = vrot.slane %v12354_v17, %v2623_v42  ;;  %v5038_v41 = vrot.slane %v12354_v17, %v2627_v34 }
 0x822   : > { %v8221_v11 = vadd.f32 %v9601_v26, %v8164_v32 }
 0x82d   : > { %v9618_v52 = vpop.f32.mrb[108].mxu1 }
 0x82e   : > { %v9619_v56 = vpop.f32.mrb[109].mxu1 }
 0x82f   : > { %v9620_v19 = vadd.f32 %v9619_v56, %v9618_v52  ;;  %v9621_v14 = vpop.f32.mrb[110].mxu1 }
 0x830   : > { %v9622_v38 = vpop.f32.mrb[111].mxu1 }
 0x831   : > { %v8259_v25 = vadd.f32 %v9620_v19, %v8202_v27  ;;  %v9623_v62 = vadd.f32 %v9622_v38, %v9621_v14 }
 0x833   : > { %v8262_v39 = vadd.f32 %v9623_v62, %v8205_v33 }
 0x835   : > { %v9624_v0 = vpop.f32.mrb[112].mxu1 }
 0x836   : > { %v9625_v31 = vpop.f32.mrb[113].mxu1 }
 0x837   : > { %v9626_v61 = vadd.f32 %v9625_v31, %v9624_v0  ;;  %v9627_v40 = vpop.f32.mrb[114].mxu1 }
 0x838   : > { %v9628_v3 = vpop.f32.mrb[115].mxu1 }
 0x839   : > { %v8267_v43 = vadd.f32 %v9626_v61, %v8210_v30  ;;  %v9629_v12 = vadd.f32 %v9628_v3, %v9627_v40 }
 0x83b   : > { %v8270_v44 = vadd.f32 %v9629_v12, %v8213_v5 }
 0x83d   : > { %v9630_v15 = vpop.f32.mrb[116].mxu1 }
 0x83e   : > { %v9631_v45 = vpop.f32.mrb[117].mxu1 }
 0x83f   : > { %v9632_v13 = vadd.f32 %v9631_v45, %v9630_v15  ;;  %v9633_v20 = vpop.f32.mrb[118].mxu1 }
 0x840   : > { %v9634_v9 = vpop.f32.mrb[119].mxu1 }
 0x841   : > { %v8275_v7 = vadd.f32 %v9632_v13, %v8218_v35  ;;  %v9635_v22 = vadd.f32 %v9634_v9, %v9633_v20 }
 0x843   : > { %v8278_v54 = vadd.f32 %v9635_v22, %v8221_v11 }
 0x84d   : > { %v9652_v46 = vpop.f32.mrb[120].mxu1 }
 0x84e   : > { %v9653_v55 = vpop.f32.mrb[121].mxu1 }
 0x84f   : > { %v9654_v6 = vadd.f32 %v9653_v55, %v9652_v46  ;;  %v9655_v57 = vpop.f32.mrb[122].mxu1 }
 0x850   : > { %v9656_v58 = vpop.f32.mrb[123].mxu1 }
 0x851   : > { %v8316_v21 = vadd.f32 %v9654_v6, %v8259_v25  ;;  %v9657_v63 = vadd.f32 %v9656_v58, %v9655_v57 }
 0x853   : > { %v8344_v23 = vmax.f32 %v8316_v21, 0.0  ;;  %v8319_v49 = vadd.f32 %v9657_v63, %v8262_v39 }
 0x855   : > { %8386 = vst [vmem:[%s12379_s27 + $0x30] sm:$0xff] %v8344_v23  ;;  %v8351_v47 = vmax.f32 %v8319_v49, 0.0  ;;  %v9658_v50 = vpop.f32.mrb[124].mxu1 }
 0x856   : > { %v9659_v1 = vpop.f32.mrb[125].mxu1 }
 0x857   : > { %8393 = vst [vmem:[%s12379_s27 + $0x68] sm:$0xff] %v8351_v47  ;;  %v9660_v51 = vadd.f32 %v9659_v1, %v9658_v50  ;;  %v9661_v27 = vpop.f32.mrb[126].mxu1 }
 0x858   : > { %v9662_v48 = vpop.f32.mrb[127].mxu1 }
 0x859   : > { %v8324_v33 = vadd.f32 %v9660_v51, %v8267_v43  ;;  %v9663_v36 = vadd.f32 %v9662_v48, %v9661_v27 }
 0x85b   : > { %v8358_v8 = vmax.f32 %v8324_v33, 0.0  ;;  %v8327_v37 = vadd.f32 %v9663_v36, %v8270_v44 }
 0x85d   : > { %8400 = vst [vmem:[%s12379_s27 + $0xa0] sm:$0xff] %v8358_v8  ;;  %v8365_v10 = vmax.f32 %v8327_v37, 0.0  ;;  %v9664_v18 = vpop.f32.mrb[128].mxu1 }
 0x85e   : > { %v9665_v4 = vpop.f32.mrb[129].mxu1 }
 0x85f   : > { %8407 = vst [vmem:[%s12379_s27 + $0xd8] sm:$0xff] %v8365_v10  ;;  %v9666_v24 = vadd.f32 %v9665_v4, %v9664_v18  ;;  %v9667_v30 = vpop.f32.mrb[130].mxu1 }
 0x860   : > { %v9668_v28 = vpop.f32.mrb[131].mxu1 }
 0x861   : > { %v8332_v5 = vadd.f32 %v9666_v24, %v8275_v7  ;;  %v9669_v2 = vadd.f32 %v9668_v28, %v9667_v30 }
 0x863   : > { %v8372_v29 = vmax.f32 %v8332_v5, 0.0  ;;  %v8335_v59 = vadd.f32 %v9669_v2, %v8278_v54 }
 0x865   : > { %8414 = vst [vmem:[%s12379_s27 + $0x110] sm:$0xff] %v8372_v29  ;;  %v8379_v60 = vmax.f32 %v8335_v59, 0.0 }
 0x867   : > { %8421 = vst [vmem:[%s12379_s27 + $0x148] sm:$0xff] %v8379_v60 }
 0x8cd   : > { %v8081_v32 = vpop.f32.mrb[72].mxu0 }
 0x8ce   : > { %v9834_v35 = vadd.f32 %v8081_v32, %v5034_v16  ;;  %v8083_v26 = vpop.f32.mrb[73].mxu0 }
 0x8cf   : > { %v9835_v11 = vadd.f32 %v8083_v26, %v5038_v41  ;;  %v8085_v52 = vpop.f32.mrb[74].mxu0 }
 0x8d0   : > { %v8342_v56 = vmax.f32 %v9834_v35, 0.0  ;;  %v9836_v19 = vadd.f32 %v8085_v52, %v5034_v16  ;;  %v8087_v14 = vpop.f32.mrb[75].mxu0 }
 0x8d1   : > { %v8343_v38 = vmax.f32 %v9835_v11, 0.0  ;;  %v9837_v25 = vadd.f32 %v8087_v14, %v5038_v41 }
 0x8d2   : > { %8384 = vst [vmem:[%s12379_s27 + $0x20] sm:$0xff] %v8342_v56  ;;  %v8349_v62 = vmax.f32 %v9836_v19, 0.0 }
 0x8d3   : > { %8385 = vst [vmem:[%s12379_s27 + $0x28] sm:$0xff] %v8343_v38  ;;  %v8350_v53 = vmax.f32 %v9837_v25, 0.0 }
 0x8d4   : > { %8391 = vst [vmem:[%s12379_s27 + $0x58] sm:$0xff] %v8349_v62 }
 0x8d5   : > { %8392 = vst [vmem:[%s12379_s27 + $0x60] sm:$0xff] %v8350_v53  ;;  %v8091_v42 = vpop.f32.mrb[76].mxu0 }
 0x8d6   : > { %v9838_v34 = vadd.f32 %v8091_v42, %v5034_v16  ;;  %v8093_v17 = vpop.f32.mrb[77].mxu0 }
 0x8d7   : > { %v9839_v39 = vadd.f32 %v8093_v17, %v5038_v41  ;;  %v8095_v0 = vpop.f32.mrb[78].mxu0 }
 0x8d8   : > { %v8356_v31 = vmax.f32 %v9838_v34, 0.0  ;;  %v9840_v61 = vadd.f32 %v8095_v0, %v5034_v16  ;;  %v8097_v40 = vpop.f32.mrb[79].mxu0 }
 0x8d9   : > { %v8357_v3 = vmax.f32 %v9839_v39, 0.0  ;;  %v9841_v43 = vadd.f32 %v8097_v40, %v5038_v41 }
 0x8da   : > { %8398 = vst [vmem:[%s12379_s27 + $0x90] sm:$0xff] %v8356_v31  ;;  %v8363_v12 = vmax.f32 %v9840_v61, 0.0 }
 0x8db   : > { %8399 = vst [vmem:[%s12379_s27 + $0x98] sm:$0xff] %v8357_v3  ;;  %v8364_v44 = vmax.f32 %v9841_v43, 0.0 }
 0x8dc   : > { %8405 = vst [vmem:[%s12379_s27 + $0xc8] sm:$0xff] %v8363_v12 }
 0x8dd   : > { %8406 = vst [vmem:[%s12379_s27 + $0xd0] sm:$0xff] %v8364_v44  ;;  %v8101_v15 = vpop.f32.mrb[80].mxu0 }
 0x8de   : > { %v9842_v45 = vadd.f32 %v8101_v15, %v5034_v16  ;;  %v8103_v13 = vpop.f32.mrb[81].mxu0 }
 0x8df   : > { %v9843_v20 = vadd.f32 %v8103_v13, %v5038_v41  ;;  %v8105_v9 = vpop.f32.mrb[82].mxu0 }
 0x8e0   : > { %v8370_v7 = vmax.f32 %v9842_v45, 0.0  ;;  %v9844_v22 = vadd.f32 %v8105_v9, %v5034_v16  ;;  %v8107_v54 = vpop.f32.mrb[83].mxu0 }
 0x8e1   : > { %v8371_v46 = vmax.f32 %v9843_v20, 0.0  ;;  %v9845_v55 = vadd.f32 %v8107_v54, %v5038_v41 }
 0x8e2   : > { %8412 = vst [vmem:[%s12379_s27 + $0x100] sm:$0xff] %v8370_v7  ;;  %v8377_v6 = vmax.f32 %v9844_v22, 0.0 }
 0x8e3   : > { %8413 = vst [vmem:[%s12379_s27 + $0x108] sm:$0xff] %v8371_v46  ;;  %v8378_v57 = vmax.f32 %v9845_v55, 0.0 }
 0x8e4   : > { %8419 = vst [vmem:[%s12379_s27 + $0x138] sm:$0xff] %v8377_v6 }
 0x8e5   : > { %8420 = vst [vmem:[%s12379_s27 + $0x140] sm:$0xff] %v8378_v57 }
 0x8e6 PF: > { %s30_s25 = sadd.s32 1, %s11421_s25  }
 0x8e7   : > { %p27_p7 = scmp.ge.s32.totalorder %s30_s25, 4  }
 0x8e9   :  { %29 = sbr.rel (!%p27_p7) target bundleno = 12 (0xc), region = 151 }
 0x8f0   :  { %8446 = vsyncpa [#allocation3], 1 }
 0x8f1   :  { %8448 = vsyncpa [#allocation3 + $0x1], 1 }
 0x8f2   :  { %8449 = vsyncpa [#allocation5], 1 }
 0x8f3   :  { %8450 = vsyncpa [#allocation8], 1 }
 0x8f4   :  { %8451 = vsyncpa [#allocation11], 1 }
 0x8f5   :  { %8452 = vsyncpa [#allocation14], 1 }
 0x8f6   :  { %8453 = vsyncpa [#allocation17], 1 }
 0x8f7   :  { %8454 = vsyncpa [#allocation20], 1 }

</bundles_post_ra>
